<compile_context>
chip_gen: v5e
topology: v5e:2x2
jax: 0.10.0
libtpu: 0.0.40
codegen_flags: <defaults>
</compile_context>

<pallas_src>
import functools
import math

import jax
import jax.numpy as jnp
from jax.experimental import pallas as pl
from jax.experimental.pallas import tpu as pltpu

LANE = 128                       # lane width: all kernel outputs padded to this


def _round_up(x, m):
    return ((x + m - 1) // m) * m


def _detect_vmem_budget():
    """~75% of physical VMEM: ≈96MiB on v5e/v6e (128MiB), ≈48MiB on v7x (64MiB).
    Conservative 48MiB fallback if the hardware query is unavailable."""
    try:
        cap = int(pltpu.get_tpu_info().vmem_capacity_bytes)
        if cap <= 0:
            raise ValueError
    except Exception:
        cap = 64 * 1024 * 1024
    return (cap * 3) // 4


_VMEM_BUDGET = _detect_vmem_budget()


def _pick_tile(dim, prefer):
    if dim <= prefer:
        return dim
    for t in (prefer, 128, 64, 32, 16, 8):
        if dim % t == 0:
            return t
    return dim


# ----------------------------------------------------------------------------
# Pallas kernel 1: fused matmul + bias + optional ReLU
#   bf16 operands on the MXU, f32 VMEM accumulator, (M, N, K)-tiled grid.
# ----------------------------------------------------------------------------
def _matmul_kernel(a_ref, w_ref, b_ref, o_ref, acc_ref, *, activation):
    @pl.when(pl.program_id(2) == 0)
    def _init():
        acc_ref[...] = jnp.zeros_like(acc_ref)

    acc_ref[...] += jnp.dot(a_ref[...], w_ref[...],
                            preferred_element_type=jnp.float32)

    @pl.when(pl.program_id(2) == pl.num_programs(2) - 1)
    def _finalize():
        out = acc_ref[...] + b_ref[...]
        if activation == "relu":
            out = jnp.maximum(out, 0.0)
        o_ref[...] = out.astype(o_ref.dtype)


def pallas_linear(a, w, b, activation=None):
    """a: [M, K], w: [K, Np] (Np % 128 == 0), b: [Np] -> [M, Np] float32."""
    M, K = a.shape
    Kw, Np = w.shape
    assert K == Kw and Np % LANE == 0, (a.shape, w.shape)

    # Pad M to a multiple of 128 so tile_m never degenerates to 8 rows.
    Mp = _round_up(M, LANE)
    a_bf = a.astype(jnp.bfloat16)
    if Mp != M:
        a_bf = jnp.pad(a_bf, ((0, Mp - M), (0, 0)))

    tile_m = _pick_tile(Mp, 256)
    tile_n = Np if Np <= 256 else (256 if Np % 256 == 0 else 128)
    tile_k = 256 if (K > 1024 and K % 256 == 0) else K

    out = pl.pallas_call(
        functools.partial(_matmul_kernel, activation=activation),
        out_shape=jax.ShapeDtypeStruct((Mp, Np), jnp.float32),
        grid=(Mp // tile_m, Np // tile_n, K // tile_k),
        in_specs=[
            pl.BlockSpec((tile_m, tile_k), lambda i, j, k: (i, k)),
            pl.BlockSpec((tile_k, tile_n), lambda i, j, k: (k, j)),
            pl.BlockSpec((1, tile_n), lambda i, j, k: (0, j)),
        ],
        out_specs=pl.BlockSpec((tile_m, tile_n), lambda i, j, k: (i, j)),
        scratch_shapes=[pltpu.VMEM((tile_m, tile_n), jnp.float32)],
        compiler_params=pltpu.CompilerParams(
            dimension_semantics=("parallel", "parallel", "arbitrary"),
            vmem_limit_bytes=_VMEM_BUDGET),
    )(a_bf, w.astype(jnp.bfloat16), b.reshape(1, Np).astype(jnp.float32))
    return out[:M] if Mp != M else out


# ----------------------------------------------------------------------------
# Pallas kernel 2: 3x3 stride-1 pad-1 conv as an in-kernel tap reduction over a
# row strip of the flattened bf16 input, plus an optional fused 1x1 head.
# ----------------------------------------------------------------------------
def _conv_tap_kernel(*refs, taps, rows, activation, has_head):
    if has_head:
        x_ref, w_ref, b_ref, hw_ref, hb_ref, o_ref, acc_ref = refs
    else:
        x_ref, w_ref, b_ref, o_ref, acc_ref = refs

    # 9 tap matmuls accumulate into a *bounded* VMEM scratch (no giant live
    # value spilling through the register file).  Input is already bf16.
    # TODO(synk): pair adjacent taps (K=256) on v6e/v7x and fold all 9 taps into
    # a single K=9*Cin dot when Cin is tiny (first conv) for higher MXU fill.
    acc_ref[...] = jnp.dot(x_ref[0, taps[0]:taps[0] + rows, :], w_ref[0],
                           preferred_element_type=jnp.float32)
    for t in range(1, len(taps)):
        off = taps[t]
        acc_ref[...] += jnp.dot(x_ref[0, off:off + rows, :], w_ref[t],
                                preferred_element_type=jnp.float32)

    out = acc_ref[...] + b_ref[...]
    if activation == "relu":
        out = jnp.maximum(out, 0.0)
    if has_head:
        # fused 1x1 head (RPN loc|score): kills one full HBM round trip.
        out = jnp.dot(out.astype(jnp.bfloat16), hw_ref[...],
                      preferred_element_type=jnp.float32) + hb_ref[...]
    o_ref[0] = out.astype(o_ref.dtype)


def _conv_strip_rows(h, wp, cin, coutp, in_bytes, out_bytes, budget):
    """Largest output-row strip whose double-buffered in/out blocks + f32
    accumulator fit the per-generation VMEM budget."""
    per_row = wp * (2 * cin * in_bytes + 2 * coutp * out_bytes + coutp * 4)
    const = (3 * wp * cin * in_bytes * 2      # halo rows (double-buffered)
             + 2 * 9 * cin * coutp * 2        # tap weights
             + 2 * coutp * coutp * 2          # optional fused head weight
             + (2 << 20))                     # slack
    avail = int(budget * 0.8) - const
    strip = max(1, avail // max(1, per_row))
    # keep the f32 accumulator scratch modest so its RMW traffic stays bounded
    strip = min(strip, max(1, (8 << 20) // (coutp * 4 * wp)))
    return int(max(1, min(strip, h)))


def conv3x3(x, w, b, activation="relu", head_w=None, head_b=None,
            out_dtype=jnp.bfloat16):
    """x: [N,H,W,Cin] (any float dtype, cast to bf16), w: [3,3,Cin,Coutp]
    (Coutp % 128 == 0), b: [Coutp]; optional fused 1x1 head [Coutp, Hout]."""
    n, h, wd, cin = x.shape
    kh, kw, cin_w, coutp = w.shape
    assert (kh, kw) == (3, 3) and cin == cin_w and coutp % LANE == 0
    wp = wd + 2
    cout_out = head_w.shape[1] if head_w is not None else coutp

    strip_h = _conv_strip_rows(h, wp, cin, coutp, 2,
                               jnp.dtype(out_dtype).itemsize, _VMEM_BUDGET)
    s = -(-h // strip_h)                       # strips per image
    rows_in = strip_h + 3                      # 2 halo rows + 1 guard row
    rows_flat = strip_h * wp                   # over-complete output rows/strip
    pad_bottom = s * strip_h + 3 - (h + 1)

    xp = jnp.pad(x.astype(jnp.bfloat16),
                 ((0, 0), (1, pad_bottom), (1, 1), (0, 0)))
    if s == 1:
        xs = xp[:, None]                       # [n, 1, rows_in, wp, cin]
    else:
        row_idx = (jnp.arange(s)[:, None] * strip_h
                   + jnp.arange(rows_in)[None, :])
        xs = xp[:, row_idx]                    # halo'd overlapping strips
    xs = xs.reshape(n * s, rows_in * wp, cin)

    taps = tuple(i * wp + j for i in range(kh) for j in range(kw))
    wt = w.reshape(kh * kw, cin, coutp).astype(jnp.bfloat16)
    bb = b.reshape(1, coutp).astype(jnp.float32)

    args = [xs, wt, bb]
    in_specs = [
        pl.BlockSpec((1, rows_in * wp, cin), lambda i: (i, 0, 0)),
        pl.BlockSpec((kh * kw, cin, coutp), lambda i: (0, 0, 0)),
        pl.BlockSpec((1, coutp), lambda i: (0, 0)),
    ]
    if head_w is not None:
        args += [head_w.astype(jnp.bfloat16),
                 head_b.reshape(1, cout_out).astype(jnp.float32)]
        in_specs += [pl.BlockSpec((coutp, cout_out), lambda i: (0, 0)),
                     pl.BlockSpec((1, cout_out), lambda i: (0, 0))]

    out = pl.pallas_call(
        functools.partial(_conv_tap_kernel, taps=taps, rows=rows_flat,
                          activation=activation, has_head=head_w is not None),
        out_shape=jax.ShapeDtypeStruct((n * s, rows_flat, cout_out), out_dtype),
        grid=(n * s,),                         # image x strip, all parallel
        in_specs=in_specs,
        out_specs=pl.BlockSpec((1, rows_flat, cout_out), lambda i: (i, 0, 0)),
        scratch_shapes=[pltpu.VMEM((rows_flat, coutp), jnp.float32)],
        compiler_params=pltpu.CompilerParams(
            dimension_semantics=("parallel",),
            vmem_limit_bytes=_VMEM_BUDGET),
    )(*args)
    # crop junk strip-padding rows and over-complete columns back to [H, W]
    # TODO(synk): fuse the 2x2 max-pool + this crop into the kernel epilogue to
    # drop one more HBM round trip of the pre-pool activation.
    return out.reshape(n, s * strip_h, wp, cout_out)[:, :h, :wd, :]


# ----------------------------------------------------------------------------
# Small plain-JAX glue
# ----------------------------------------------------------------------------
def max_pool_2x2(x):
    n, h, w, c = x.shape
    return x.reshape(n, h // 2, 2, w // 2, 2, c).max(axis=(2, 4))


def loc2bbox(anchor, loc):
    """anchor: [K,4], loc: [..., K, 4] -> [..., K, 4]."""
    aw = anchor[:, 2] - anchor[:, 0]
    ah = anchor[:, 3] - anchor[:, 1]
    cx = anchor[:, 0] + 0.5 * aw
    cy = anchor[:, 1] + 0.5 * ah
    dx, dy, dw, dh = loc[..., 0], loc[..., 1], loc[..., 2], loc[..., 3]
    ncx = dx * aw + cx
    ncy = dy * ah + cy
    nw = jnp.exp(dw) * aw
    nh = jnp.exp(dh) * ah
    return jnp.stack([ncx - 0.5 * nw, ncy - 0.5 * nh,
                      ncx + 0.5 * nw, ncy + 0.5 * nh], axis=-1)


def roi_pool(feat, rois, roi_indices, roi_size, scale_x, scale_y):
    """feat: [N,Hf,Wf,C]; rois: [R,4] (x1,y1,x2,y2) in image coords."""
    _, hf, wf, _ = feat.shape
    x1 = rois[:, 0] * scale_x
    y1 = rois[:, 1] * scale_y
    x2 = rois[:, 2] * scale_x
    y2 = rois[:, 3] * scale_y
    bins = (jnp.arange(roi_size, dtype=jnp.float32) + 0.5) / roi_size
    gx = x1[:, None] + bins[None, :] * (x2 - x1)[:, None]
    gy = y1[:, None] + bins[None, :] * (y2 - y1)[:, None]
    ix = jnp.clip(jnp.floor(gx).astype(jnp.int32), 0, wf - 1)
    iy = jnp.clip(jnp.floor(gy).astype(jnp.int32), 0, hf - 1)
    # TODO(synk): torchvision RoIPool takes the max over all covered cells; here
    # a nearest-sample per bin (tiny data-dependent gather stays plain JAX; move
    # to a PrefetchScalarGridSpec DMA-gather kernel if R grows).
    return feat[roi_indices[:, None, None], iy[:, :, None], ix[:, None, :], :]


# ----------------------------------------------------------------------------
# FasterRCNN forward (mode='forward') with synthetic, deterministic params
# ----------------------------------------------------------------------------
class FasterRCNNPallas:
    def __init__(self, num_classes, batch_size=1, feat_stride=4,
                 anchor_scales=(2, 4, 8), ratios=(0.5, 1, 2),
                 in_channels=4, mid_channels=16, ext_channels=32, rpn_mid=32,
                 fc_dim=64, roi_size=2, n_post_nms=8, seed=0):
        self.n_class = num_classes + 1
        self.batch_size = batch_size
        self.feat_stride = feat_stride
        self.anchor_scales = anchor_scales
        self.ratios = ratios
        self.n_anchor = len(anchor_scales) * len(ratios)
        self.roi_size = roi_size
        self.n_post_nms = n_post_nms
        self.ext_channels = ext_channels
        self.fc_dim = fc_dim

        key = jax.random.PRNGKey(seed)
        ks = jax.random.split(key, 16)

        def init(k, shape, scale=0.05):
            return scale * jax.random.normal(k, shape, jnp.float32)

        def pad_to(arr, shape):
            return jnp.pad(arr, [(0, t - s) for s, t in zip(arr.shape, shape)])

        A = self.n_anchor
        C = LANE
        # real-size weights, zero-padded to lane-friendly shapes once at
        # construction: lane-dense stores in every kernel, no per-call padding.
        ext1 = init(ks[0], (3, 3, in_channels, mid_channels))
        ext2 = init(ks[1], (3, 3, mid_channels, ext_channels))
        rpnc = init(ks[2], (3, 3, ext_channels, rpn_mid))
        rpn_loc = init(ks[3], (rpn_mid, A * 4))
        rpn_sco = init(ks[4], (rpn_mid, A * 2))
        fc = init(ks[5], (roi_size, roi_size, ext_channels, fc_dim))
        cls_loc = init(ks[6], (fc_dim, self.n_class * 4), 0.001)
        score = init(ks[7], (fc_dim, self.n_class), 0.01)

        self.params = {
            # extractor (VGG-style stand-in: stride-1 3x3 convs + 2x2 max-pool,
            # total stride 4)
            "ext1_w": pad_to(ext1, (3, 3, in_channels, C)),
            "ext1_b": jnp.zeros((C,), jnp.float32),
            "ext2_w": pad_to(ext2, (3, 3, C, C)),
            "ext2_b": jnp.zeros((C,), jnp.float32),
            # RPN conv + fused 1x1 heads ([loc | score] along N, lane-padded)
            "rpn_conv_w": pad_to(rpnc, (3, 3, C, C)),
            "rpn_conv_b": jnp.zeros((C,), jnp.float32),
            "rpn_head_w": pad_to(jnp.concatenate([rpn_loc, rpn_sco], 1), (C, C)),
            "rpn_head_b": jnp.zeros((C,), jnp.float32),
            # RoI head (stand-in for resnet layer4 / vgg fc classifier)
            "fc_w": pad_to(fc, (roi_size, roi_size, C, C)
                           ).reshape(roi_size * roi_size * C, C),
            "fc_b": jnp.zeros((C,), jnp.float32),
            # fused [cls_loc | score] head, lane-padded to 128
            "head_w": pad_to(jnp.concatenate([cls_loc, score], 1), (C, C)),
            "head_b": jnp.zeros((C,), jnp.float32),
        }
        # TODO(synk): clip_model / shared_feature_extractor / global & instance
        # domain-adaptation classifiers (mode='extractor'/'head', stage='train')
        # are omitted.

    # -- extractor ------------------------------------------------------------
    def _extractor(self, x):
        p = self.params
        h = conv3x3(x, p["ext1_w"], p["ext1_b"], activation="relu")
        h = max_pool_2x2(h)
        h = conv3x3(h, p["ext2_w"], p["ext2_b"], activation="relu")
        h = max_pool_2x2(h)
        return h  # [N, H/4, W/4, 128] bf16 (real channels = first ext_channels)

    # -- anchors --------------------------------------------------------------
    def _anchors(self, hf, wf):
        base = []
        for r in self.ratios:
            for s in self.anchor_scales:
                h = self.feat_stride * s * math.sqrt(r)
                w = self.feat_stride * s * math.sqrt(1.0 / r)
                base.append([-w / 2.0, -h / 2.0, w / 2.0, h / 2.0])
        anchor_base = jnp.array(base, jnp.float32)                     # [A,4]
        sx = jnp.arange(wf, dtype=jnp.float32) * self.feat_stride
        sy = jnp.arange(hf, dtype=jnp.float32) * self.feat_stride
        mx, my = jnp.meshgrid(sx, sy)
        shift = jnp.stack([mx.ravel(), my.ravel(), mx.ravel(), my.ravel()], 1)
        return (shift[:, None, :] + anchor_base[None, :, :]).reshape(-1, 4)

    # -- RPN ------------------------------------------------------------------
    def _rpn(self, feat, img_size, scale=1.0):
        p = self.params
        n, hf, wf, _ = feat.shape
        # rpn 3x3 conv + relu + fused 1x1 [loc|score] head in ONE Pallas kernel;
        # the conv activation never touches HBM.
        headp = conv3x3(feat, p["rpn_conv_w"], p["rpn_conv_b"],
                        activation="relu",
                        head_w=p["rpn_head_w"], head_b=p["rpn_head_b"],
                        out_dtype=jnp.float32)            # [n, hf, wf, 128]
        headp = headp.reshape(n * hf * wf, LANE)
        a4, a2 = self.n_anchor * 4, self.n_anchor * 2
        rpn_locs = headp[:, :a4].reshape(n, hf * wf * self.n_anchor, 4)
        rpn_scores = headp[:, a4:a4 + a2].reshape(n, hf * wf * self.n_anchor, 2)
        anchor = self._anchors(hf, wf)

        fg = jax.nn.softmax(rpn_scores, axis=-1)[..., 1]           # [n, K]
        img_h, img_w = img_size
        # TODO(synk): ProposalCreator NMS + min-size filtering (and `scale`)
        # replaced by a batched top-k on foreground scores.
        boxes = loc2bbox(anchor, rpn_locs)
        boxes = jnp.stack([
            jnp.clip(boxes[..., 0], 0.0, float(img_w)),
            jnp.clip(boxes[..., 1], 0.0, float(img_h)),
            jnp.clip(boxes[..., 2], 0.0, float(img_w)),
            jnp.clip(boxes[..., 3], 0.0, float(img_h)),
        ], axis=-1)
        _, top_idx = jax.lax.top_k(fg, self.n_post_nms)             # [n, R]
        rois = jnp.take_along_axis(boxes, top_idx[..., None], axis=1)
        roi_indices = jnp.broadcast_to(
            jnp.arange(n, dtype=jnp.int32)[:, None], (n, self.n_post_nms))
        return rpn_locs, rpn_scores, rois, roi_indices, anchor

    # -- RoI head -------------------------------------------------------------
    def _head(self, feat, rois, roi_indices, img_size):
        p = self.params
        n, hf, wf, _ = feat.shape
        r = rois.shape[1]
        pooled = roi_pool(feat, rois.reshape(-1, 4), roi_indices.reshape(-1),
                          self.roi_size, wf / float(img_size[1]),
                          hf / float(img_size[0]))
        flat = pooled.reshape(pooled.shape[0], -1)                 # [n*R, rs*rs*128]
        fc7p = pallas_linear(flat, p["fc_w"], p["fc_b"], activation="relu")
        headp = pallas_linear(fc7p, p["head_w"], p["head_b"])      # fused heads
        nc = self.n_class
        roi_cls_locs = headp[:, :nc * 4].reshape(n, r, nc * 4)
        roi_scores = headp[:, nc * 4:nc * 4 + nc].reshape(n, r, nc)
        fc7 = fc7p[:, :self.fc_dim]
        return roi_cls_locs, roi_scores, fc7

    # -- public forward (PyTorch semantics for mode='forward') ----------------
    def forward(self, x_nchw, scale=1.0, mode="forward", stage="train"):
        x = jnp.transpose(x_nchw, (0, 2, 3, 1))  # NCHW -> NHWC
        img_size = (x_nchw.shape[2], x_nchw.shape[3])
        if mode == "forward":
            base = self._extractor(x)
            _, _, rois, roi_indices, _ = self._rpn(base, img_size, scale)
            roi_cls_locs, roi_scores, fc7 = self._head(
                base, rois, roi_indices, img_size)
            return roi_cls_locs, roi_scores, rois, roi_indices, fc7
        elif mode == "extractor":
            # TODO(synk): stage='train' domain-adaptation outputs not implemented.
            return self._extractor(x)[..., :self.ext_channels]
        elif mode == "rpn":
            base = self._extractor(x)
            return self._rpn(base, img_size, scale)
        else:
            # TODO(synk): mode='head' (with DA branches) not implemented.
            raise ValueError("mode key error")


if __name__ == "__main__":
    key = jax.random.PRNGKey(0)
    x = jax.random.normal(key, (2, 4, 16, 16), jnp.float32)  # NCHW like PyTorch

    model = FasterRCNNPallas(num_classes=3, batch_size=2)
    fwd = jax.jit(lambda inp: model.forward(inp, scale=1.0, mode="forward"))
    roi_cls_locs, roi_scores, rois, roi_indices, fc7 = fwd(x)
    jax.block_until_ready((roi_cls_locs, roi_scores, rois, roi_indices, fc7))

    assert roi_cls_locs.shape == (2, 8, (3 + 1) * 4)
    assert roi_scores.shape == (2, 8, 3 + 1)
    assert rois.shape == (2, 8, 4)
    assert roi_indices.shape == (2, 8)
    assert fc7.shape == (2 * 8, 64)
    print("KERNEL_OK")
</pallas_src>

<mosaic_0001>
module attributes {stable_mosaic.version = 11 : i64} {
  func.func @_conv_tap_kernel(%arg0: i32, %arg1: memref<1x342x4xbf16, #tpu.memory_space<vmem>>, %arg2: memref<9x4x128xbf16, #tpu.memory_space<vmem>>, %arg3: memref<1x128xf32, #tpu.memory_space<vmem>>, %arg4: memref<1x288x128xbf16, #tpu.memory_space<vmem>>, %arg5: memref<288x128xf32, #tpu.memory_space<vmem>>) attributes {dimension_semantics = [#tpu.dimension_semantics<parallel>], iteration_bounds = array<i64: 2>, scalar_prefetch = 0 : i64, scratch_operands = 1 : i64, tpu.core_type = #tpu.core_type<tc>, window_params = [{transform_indices = @transform_0, window_bounds = array<i64: 1, 342, 4>}, {pipeline_mode = #tpu.pipeline_mode<synchronous>, transform_indices = @transform_1, window_bounds = array<i64: 9, 4, 128>}, {pipeline_mode = #tpu.pipeline_mode<synchronous>, transform_indices = @transform_2, window_bounds = array<i64: 1, 128>}, {transform_indices = @transform_3, window_bounds = array<i64: 1, 288, 128>}]} {
    %c0 = arith.constant 0 : index
    %c0_0 = arith.constant 0 : index
    %c0_1 = arith.constant 0 : index
    %0 = vector.load %arg1[%c0, %c0_0, %c0_1] : memref<1x342x4xbf16, #tpu.memory_space<vmem>>, vector<1x288x4xbf16>
    %1 = vector.shape_cast %0 : vector<1x288x4xbf16> to vector<288x4xbf16>
    %c0_2 = arith.constant 0 : index
    %c0_3 = arith.constant 0 : index
    %c0_4 = arith.constant 0 : index
    %2 = vector.load %arg2[%c0_2, %c0_3, %c0_4] : memref<9x4x128xbf16, #tpu.memory_space<vmem>>, vector<1x4x128xbf16>
    %3 = vector.shape_cast %2 : vector<1x4x128xbf16> to vector<4x128xbf16>
    %cst = arith.constant dense<0.000000e+00> : vector<288x128xf32>
    %4 = tpu.matmul %1, %3, %cst {dimension_numbers = #tpu.dot_dimension_numbers<[1], [0], [0], [1], [0, 0, 1, 1], [], []>} : vector<288x4xbf16>, vector<4x128xbf16>, vector<288x128xf32> -> vector<288x128xf32>
    %c0_5 = arith.constant 0 : index
    %c0_6 = arith.constant 0 : index
    %5 = vector.load %arg5[%c0_5, %c0_6] : memref<288x128xf32, #tpu.memory_space<vmem>>, vector<288x128xf32>
    tpu.vector_store %arg5[%c0_5, %c0_6], %4 {strides = array<i32>} : memref<288x128xf32, #tpu.memory_space<vmem>>, vector<288x128xf32>,
    %c0_7 = arith.constant 0 : index
    %c0_8 = arith.constant 0 : index
    %6 = vector.load %arg5[%c0_7, %c0_8] : memref<288x128xf32, #tpu.memory_space<vmem>>, vector<288x128xf32>
    %c0_9 = arith.constant 0 : index
    %c1 = arith.constant 1 : index
    %c0_10 = arith.constant 0 : index
    %7 = vector.load %arg1[%c0_9, %c1, %c0_10] : memref<1x342x4xbf16, #tpu.memory_space<vmem>>, vector<1x288x4xbf16>
    %8 = vector.shape_cast %7 : vector<1x288x4xbf16> to vector<288x4xbf16>
    %c1_11 = arith.constant 1 : index
    %c0_12 = arith.constant 0 : index
    %c0_13 = arith.constant 0 : index
    %9 = vector.load %arg2[%c1_11, %c0_12, %c0_13] : memref<9x4x128xbf16, #tpu.memory_space<vmem>>, vector<1x4x128xbf16>
    %10 = vector.shape_cast %9 : vector<1x4x128xbf16> to vector<4x128xbf16>
    %cst_14 = arith.constant dense<0.000000e+00> : vector<288x128xf32>
    %11 = tpu.matmul %8, %10, %cst_14 {dimension_numbers = #tpu.dot_dimension_numbers<[1], [0], [0], [1], [0, 0, 1, 1], [], []>} : vector<288x4xbf16>, vector<4x128xbf16>, vector<288x128xf32> -> vector<288x128xf32>
    %12 = arith.addf %6, %11 : vector<288x128xf32>
    %c0_15 = arith.constant 0 : index
    %c0_16 = arith.constant 0 : index
    %13 = vector.load %arg5[%c0_15, %c0_16] : memref<288x128xf32, #tpu.memory_space<vmem>>, vector<288x128xf32>
    tpu.vector_store %arg5[%c0_15, %c0_16], %12 {strides = array<i32>} : memref<288x128xf32, #tpu.memory_space<vmem>>, vector<288x128xf32>,
    %c0_17 = arith.constant 0 : index
    %c0_18 = arith.constant 0 : index
    %14 = vector.load %arg5[%c0_17, %c0_18] : memref<288x128xf32, #tpu.memory_space<vmem>>, vector<288x128xf32>
    %c0_19 = arith.constant 0 : index
    %c2 = arith.constant 2 : index
    %c0_20 = arith.constant 0 : index
    %15 = vector.load %arg1[%c0_19, %c2, %c0_20] : memref<1x342x4xbf16, #tpu.memory_space<vmem>>, vector<1x288x4xbf16>
    %16 = vector.shape_cast %15 : vector<1x288x4xbf16> to vector<288x4xbf16>
    %c2_21 = arith.constant 2 : index
    %c0_22 = arith.constant 0 : index
    %c0_23 = arith.constant 0 : index
    %17 = vector.load %arg2[%c2_21, %c0_22, %c0_23] : memref<9x4x128xbf16, #tpu.memory_space<vmem>>, vector<1x4x128xbf16>
    %18 = vector.shape_cast %17 : vector<1x4x128xbf16> to vector<4x128xbf16>
    %cst_24 = arith.constant dense<0.000000e+00> : vector<288x128xf32>
    %19 = tpu.matmul %16, %18, %cst_24 {dimension_numbers = #tpu.dot_dimension_numbers<[1], [0], [0], [1], [0, 0, 1, 1], [], []>} : vector<288x4xbf16>, vector<4x128xbf16>, vector<288x128xf32> -> vector<288x128xf32>
    %20 = arith.addf %14, %19 : vector<288x128xf32>
    %c0_25 = arith.constant 0 : index
    %c0_26 = arith.constant 0 : index
    %21 = vector.load %arg5[%c0_25, %c0_26] : memref<288x128xf32, #tpu.memory_space<vmem>>, vector<288x128xf32>
    tpu.vector_store %arg5[%c0_25, %c0_26], %20 {strides = array<i32>} : memref<288x128xf32, #tpu.memory_space<vmem>>, vector<288x128xf32>,
    %c0_27 = arith.constant 0 : index
    %c0_28 = arith.constant 0 : index
    %22 = vector.load %arg5[%c0_27, %c0_28] : memref<288x128xf32, #tpu.memory_space<vmem>>, vector<288x128xf32>
    %c0_29 = arith.constant 0 : index
    %c18 = arith.constant 18 : index
    %c0_30 = arith.constant 0 : index
    %23 = vector.load %arg1[%c0_29, %c18, %c0_30] : memref<1x342x4xbf16, #tpu.memory_space<vmem>>, vector<1x288x4xbf16>
    %24 = vector.shape_cast %23 : vector<1x288x4xbf16> to vector<288x4xbf16>
    %c3 = arith.constant 3 : index
    %c0_31 = arith.constant 0 : index
    %c0_32 = arith.constant 0 : index
    %25 = vector.load %arg2[%c3, %c0_31, %c0_32] : memref<9x4x128xbf16, #tpu.memory_space<vmem>>, vector<1x4x128xbf16>
    %26 = vector.shape_cast %25 : vector<1x4x128xbf16> to vector<4x128xbf16>
    %cst_33 = arith.constant dense<0.000000e+00> : vector<288x128xf32>
    %27 = tpu.matmul %24, %26, %cst_33 {dimension_numbers = #tpu.dot_dimension_numbers<[1], [0], [0], [1], [0, 0, 1, 1], [], []>} : vector<288x4xbf16>, vector<4x128xbf16>, vector<288x128xf32> -> vector<288x128xf32>
    %28 = arith.addf %22, %27 : vector<288x128xf32>
    %c0_34 = arith.constant 0 : index
    %c0_35 = arith.constant 0 : index
    %29 = vector.load %arg5[%c0_34, %c0_35] : memref<288x128xf32, #tpu.memory_space<vmem>>, vector<288x128xf32>
    tpu.vector_store %arg5[%c0_34, %c0_35], %28 {strides = array<i32>} : memref<288x128xf32, #tpu.memory_space<vmem>>, vector<288x128xf32>,
    %c0_36 = arith.constant 0 : index
    %c0_37 = arith.constant 0 : index
    %30 = vector.load %arg5[%c0_36, %c0_37] : memref<288x128xf32, #tpu.memory_space<vmem>>, vector<288x128xf32>
    %c0_38 = arith.constant 0 : index
    %c19 = arith.constant 19 : index
    %c0_39 = arith.constant 0 : index
    %31 = vector.load %arg1[%c0_38, %c19, %c0_39] : memref<1x342x4xbf16, #tpu.memory_space<vmem>>, vector<1x288x4xbf16>
    %32 = vector.shape_cast %31 : vector<1x288x4xbf16> to vector<288x4xbf16>
    %c4 = arith.constant 4 : index
    %c0_40 = arith.constant 0 : index
    %c0_41 = arith.constant 0 : index
    %33 = vector.load %arg2[%c4, %c0_40, %c0_41] : memref<9x4x128xbf16, #tpu.memory_space<vmem>>, vector<1x4x128xbf16>
    %34 = vector.shape_cast %33 : vector<1x4x128xbf16> to vector<4x128xbf16>
    %cst_42 = arith.constant dense<0.000000e+00> : vector<288x128xf32>
    %35 = tpu.matmul %32, %34, %cst_42 {dimension_numbers = #tpu.dot_dimension_numbers<[1], [0], [0], [1], [0, 0, 1, 1], [], []>} : vector<288x4xbf16>, vector<4x128xbf16>, vector<288x128xf32> -> vector<288x128xf32>
    %36 = arith.addf %30, %35 : vector<288x128xf32>
    %c0_43 = arith.constant 0 : index
    %c0_44 = arith.constant 0 : index
    %37 = vector.load %arg5[%c0_43, %c0_44] : memref<288x128xf32, #tpu.memory_space<vmem>>, vector<288x128xf32>
    tpu.vector_store %arg5[%c0_43, %c0_44], %36 {strides = array<i32>} : memref<288x128xf32, #tpu.memory_space<vmem>>, vector<288x128xf32>,
    %c0_45 = arith.constant 0 : index
    %c0_46 = arith.constant 0 : index
    %38 = vector.load %arg5[%c0_45, %c0_46] : memref<288x128xf32, #tpu.memory_space<vmem>>, vector<288x128xf32>
    %c0_47 = arith.constant 0 : index
    %c20 = arith.constant 20 : index
    %c0_48 = arith.constant 0 : index
    %39 = vector.load %arg1[%c0_47, %c20, %c0_48] : memref<1x342x4xbf16, #tpu.memory_space<vmem>>, vector<1x288x4xbf16>
    %40 = vector.shape_cast %39 : vector<1x288x4xbf16> to vector<288x4xbf16>
    %c5 = arith.constant 5 : index
    %c0_49 = arith.constant 0 : index
    %c0_50 = arith.constant 0 : index
    %41 = vector.load %arg2[%c5, %c0_49, %c0_50] : memref<9x4x128xbf16, #tpu.memory_space<vmem>>, vector<1x4x128xbf16>
    %42 = vector.shape_cast %41 : vector<1x4x128xbf16> to vector<4x128xbf16>
    %cst_51 = arith.constant dense<0.000000e+00> : vector<288x128xf32>
    %43 = tpu.matmul %40, %42, %cst_51 {dimension_numbers = #tpu.dot_dimension_numbers<[1], [0], [0], [1], [0, 0, 1, 1], [], []>} : vector<288x4xbf16>, vector<4x128xbf16>, vector<288x128xf32> -> vector<288x128xf32>
    %44 = arith.addf %38, %43 : vector<288x128xf32>
    %c0_52 = arith.constant 0 : index
    %c0_53 = arith.constant 0 : index
    %45 = vector.load %arg5[%c0_52, %c0_53] : memref<288x128xf32, #tpu.memory_space<vmem>>, vector<288x128xf32>
    tpu.vector_store %arg5[%c0_52, %c0_53], %44 {strides = array<i32>} : memref<288x128xf32, #tpu.memory_space<vmem>>, vector<288x128xf32>,
    %c0_54 = arith.constant 0 : index
    %c0_55 = arith.constant 0 : index
    %46 = vector.load %arg5[%c0_54, %c0_55] : memref<288x128xf32, #tpu.memory_space<vmem>>, vector<288x128xf32>
    %c0_56 = arith.constant 0 : index
    %c36 = arith.constant 36 : index
    %c0_57 = arith.constant 0 : index
    %47 = vector.load %arg1[%c0_56, %c36, %c0_57] : memref<1x342x4xbf16, #tpu.memory_space<vmem>>, vector<1x288x4xbf16>
    %48 = vector.shape_cast %47 : vector<1x288x4xbf16> to vector<288x4xbf16>
    %c6 = arith.constant 6 : index
    %c0_58 = arith.constant 0 : index
    %c0_59 = arith.constant 0 : index
    %49 = vector.load %arg2[%c6, %c0_58, %c0_59] : memref<9x4x128xbf16, #tpu.memory_space<vmem>>, vector<1x4x128xbf16>
    %50 = vector.shape_cast %49 : vector<1x4x128xbf16> to vector<4x128xbf16>
    %cst_60 = arith.constant dense<0.000000e+00> : vector<288x128xf32>
    %51 = tpu.matmul %48, %50, %cst_60 {dimension_numbers = #tpu.dot_dimension_numbers<[1], [0], [0], [1], [0, 0, 1, 1], [], []>} : vector<288x4xbf16>, vector<4x128xbf16>, vector<288x128xf32> -> vector<288x128xf32>
    %52 = arith.addf %46, %51 : vector<288x128xf32>
    %c0_61 = arith.constant 0 : index
    %c0_62 = arith.constant 0 : index
    %53 = vector.load %arg5[%c0_61, %c0_62] : memref<288x128xf32, #tpu.memory_space<vmem>>, vector<288x128xf32>
    tpu.vector_store %arg5[%c0_61, %c0_62], %52 {strides = array<i32>} : memref<288x128xf32, #tpu.memory_space<vmem>>, vector<288x128xf32>,
    %c0_63 = arith.constant 0 : index
    %c0_64 = arith.constant 0 : index
    %54 = vector.load %arg5[%c0_63, %c0_64] : memref<288x128xf32, #tpu.memory_space<vmem>>, vector<288x128xf32>
    %c0_65 = arith.constant 0 : index
    %c37 = arith.constant 37 : index
    %c0_66 = arith.constant 0 : index
    %55 = vector.load %arg1[%c0_65, %c37, %c0_66] : memref<1x342x4xbf16, #tpu.memory_space<vmem>>, vector<1x288x4xbf16>
    %56 = vector.shape_cast %55 : vector<1x288x4xbf16> to vector<288x4xbf16>
    %c7 = arith.constant 7 : index
    %c0_67 = arith.constant 0 : index
    %c0_68 = arith.constant 0 : index
    %57 = vector.load %arg2[%c7, %c0_67, %c0_68] : memref<9x4x128xbf16, #tpu.memory_space<vmem>>, vector<1x4x128xbf16>
    %58 = vector.shape_cast %57 : vector<1x4x128xbf16> to vector<4x128xbf16>
    %cst_69 = arith.constant dense<0.000000e+00> : vector<288x128xf32>
    %59 = tpu.matmul %56, %58, %cst_69 {dimension_numbers = #tpu.dot_dimension_numbers<[1], [0], [0], [1], [0, 0, 1, 1], [], []>} : vector<288x4xbf16>, vector<4x128xbf16>, vector<288x128xf32> -> vector<288x128xf32>
    %60 = arith.addf %54, %59 : vector<288x128xf32>
    %c0_70 = arith.constant 0 : index
    %c0_71 = arith.constant 0 : index
    %61 = vector.load %arg5[%c0_70, %c0_71] : memref<288x128xf32, #tpu.memory_space<vmem>>, vector<288x128xf32>
    tpu.vector_store %arg5[%c0_70, %c0_71], %60 {strides = array<i32>} : memref<288x128xf32, #tpu.memory_space<vmem>>, vector<288x128xf32>,
    %c0_72 = arith.constant 0 : index
    %c0_73 = arith.constant 0 : index
    %62 = vector.load %arg5[%c0_72, %c0_73] : memref<288x128xf32, #tpu.memory_space<vmem>>, vector<288x128xf32>
    %c0_74 = arith.constant 0 : index
    %c38 = arith.constant 38 : index
    %c0_75 = arith.constant 0 : index
    %63 = vector.load %arg1[%c0_74, %c38, %c0_75] : memref<1x342x4xbf16, #tpu.memory_space<vmem>>, vector<1x288x4xbf16>
    %64 = vector.shape_cast %63 : vector<1x288x4xbf16> to vector<288x4xbf16>
    %c8 = arith.constant 8 : index
    %c0_76 = arith.constant 0 : index
    %c0_77 = arith.constant 0 : index
    %65 = vector.load %arg2[%c8, %c0_76, %c0_77] : memref<9x4x128xbf16, #tpu.memory_space<vmem>>, vector<1x4x128xbf16>
    %66 = vector.shape_cast %65 : vector<1x4x128xbf16> to vector<4x128xbf16>
    %cst_78 = arith.constant dense<0.000000e+00> : vector<288x128xf32>
    %67 = tpu.matmul %64, %66, %cst_78 {dimension_numbers = #tpu.dot_dimension_numbers<[1], [0], [0], [1], [0, 0, 1, 1], [], []>} : vector<288x4xbf16>, vector<4x128xbf16>, vector<288x128xf32> -> vector<288x128xf32>
    %68 = arith.addf %62, %67 : vector<288x128xf32>
    %c0_79 = arith.constant 0 : index
    %c0_80 = arith.constant 0 : index
    %69 = vector.load %arg5[%c0_79, %c0_80] : memref<288x128xf32, #tpu.memory_space<vmem>>, vector<288x128xf32>
    tpu.vector_store %arg5[%c0_79, %c0_80], %68 {strides = array<i32>} : memref<288x128xf32, #tpu.memory_space<vmem>>, vector<288x128xf32>,
    %c0_81 = arith.constant 0 : index
    %c0_82 = arith.constant 0 : index
    %70 = vector.load %arg5[%c0_81, %c0_82] : memref<288x128xf32, #tpu.memory_space<vmem>>, vector<288x128xf32>
    %c0_83 = arith.constant 0 : index
    %c0_84 = arith.constant 0 : index
    %71 = vector.load %arg3[%c0_83, %c0_84] : memref<1x128xf32, #tpu.memory_space<vmem>>, vector<1x128xf32>
    %72 = vector.broadcast %71 : vector<1x128xf32> to vector<288x128xf32>
    %73 = arith.addf %70, %72 : vector<288x128xf32>
    %cst_85 = arith.constant 0.000000e+00 : f32
    %74 = vector.broadcast %cst_85 : f32 to vector<288x128xf32>
    %75 = arith.maximumf %73, %74 : vector<288x128xf32>
    %76 = arith.truncf %75 : vector<288x128xf32> to vector<288x128xbf16>
    %c0_86 = arith.constant 0 : index
    %c0_87 = arith.constant 0 : index
    %c0_88 = arith.constant 0 : index
    %77 = vector.load %arg4[%c0_86, %c0_87, %c0_88] : memref<1x288x128xbf16, #tpu.memory_space<vmem>>, vector<1x288x128xbf16>
    %78 = vector.shape_cast %77 : vector<1x288x128xbf16> to vector<288x128xbf16>
    %79 = vector.shape_cast %76 : vector<288x128xbf16> to vector<1x288x128xbf16>
    tpu.vector_store %arg4[%c0_86, %c0_87, %c0_88], %79 {strides = array<i32>} : memref<1x288x128xbf16, #tpu.memory_space<vmem>>, vector<1x288x128xbf16>,
    return
  }
  func.func @transform_0(%arg0: i32) -> (i32, i32, i32) {
    %c0_i32 = arith.constant 0 : i32
    %c0_i32_0 = arith.constant 0 : i32
    %c0_i32_1 = arith.constant 0 : i32
    return %arg0, %c0_i32, %c0_i32_0 : i32, i32, i32
  }
  func.func @transform_1(%arg0: i32) -> (i32, i32, i32) {
    %c0_i32 = arith.constant 0 : i32
    %c0_i32_0 = arith.constant 0 : i32
    %c0_i32_1 = arith.constant 0 : i32
    %c0_i32_2 = arith.constant 0 : i32
    return %c0_i32, %c0_i32_0, %c0_i32_1 : i32, i32, i32
  }
  func.func @transform_2(%arg0: i32) -> (i32, i32) {
    %c0_i32 = arith.constant 0 : i32
    %c0_i32_0 = arith.constant 0 : i32
    %c0_i32_1 = arith.constant 0 : i32
    return %c0_i32, %c0_i32_0 : i32, i32
  }
  func.func @transform_3(%arg0: i32) -> (i32, i32, i32) {
    %c0_i32 = arith.constant 0 : i32
    %c0_i32_0 = arith.constant 0 : i32
    %c0_i32_1 = arith.constant 0 : i32
    return %arg0, %c0_i32, %c0_i32_0 : i32, i32, i32
  }
}

module attributes {stable_mosaic.version = 11 : i64} {
  func.func @_conv_tap_kernel(%arg0: i32, %arg1: memref<1x110x128xbf16, #tpu.memory_space<vmem>>, %arg2: memref<9x128x128xbf16, #tpu.memory_space<vmem>>, %arg3: memref<1x128xf32, #tpu.memory_space<vmem>>, %arg4: memref<1x80x128xbf16, #tpu.memory_space<vmem>>, %arg5: memref<80x128xf32, #tpu.memory_space<vmem>>) attributes {dimension_semantics = [#tpu.dimension_semantics<parallel>], iteration_bounds = array<i64: 2>, scalar_prefetch = 0 : i64, scratch_operands = 1 : i64, tpu.core_type = #tpu.core_type<tc>, window_params = [{transform_indices = @transform_0, window_bounds = array<i64: 1, 110, 128>}, {pipeline_mode = #tpu.pipeline_mode<synchronous>, transform_indices = @transform_1, window_bounds = array<i64: 9, 128, 128>}, {pipeline_mode = #tpu.pipeline_mode<synchronous>, transform_indices = @transform_2, window_bounds = array<i64: 1, 128>}, {transform_indices = @transform_3, window_bounds = array<i64: 1, 80, 128>}]} {
    %c0 = arith.constant 0 : index
    %c0_0 = arith.constant 0 : index
    %c0_1 = arith.constant 0 : index
    %0 = vector.load %arg1[%c0, %c0_0, %c0_1] : memref<1x110x128xbf16, #tpu.memory_space<vmem>>, vector<1x80x128xbf16>
    %1 = vector.shape_cast %0 : vector<1x80x128xbf16> to vector<80x128xbf16>
    %c0_2 = arith.constant 0 : index
    %c0_3 = arith.constant 0 : index
    %c0_4 = arith.constant 0 : index
    %2 = vector.load %arg2[%c0_2, %c0_3, %c0_4] : memref<9x128x128xbf16, #tpu.memory_space<vmem>>, vector<1x128x128xbf16>
    %3 = vector.shape_cast %2 : vector<1x128x128xbf16> to vector<128x128xbf16>
    %cst = arith.constant dense<0.000000e+00> : vector<80x128xf32>
    %4 = tpu.matmul %1, %3, %cst {dimension_numbers = #tpu.dot_dimension_numbers<[1], [0], [0], [1], [0, 0, 1, 1], [], []>} : vector<80x128xbf16>, vector<128x128xbf16>, vector<80x128xf32> -> vector<80x128xf32>
    %c0_5 = arith.constant 0 : index
    %c0_6 = arith.constant 0 : index
    %5 = vector.load %arg5[%c0_5, %c0_6] : memref<80x128xf32, #tpu.memory_space<vmem>>, vector<80x128xf32>
    tpu.vector_store %arg5[%c0_5, %c0_6], %4 {strides = array<i32>} : memref<80x128xf32, #tpu.memory_space<vmem>>, vector<80x128xf32>,
    %c0_7 = arith.constant 0 : index
    %c0_8 = arith.constant 0 : index
    %6 = vector.load %arg5[%c0_7, %c0_8] : memref<80x128xf32, #tpu.memory_space<vmem>>, vector<80x128xf32>
    %c0_9 = arith.constant 0 : index
    %c1 = arith.constant 1 : index
    %c0_10 = arith.constant 0 : index
    %7 = vector.load %arg1[%c0_9, %c1, %c0_10] : memref<1x110x128xbf16, #tpu.memory_space<vmem>>, vector<1x80x128xbf16>
    %8 = vector.shape_cast %7 : vector<1x80x128xbf16> to vector<80x128xbf16>
    %c1_11 = arith.constant 1 : index
    %c0_12 = arith.constant 0 : index
    %c0_13 = arith.constant 0 : index
    %9 = vector.load %arg2[%c1_11, %c0_12, %c0_13] : memref<9x128x128xbf16, #tpu.memory_space<vmem>>, vector<1x128x128xbf16>
    %10 = vector.shape_cast %9 : vector<1x128x128xbf16> to vector<128x128xbf16>
    %cst_14 = arith.constant dense<0.000000e+00> : vector<80x128xf32>
    %11 = tpu.matmul %8, %10, %cst_14 {dimension_numbers = #tpu.dot_dimension_numbers<[1], [0], [0], [1], [0, 0, 1, 1], [], []>} : vector<80x128xbf16>, vector<128x128xbf16>, vector<80x128xf32> -> vector<80x128xf32>
    %12 = arith.addf %6, %11 : vector<80x128xf32>
    %c0_15 = arith.constant 0 : index
    %c0_16 = arith.constant 0 : index
    %13 = vector.load %arg5[%c0_15, %c0_16] : memref<80x128xf32, #tpu.memory_space<vmem>>, vector<80x128xf32>
    tpu.vector_store %arg5[%c0_15, %c0_16], %12 {strides = array<i32>} : memref<80x128xf32, #tpu.memory_space<vmem>>, vector<80x128xf32>,
    %c0_17 = arith.constant 0 : index
    %c0_18 = arith.constant 0 : index
    %14 = vector.load %arg5[%c0_17, %c0_18] : memref<80x128xf32, #tpu.memory_space<vmem>>, vector<80x128xf32>
    %c0_19 = arith.constant 0 : index
    %c2 = arith.constant 2 : index
    %c0_20 = arith.constant 0 : index
    %15 = vector.load %arg1[%c0_19, %c2, %c0_20] : memref<1x110x128xbf16, #tpu.memory_space<vmem>>, vector<1x80x128xbf16>
    %16 = vector.shape_cast %15 : vector<1x80x128xbf16> to vector<80x128xbf16>
    %c2_21 = arith.constant 2 : index
    %c0_22 = arith.constant 0 : index
    %c0_23 = arith.constant 0 : index
    %17 = vector.load %arg2[%c2_21, %c0_22, %c0_23] : memref<9x128x128xbf16, #tpu.memory_space<vmem>>, vector<1x128x128xbf16>
    %18 = vector.shape_cast %17 : vector<1x128x128xbf16> to vector<128x128xbf16>
    %cst_24 = arith.constant dense<0.000000e+00> : vector<80x128xf32>
    %19 = tpu.matmul %16, %18, %cst_24 {dimension_numbers = #tpu.dot_dimension_numbers<[1], [0], [0], [1], [0, 0, 1, 1], [], []>} : vector<80x128xbf16>, vector<128x128xbf16>, vector<80x128xf32> -> vector<80x128xf32>
    %20 = arith.addf %14, %19 : vector<80x128xf32>
    %c0_25 = arith.constant 0 : index
    %c0_26 = arith.constant 0 : index
    %21 = vector.load %arg5[%c0_25, %c0_26] : memref<80x128xf32, #tpu.memory_space<vmem>>, vector<80x128xf32>
    tpu.vector_store %arg5[%c0_25, %c0_26], %20 {strides = array<i32>} : memref<80x128xf32, #tpu.memory_space<vmem>>, vector<80x128xf32>,
    %c0_27 = arith.constant 0 : index
    %c0_28 = arith.constant 0 : index
    %22 = vector.load %arg5[%c0_27, %c0_28] : memref<80x128xf32, #tpu.memory_space<vmem>>, vector<80x128xf32>
    %c0_29 = arith.constant 0 : index
    %c10 = arith.constant 10 : index
    %c0_30 = arith.constant 0 : index
    %23 = vector.load %arg1[%c0_29, %c10, %c0_30] : memref<1x110x128xbf16, #tpu.memory_space<vmem>>, vector<1x80x128xbf16>
    %24 = vector.shape_cast %23 : vector<1x80x128xbf16> to vector<80x128xbf16>
    %c3 = arith.constant 3 : index
    %c0_31 = arith.constant 0 : index
    %c0_32 = arith.constant 0 : index
    %25 = vector.load %arg2[%c3, %c0_31, %c0_32] : memref<9x128x128xbf16, #tpu.memory_space<vmem>>, vector<1x128x128xbf16>
    %26 = vector.shape_cast %25 : vector<1x128x128xbf16> to vector<128x128xbf16>
    %cst_33 = arith.constant dense<0.000000e+00> : vector<80x128xf32>
    %27 = tpu.matmul %24, %26, %cst_33 {dimension_numbers = #tpu.dot_dimension_numbers<[1], [0], [0], [1], [0, 0, 1, 1], [], []>} : vector<80x128xbf16>, vector<128x128xbf16>, vector<80x128xf32> -> vector<80x128xf32>
    %28 = arith.addf %22, %27 : vector<80x128xf32>
    %c0_34 = arith.constant 0 : index
    %c0_35 = arith.constant 0 : index
    %29 = vector.load %arg5[%c0_34, %c0_35] : memref<80x128xf32, #tpu.memory_space<vmem>>, vector<80x128xf32>
    tpu.vector_store %arg5[%c0_34, %c0_35], %28 {strides = array<i32>} : memref<80x128xf32, #tpu.memory_space<vmem>>, vector<80x128xf32>,
    %c0_36 = arith.constant 0 : index
    %c0_37 = arith.constant 0 : index
    %30 = vector.load %arg5[%c0_36, %c0_37] : memref<80x128xf32, #tpu.memory_space<vmem>>, vector<80x128xf32>
    %c0_38 = arith.constant 0 : index
    %c11 = arith.constant 11 : index
    %c0_39 = arith.constant 0 : index
    %31 = vector.load %arg1[%c0_38, %c11, %c0_39] : memref<1x110x128xbf16, #tpu.memory_space<vmem>>, vector<1x80x128xbf16>
    %32 = vector.shape_cast %31 : vector<1x80x128xbf16> to vector<80x128xbf16>
    %c4 = arith.constant 4 : index
    %c0_40 = arith.constant 0 : index
    %c0_41 = arith.constant 0 : index
    %33 = vector.load %arg2[%c4, %c0_40, %c0_41] : memref<9x128x128xbf16, #tpu.memory_space<vmem>>, vector<1x128x128xbf16>
    %34 = vector.shape_cast %33 : vector<1x128x128xbf16> to vector<128x128xbf16>
    %cst_42 = arith.constant dense<0.000000e+00> : vector<80x128xf32>
    %35 = tpu.matmul %32, %34, %cst_42 {dimension_numbers = #tpu.dot_dimension_numbers<[1], [0], [0], [1], [0, 0, 1, 1], [], []>} : vector<80x128xbf16>, vector<128x128xbf16>, vector<80x128xf32> -> vector<80x128xf32>
    %36 = arith.addf %30, %35 : vector<80x128xf32>
    %c0_43 = arith.constant 0 : index
    %c0_44 = arith.constant 0 : index
    %37 = vector.load %arg5[%c0_43, %c0_44] : memref<80x128xf32, #tpu.memory_space<vmem>>, vector<80x128xf32>
    tpu.vector_store %arg5[%c0_43, %c0_44], %36 {strides = array<i32>} : memref<80x128xf32, #tpu.memory_space<vmem>>, vector<80x128xf32>,
    %c0_45 = arith.constant 0 : index
    %c0_46 = arith.constant 0 : index
    %38 = vector.load %arg5[%c0_45, %c0_46] : memref<80x128xf32, #tpu.memory_space<vmem>>, vector<80x128xf32>
    %c0_47 = arith.constant 0 : index
    %c12 = arith.constant 12 : index
    %c0_48 = arith.constant 0 : index
    %39 = vector.load %arg1[%c0_47, %c12, %c0_48] : memref<1x110x128xbf16, #tpu.memory_space<vmem>>, vector<1x80x128xbf16>
    %40 = vector.shape_cast %39 : vector<1x80x128xbf16> to vector<80x128xbf16>
    %c5 = arith.constant 5 : index
    %c0_49 = arith.constant 0 : index
    %c0_50 = arith.constant 0 : index
    %41 = vector.load %arg2[%c5, %c0_49, %c0_50] : memref<9x128x128xbf16, #tpu.memory_space<vmem>>, vector<1x128x128xbf16>
    %42 = vector.shape_cast %41 : vector<1x128x128xbf16> to vector<128x128xbf16>
    %cst_51 = arith.constant dense<0.000000e+00> : vector<80x128xf32>
    %43 = tpu.matmul %40, %42, %cst_51 {dimension_numbers = #tpu.dot_dimension_numbers<[1], [0], [0], [1], [0, 0, 1, 1], [], []>} : vector<80x128xbf16>, vector<128x128xbf16>, vector<80x128xf32> -> vector<80x128xf32>
    %44 = arith.addf %38, %43 : vector<80x128xf32>
    %c0_52 = arith.constant 0 : index
    %c0_53 = arith.constant 0 : index
    %45 = vector.load %arg5[%c0_52, %c0_53] : memref<80x128xf32, #tpu.memory_space<vmem>>, vector<80x128xf32>
    tpu.vector_store %arg5[%c0_52, %c0_53], %44 {strides = array<i32>} : memref<80x128xf32, #tpu.memory_space<vmem>>, vector<80x128xf32>,
    %c0_54 = arith.constant 0 : index
    %c0_55 = arith.constant 0 : index
    %46 = vector.load %arg5[%c0_54, %c0_55] : memref<80x128xf32, #tpu.memory_space<vmem>>, vector<80x128xf32>
    %c0_56 = arith.constant 0 : index
    %c20 = arith.constant 20 : index
    %c0_57 = arith.constant 0 : index
    %47 = vector.load %arg1[%c0_56, %c20, %c0_57] : memref<1x110x128xbf16, #tpu.memory_space<vmem>>, vector<1x80x128xbf16>
    %48 = vector.shape_cast %47 : vector<1x80x128xbf16> to vector<80x128xbf16>
    %c6 = arith.constant 6 : index
    %c0_58 = arith.constant 0 : index
    %c0_59 = arith.constant 0 : index
    %49 = vector.load %arg2[%c6, %c0_58, %c0_59] : memref<9x128x128xbf16, #tpu.memory_space<vmem>>, vector<1x128x128xbf16>
    %50 = vector.shape_cast %49 : vector<1x128x128xbf16> to vector<128x128xbf16>
    %cst_60 = arith.constant dense<0.000000e+00> : vector<80x128xf32>
    %51 = tpu.matmul %48, %50, %cst_60 {dimension_numbers = #tpu.dot_dimension_numbers<[1], [0], [0], [1], [0, 0, 1, 1], [], []>} : vector<80x128xbf16>, vector<128x128xbf16>, vector<80x128xf32> -> vector<80x128xf32>
    %52 = arith.addf %46, %51 : vector<80x128xf32>
    %c0_61 = arith.constant 0 : index
    %c0_62 = arith.constant 0 : index
    %53 = vector.load %arg5[%c0_61, %c0_62] : memref<80x128xf32, #tpu.memory_space<vmem>>, vector<80x128xf32>
    tpu.vector_store %arg5[%c0_61, %c0_62], %52 {strides = array<i32>} : memref<80x128xf32, #tpu.memory_space<vmem>>, vector<80x128xf32>,
    %c0_63 = arith.constant 0 : index
    %c0_64 = arith.constant 0 : index
    %54 = vector.load %arg5[%c0_63, %c0_64] : memref<80x128xf32, #tpu.memory_space<vmem>>, vector<80x128xf32>
    %c0_65 = arith.constant 0 : index
    %c21 = arith.constant 21 : index
    %c0_66 = arith.constant 0 : index
    %55 = vector.load %arg1[%c0_65, %c21, %c0_66] : memref<1x110x128xbf16, #tpu.memory_space<vmem>>, vector<1x80x128xbf16>
    %56 = vector.shape_cast %55 : vector<1x80x128xbf16> to vector<80x128xbf16>
    %c7 = arith.constant 7 : index
    %c0_67 = arith.constant 0 : index
    %c0_68 = arith.constant 0 : index
    %57 = vector.load %arg2[%c7, %c0_67, %c0_68] : memref<9x128x128xbf16, #tpu.memory_space<vmem>>, vector<1x128x128xbf16>
    %58 = vector.shape_cast %57 : vector<1x128x128xbf16> to vector<128x128xbf16>
    %cst_69 = arith.constant dense<0.000000e+00> : vector<80x128xf32>
    %59 = tpu.matmul %56, %58, %cst_69 {dimension_numbers = #tpu.dot_dimension_numbers<[1], [0], [0], [1], [0, 0, 1, 1], [], []>} : vector<80x128xbf16>, vector<128x128xbf16>, vector<80x128xf32> -> vector<80x128xf32>
    %60 = arith.addf %54, %59 : vector<80x128xf32>
    %c0_70 = arith.constant 0 : index
    %c0_71 = arith.constant 0 : index
    %61 = vector.load %arg5[%c0_70, %c0_71] : memref<80x128xf32, #tpu.memory_space<vmem>>, vector<80x128xf32>
    tpu.vector_store %arg5[%c0_70, %c0_71], %60 {strides = array<i32>} : memref<80x128xf32, #tpu.memory_space<vmem>>, vector<80x128xf32>,
    %c0_72 = arith.constant 0 : index
    %c0_73 = arith.constant 0 : index
    %62 = vector.load %arg5[%c0_72, %c0_73] : memref<80x128xf32, #tpu.memory_space<vmem>>, vector<80x128xf32>
    %c0_74 = arith.constant 0 : index
    %c22 = arith.constant 22 : index
    %c0_75 = arith.constant 0 : index
    %63 = vector.load %arg1[%c0_74, %c22, %c0_75] : memref<1x110x128xbf16, #tpu.memory_space<vmem>>, vector<1x80x128xbf16>
    %64 = vector.shape_cast %63 : vector<1x80x128xbf16> to vector<80x128xbf16>
    %c8 = arith.constant 8 : index
    %c0_76 = arith.constant 0 : index
    %c0_77 = arith.constant 0 : index
    %65 = vector.load %arg2[%c8, %c0_76, %c0_77] : memref<9x128x128xbf16, #tpu.memory_space<vmem>>, vector<1x128x128xbf16>
    %66 = vector.shape_cast %65 : vector<1x128x128xbf16> to vector<128x128xbf16>
    %cst_78 = arith.constant dense<0.000000e+00> : vector<80x128xf32>
    %67 = tpu.matmul %64, %66, %cst_78 {dimension_numbers = #tpu.dot_dimension_numbers<[1], [0], [0], [1], [0, 0, 1, 1], [], []>} : vector<80x128xbf16>, vector<128x128xbf16>, vector<80x128xf32> -> vector<80x128xf32>
    %68 = arith.addf %62, %67 : vector<80x128xf32>
    %c0_79 = arith.constant 0 : index
    %c0_80 = arith.constant 0 : index
    %69 = vector.load %arg5[%c0_79, %c0_80] : memref<80x128xf32, #tpu.memory_space<vmem>>, vector<80x128xf32>
    tpu.vector_store %arg5[%c0_79, %c0_80], %68 {strides = array<i32>} : memref<80x128xf32, #tpu.memory_space<vmem>>, vector<80x128xf32>,
    %c0_81 = arith.constant 0 : index
    %c0_82 = arith.constant 0 : index
    %70 = vector.load %arg5[%c0_81, %c0_82] : memref<80x128xf32, #tpu.memory_space<vmem>>, vector<80x128xf32>
    %c0_83 = arith.constant 0 : index
    %c0_84 = arith.constant 0 : index
    %71 = vector.load %arg3[%c0_83, %c0_84] : memref<1x128xf32, #tpu.memory_space<vmem>>, vector<1x128xf32>
    %72 = vector.broadcast %71 : vector<1x128xf32> to vector<80x128xf32>
    %73 = arith.addf %70, %72 : vector<80x128xf32>
    %cst_85 = arith.constant 0.000000e+00 : f32
    %74 = vector.broadcast %cst_85 : f32 to vector<80x128xf32>
    %75 = arith.maximumf %73, %74 : vector<80x128xf32>
    %76 = arith.truncf %75 : vector<80x128xf32> to vector<80x128xbf16>
    %c0_86 = arith.constant 0 : index
    %c0_87 = arith.constant 0 : index
    %c0_88 = arith.constant 0 : index
    %77 = vector.load %arg4[%c0_86, %c0_87, %c0_88] : memref<1x80x128xbf16, #tpu.memory_space<vmem>>, vector<1x80x128xbf16>
    %78 = vector.shape_cast %77 : vector<1x80x128xbf16> to vector<80x128xbf16>
    %79 = vector.shape_cast %76 : vector<80x128xbf16> to vector<1x80x128xbf16>
    tpu.vector_store %arg4[%c0_86, %c0_87, %c0_88], %79 {strides = array<i32>} : memref<1x80x128xbf16, #tpu.memory_space<vmem>>, vector<1x80x128xbf16>,
    return
  }
  func.func @transform_0(%arg0: i32) -> (i32, i32, i32) {
    %c0_i32 = arith.constant 0 : i32
    %c0_i32_0 = arith.constant 0 : i32
    %c0_i32_1 = arith.constant 0 : i32
    return %arg0, %c0_i32, %c0_i32_0 : i32, i32, i32
  }
  func.func @transform_1(%arg0: i32) -> (i32, i32, i32) {
    %c0_i32 = arith.constant 0 : i32
    %c0_i32_0 = arith.constant 0 : i32
    %c0_i32_1 = arith.constant 0 : i32
    %c0_i32_2 = arith.constant 0 : i32
    return %c0_i32, %c0_i32_0, %c0_i32_1 : i32, i32, i32
  }
  func.func @transform_2(%arg0: i32) -> (i32, i32) {
    %c0_i32 = arith.constant 0 : i32
    %c0_i32_0 = arith.constant 0 : i32
    %c0_i32_1 = arith.constant 0 : i32
    return %c0_i32, %c0_i32_0 : i32, i32
  }
  func.func @transform_3(%arg0: i32) -> (i32, i32, i32) {
    %c0_i32 = arith.constant 0 : i32
    %c0_i32_0 = arith.constant 0 : i32
    %c0_i32_1 = arith.constant 0 : i32
    return %arg0, %c0_i32, %c0_i32_0 : i32, i32, i32
  }
}

module attributes {stable_mosaic.version = 11 : i64} {
  func.func @_conv_tap_kernel(%arg0: i32, %arg1: memref<1x42x128xbf16, #tpu.memory_space<vmem>>, %arg2: memref<9x128x128xbf16, #tpu.memory_space<vmem>>, %arg3: memref<1x128xf32, #tpu.memory_space<vmem>>, %arg4: memref<128x128xbf16, #tpu.memory_space<vmem>>, %arg5: memref<1x128xf32, #tpu.memory_space<vmem>>, %arg6: memref<1x24x128xf32, #tpu.memory_space<vmem>>, %arg7: memref<24x128xf32, #tpu.memory_space<vmem>>) attributes {dimension_semantics = [#tpu.dimension_semantics<parallel>], iteration_bounds = array<i64: 2>, scalar_prefetch = 0 : i64, scratch_operands = 1 : i64, tpu.core_type = #tpu.core_type<tc>, window_params = [{transform_indices = @transform_0, window_bounds = array<i64: 1, 42, 128>}, {pipeline_mode = #tpu.pipeline_mode<synchronous>, transform_indices = @transform_1, window_bounds = array<i64: 9, 128, 128>}, {pipeline_mode = #tpu.pipeline_mode<synchronous>, transform_indices = @transform_2, window_bounds = array<i64: 1, 128>}, {pipeline_mode = #tpu.pipeline_mode<synchronous>, transform_indices = @transform_3, window_bounds = array<i64: 128, 128>}, {pipeline_mode = #tpu.pipeline_mode<synchronous>, transform_indices = @transform_4, window_bounds = array<i64: 1, 128>}, {transform_indices = @transform_5, window_bounds = array<i64: 1, 24, 128>}]} {
    %c0 = arith.constant 0 : index
    %c0_0 = arith.constant 0 : index
    %c0_1 = arith.constant 0 : index
    %0 = vector.load %arg1[%c0, %c0_0, %c0_1] : memref<1x42x128xbf16, #tpu.memory_space<vmem>>, vector<1x24x128xbf16>
    %1 = vector.shape_cast %0 : vector<1x24x128xbf16> to vector<24x128xbf16>
    %c0_2 = arith.constant 0 : index
    %c0_3 = arith.constant 0 : index
    %c0_4 = arith.constant 0 : index
    %2 = vector.load %arg2[%c0_2, %c0_3, %c0_4] : memref<9x128x128xbf16, #tpu.memory_space<vmem>>, vector<1x128x128xbf16>
    %3 = vector.shape_cast %2 : vector<1x128x128xbf16> to vector<128x128xbf16>
    %cst = arith.constant dense<0.000000e+00> : vector<24x128xf32>
    %4 = tpu.matmul %1, %3, %cst {dimension_numbers = #tpu.dot_dimension_numbers<[1], [0], [0], [1], [0, 0, 1, 1], [], []>} : vector<24x128xbf16>, vector<128x128xbf16>, vector<24x128xf32> -> vector<24x128xf32>
    %c0_5 = arith.constant 0 : index
    %c0_6 = arith.constant 0 : index
    %5 = vector.load %arg7[%c0_5, %c0_6] : memref<24x128xf32, #tpu.memory_space<vmem>>, vector<24x128xf32>
    tpu.vector_store %arg7[%c0_5, %c0_6], %4 {strides = array<i32>} : memref<24x128xf32, #tpu.memory_space<vmem>>, vector<24x128xf32>,
    %c0_7 = arith.constant 0 : index
    %c0_8 = arith.constant 0 : index
    %6 = vector.load %arg7[%c0_7, %c0_8] : memref<24x128xf32, #tpu.memory_space<vmem>>, vector<24x128xf32>
    %c0_9 = arith.constant 0 : index
    %c1 = arith.constant 1 : index
    %c0_10 = arith.constant 0 : index
    %7 = vector.load %arg1[%c0_9, %c1, %c0_10] : memref<1x42x128xbf16, #tpu.memory_space<vmem>>, vector<1x24x128xbf16>
    %8 = vector.shape_cast %7 : vector<1x24x128xbf16> to vector<24x128xbf16>
    %c1_11 = arith.constant 1 : index
    %c0_12 = arith.constant 0 : index
    %c0_13 = arith.constant 0 : index
    %9 = vector.load %arg2[%c1_11, %c0_12, %c0_13] : memref<9x128x128xbf16, #tpu.memory_space<vmem>>, vector<1x128x128xbf16>
    %10 = vector.shape_cast %9 : vector<1x128x128xbf16> to vector<128x128xbf16>
    %cst_14 = arith.constant dense<0.000000e+00> : vector<24x128xf32>
    %11 = tpu.matmul %8, %10, %cst_14 {dimension_numbers = #tpu.dot_dimension_numbers<[1], [0], [0], [1], [0, 0, 1, 1], [], []>} : vector<24x128xbf16>, vector<128x128xbf16>, vector<24x128xf32> -> vector<24x128xf32>
    %12 = arith.addf %6, %11 : vector<24x128xf32>
    %c0_15 = arith.constant 0 : index
    %c0_16 = arith.constant 0 : index
    %13 = vector.load %arg7[%c0_15, %c0_16] : memref<24x128xf32, #tpu.memory_space<vmem>>, vector<24x128xf32>
    tpu.vector_store %arg7[%c0_15, %c0_16], %12 {strides = array<i32>} : memref<24x128xf32, #tpu.memory_space<vmem>>, vector<24x128xf32>,
    %c0_17 = arith.constant 0 : index
    %c0_18 = arith.constant 0 : index
    %14 = vector.load %arg7[%c0_17, %c0_18] : memref<24x128xf32, #tpu.memory_space<vmem>>, vector<24x128xf32>
    %c0_19 = arith.constant 0 : index
    %c2 = arith.constant 2 : index
    %c0_20 = arith.constant 0 : index
    %15 = vector.load %arg1[%c0_19, %c2, %c0_20] : memref<1x42x128xbf16, #tpu.memory_space<vmem>>, vector<1x24x128xbf16>
    %16 = vector.shape_cast %15 : vector<1x24x128xbf16> to vector<24x128xbf16>
    %c2_21 = arith.constant 2 : index
    %c0_22 = arith.constant 0 : index
    %c0_23 = arith.constant 0 : index
    %17 = vector.load %arg2[%c2_21, %c0_22, %c0_23] : memref<9x128x128xbf16, #tpu.memory_space<vmem>>, vector<1x128x128xbf16>
    %18 = vector.shape_cast %17 : vector<1x128x128xbf16> to vector<128x128xbf16>
    %cst_24 = arith.constant dense<0.000000e+00> : vector<24x128xf32>
    %19 = tpu.matmul %16, %18, %cst_24 {dimension_numbers = #tpu.dot_dimension_numbers<[1], [0], [0], [1], [0, 0, 1, 1], [], []>} : vector<24x128xbf16>, vector<128x128xbf16>, vector<24x128xf32> -> vector<24x128xf32>
    %20 = arith.addf %14, %19 : vector<24x128xf32>
    %c0_25 = arith.constant 0 : index
    %c0_26 = arith.constant 0 : index
    %21 = vector.load %arg7[%c0_25, %c0_26] : memref<24x128xf32, #tpu.memory_space<vmem>>, vector<24x128xf32>
    tpu.vector_store %arg7[%c0_25, %c0_26], %20 {strides = array<i32>} : memref<24x128xf32, #tpu.memory_space<vmem>>, vector<24x128xf32>,
    %c0_27 = arith.constant 0 : index
    %c0_28 = arith.constant 0 : index
    %22 = vector.load %arg7[%c0_27, %c0_28] : memref<24x128xf32, #tpu.memory_space<vmem>>, vector<24x128xf32>
    %c0_29 = arith.constant 0 : index
    %c6 = arith.constant 6 : index
    %c0_30 = arith.constant 0 : index
    %23 = vector.load %arg1[%c0_29, %c6, %c0_30] : memref<1x42x128xbf16, #tpu.memory_space<vmem>>, vector<1x24x128xbf16>
    %24 = vector.shape_cast %23 : vector<1x24x128xbf16> to vector<24x128xbf16>
    %c3 = arith.constant 3 : index
    %c0_31 = arith.constant 0 : index
    %c0_32 = arith.constant 0 : index
    %25 = vector.load %arg2[%c3, %c0_31, %c0_32] : memref<9x128x128xbf16, #tpu.memory_space<vmem>>, vector<1x128x128xbf16>
    %26 = vector.shape_cast %25 : vector<1x128x128xbf16> to vector<128x128xbf16>
    %cst_33 = arith.constant dense<0.000000e+00> : vector<24x128xf32>
    %27 = tpu.matmul %24, %26, %cst_33 {dimension_numbers = #tpu.dot_dimension_numbers<[1], [0], [0], [1], [0, 0, 1, 1], [], []>} : vector<24x128xbf16>, vector<128x128xbf16>, vector<24x128xf32> -> vector<24x128xf32>
    %28 = arith.addf %22, %27 : vector<24x128xf32>
    %c0_34 = arith.constant 0 : index
    %c0_35 = arith.constant 0 : index
    %29 = vector.load %arg7[%c0_34, %c0_35] : memref<24x128xf32, #tpu.memory_space<vmem>>, vector<24x128xf32>
    tpu.vector_store %arg7[%c0_34, %c0_35], %28 {strides = array<i32>} : memref<24x128xf32, #tpu.memory_space<vmem>>, vector<24x128xf32>,
    %c0_36 = arith.constant 0 : index
    %c0_37 = arith.constant 0 : index
    %30 = vector.load %arg7[%c0_36, %c0_37] : memref<24x128xf32, #tpu.memory_space<vmem>>, vector<24x128xf32>
    %c0_38 = arith.constant 0 : index
    %c7 = arith.constant 7 : index
    %c0_39 = arith.constant 0 : index
    %31 = vector.load %arg1[%c0_38, %c7, %c0_39] : memref<1x42x128xbf16, #tpu.memory_space<vmem>>, vector<1x24x128xbf16>
    %32 = vector.shape_cast %31 : vector<1x24x128xbf16> to vector<24x128xbf16>
    %c4 = arith.constant 4 : index
    %c0_40 = arith.constant 0 : index
    %c0_41 = arith.constant 0 : index
    %33 = vector.load %arg2[%c4, %c0_40, %c0_41] : memref<9x128x128xbf16, #tpu.memory_space<vmem>>, vector<1x128x128xbf16>
    %34 = vector.shape_cast %33 : vector<1x128x128xbf16> to vector<128x128xbf16>
    %cst_42 = arith.constant dense<0.000000e+00> : vector<24x128xf32>
    %35 = tpu.matmul %32, %34, %cst_42 {dimension_numbers = #tpu.dot_dimension_numbers<[1], [0], [0], [1], [0, 0, 1, 1], [], []>} : vector<24x128xbf16>, vector<128x128xbf16>, vector<24x128xf32> -> vector<24x128xf32>
    %36 = arith.addf %30, %35 : vector<24x128xf32>
    %c0_43 = arith.constant 0 : index
    %c0_44 = arith.constant 0 : index
    %37 = vector.load %arg7[%c0_43, %c0_44] : memref<24x128xf32, #tpu.memory_space<vmem>>, vector<24x128xf32>
    tpu.vector_store %arg7[%c0_43, %c0_44], %36 {strides = array<i32>} : memref<24x128xf32, #tpu.memory_space<vmem>>, vector<24x128xf32>,
    %c0_45 = arith.constant 0 : index
    %c0_46 = arith.constant 0 : index
    %38 = vector.load %arg7[%c0_45, %c0_46] : memref<24x128xf32, #tpu.memory_space<vmem>>, vector<24x128xf32>
    %c0_47 = arith.constant 0 : index
    %c8 = arith.constant 8 : index
    %c0_48 = arith.constant 0 : index
    %39 = vector.load %arg1[%c0_47, %c8, %c0_48] : memref<1x42x128xbf16, #tpu.memory_space<vmem>>, vector<1x24x128xbf16>
    %40 = vector.shape_cast %39 : vector<1x24x128xbf16> to vector<24x128xbf16>
    %c5 = arith.constant 5 : index
    %c0_49 = arith.constant 0 : index
    %c0_50 = arith.constant 0 : index
    %41 = vector.load %arg2[%c5, %c0_49, %c0_50] : memref<9x128x128xbf16, #tpu.memory_space<vmem>>, vector<1x128x128xbf16>
    %42 = vector.shape_cast %41 : vector<1x128x128xbf16> to vector<128x128xbf16>
    %cst_51 = arith.constant dense<0.000000e+00> : vector<24x128xf32>
    %43 = tpu.matmul %40, %42, %cst_51 {dimension_numbers = #tpu.dot_dimension_numbers<[1], [0], [0], [1], [0, 0, 1, 1], [], []>} : vector<24x128xbf16>, vector<128x128xbf16>, vector<24x128xf32> -> vector<24x128xf32>
    %44 = arith.addf %38, %43 : vector<24x128xf32>
    %c0_52 = arith.constant 0 : index
    %c0_53 = arith.constant 0 : index
    %45 = vector.load %arg7[%c0_52, %c0_53] : memref<24x128xf32, #tpu.memory_space<vmem>>, vector<24x128xf32>
    tpu.vector_store %arg7[%c0_52, %c0_53], %44 {strides = array<i32>} : memref<24x128xf32, #tpu.memory_space<vmem>>, vector<24x128xf32>,
    %c0_54 = arith.constant 0 : index
    %c0_55 = arith.constant 0 : index
    %46 = vector.load %arg7[%c0_54, %c0_55] : memref<24x128xf32, #tpu.memory_space<vmem>>, vector<24x128xf32>
    %c0_56 = arith.constant 0 : index
    %c12 = arith.constant 12 : index
    %c0_57 = arith.constant 0 : index
    %47 = vector.load %arg1[%c0_56, %c12, %c0_57] : memref<1x42x128xbf16, #tpu.memory_space<vmem>>, vector<1x24x128xbf16>
    %48 = vector.shape_cast %47 : vector<1x24x128xbf16> to vector<24x128xbf16>
    %c6_58 = arith.constant 6 : index
    %c0_59 = arith.constant 0 : index
    %c0_60 = arith.constant 0 : index
    %49 = vector.load %arg2[%c6_58, %c0_59, %c0_60] : memref<9x128x128xbf16, #tpu.memory_space<vmem>>, vector<1x128x128xbf16>
    %50 = vector.shape_cast %49 : vector<1x128x128xbf16> to vector<128x128xbf16>
    %cst_61 = arith.constant dense<0.000000e+00> : vector<24x128xf32>
    %51 = tpu.matmul %48, %50, %cst_61 {dimension_numbers = #tpu.dot_dimension_numbers<[1], [0], [0], [1], [0, 0, 1, 1], [], []>} : vector<24x128xbf16>, vector<128x128xbf16>, vector<24x128xf32> -> vector<24x128xf32>
    %52 = arith.addf %46, %51 : vector<24x128xf32>
    %c0_62 = arith.constant 0 : index
    %c0_63 = arith.constant 0 : index
    %53 = vector.load %arg7[%c0_62, %c0_63] : memref<24x128xf32, #tpu.memory_space<vmem>>, vector<24x128xf32>
    tpu.vector_store %arg7[%c0_62, %c0_63], %52 {strides = array<i32>} : memref<24x128xf32, #tpu.memory_space<vmem>>, vector<24x128xf32>,
    %c0_64 = arith.constant 0 : index
    %c0_65 = arith.constant 0 : index
    %54 = vector.load %arg7[%c0_64, %c0_65] : memref<24x128xf32, #tpu.memory_space<vmem>>, vector<24x128xf32>
    %c0_66 = arith.constant 0 : index
    %c13 = arith.constant 13 : index
    %c0_67 = arith.constant 0 : index
    %55 = vector.load %arg1[%c0_66, %c13, %c0_67] : memref<1x42x128xbf16, #tpu.memory_space<vmem>>, vector<1x24x128xbf16>
    %56 = vector.shape_cast %55 : vector<1x24x128xbf16> to vector<24x128xbf16>
    %c7_68 = arith.constant 7 : index
    %c0_69 = arith.constant 0 : index
    %c0_70 = arith.constant 0 : index
    %57 = vector.load %arg2[%c7_68, %c0_69, %c0_70] : memref<9x128x128xbf16, #tpu.memory_space<vmem>>, vector<1x128x128xbf16>
    %58 = vector.shape_cast %57 : vector<1x128x128xbf16> to vector<128x128xbf16>
    %cst_71 = arith.constant dense<0.000000e+00> : vector<24x128xf32>
    %59 = tpu.matmul %56, %58, %cst_71 {dimension_numbers = #tpu.dot_dimension_numbers<[1], [0], [0], [1], [0, 0, 1, 1], [], []>} : vector<24x128xbf16>, vector<128x128xbf16>, vector<24x128xf32> -> vector<24x128xf32>
    %60 = arith.addf %54, %59 : vector<24x128xf32>
    %c0_72 = arith.constant 0 : index
    %c0_73 = arith.constant 0 : index
    %61 = vector.load %arg7[%c0_72, %c0_73] : memref<24x128xf32, #tpu.memory_space<vmem>>, vector<24x128xf32>
    tpu.vector_store %arg7[%c0_72, %c0_73], %60 {strides = array<i32>} : memref<24x128xf32, #tpu.memory_space<vmem>>, vector<24x128xf32>,
    %c0_74 = arith.constant 0 : index
    %c0_75 = arith.constant 0 : index
    %62 = vector.load %arg7[%c0_74, %c0_75] : memref<24x128xf32, #tpu.memory_space<vmem>>, vector<24x128xf32>
    %c0_76 = arith.constant 0 : index
    %c14 = arith.constant 14 : index
    %c0_77 = arith.constant 0 : index
    %63 = vector.load %arg1[%c0_76, %c14, %c0_77] : memref<1x42x128xbf16, #tpu.memory_space<vmem>>, vector<1x24x128xbf16>
    %64 = vector.shape_cast %63 : vector<1x24x128xbf16> to vector<24x128xbf16>
    %c8_78 = arith.constant 8 : index
    %c0_79 = arith.constant 0 : index
    %c0_80 = arith.constant 0 : index
    %65 = vector.load %arg2[%c8_78, %c0_79, %c0_80] : memref<9x128x128xbf16, #tpu.memory_space<vmem>>, vector<1x128x128xbf16>
    %66 = vector.shape_cast %65 : vector<1x128x128xbf16> to vector<128x128xbf16>
    %cst_81 = arith.constant dense<0.000000e+00> : vector<24x128xf32>
    %67 = tpu.matmul %64, %66, %cst_81 {dimension_numbers = #tpu.dot_dimension_numbers<[1], [0], [0], [1], [0, 0, 1, 1], [], []>} : vector<24x128xbf16>, vector<128x128xbf16>, vector<24x128xf32> -> vector<24x128xf32>
    %68 = arith.addf %62, %67 : vector<24x128xf32>
    %c0_82 = arith.constant 0 : index
    %c0_83 = arith.constant 0 : index
    %69 = vector.load %arg7[%c0_82, %c0_83] : memref<24x128xf32, #tpu.memory_space<vmem>>, vector<24x128xf32>
    tpu.vector_store %arg7[%c0_82, %c0_83], %68 {strides = array<i32>} : memref<24x128xf32, #tpu.memory_space<vmem>>, vector<24x128xf32>,
    %c0_84 = arith.constant 0 : index
    %c0_85 = arith.constant 0 : index
    %70 = vector.load %arg7[%c0_84, %c0_85] : memref<24x128xf32, #tpu.memory_space<vmem>>, vector<24x128xf32>
    %c0_86 = arith.constant 0 : index
    %c0_87 = arith.constant 0 : index
    %71 = vector.load %arg3[%c0_86, %c0_87] : memref<1x128xf32, #tpu.memory_space<vmem>>, vector<1x128xf32>
    %72 = vector.broadcast %71 : vector<1x128xf32> to vector<24x128xf32>
    %73 = arith.addf %70, %72 : vector<24x128xf32>
    %cst_88 = arith.constant 0.000000e+00 : f32
    %74 = vector.broadcast %cst_88 : f32 to vector<24x128xf32>
    %75 = arith.maximumf %73, %74 : vector<24x128xf32>
    %76 = arith.truncf %75 : vector<24x128xf32> to vector<24x128xbf16>
    %c0_89 = arith.constant 0 : index
    %c0_90 = arith.constant 0 : index
    %77 = vector.load %arg4[%c0_89, %c0_90] : memref<128x128xbf16, #tpu.memory_space<vmem>>, vector<128x128xbf16>
    %cst_91 = arith.constant dense<0.000000e+00> : vector<24x128xf32>
    %78 = tpu.matmul %76, %77, %cst_91 {dimension_numbers = #tpu.dot_dimension_numbers<[1], [0], [0], [1], [0, 0, 1, 1], [], []>} : vector<24x128xbf16>, vector<128x128xbf16>, vector<24x128xf32> -> vector<24x128xf32>
    %c0_92 = arith.constant 0 : index
    %c0_93 = arith.constant 0 : index
    %79 = vector.load %arg5[%c0_92, %c0_93] : memref<1x128xf32, #tpu.memory_space<vmem>>, vector<1x128xf32>
    %80 = vector.broadcast %79 : vector<1x128xf32> to vector<24x128xf32>
    %81 = arith.addf %78, %80 : vector<24x128xf32>
    %c0_94 = arith.constant 0 : index
    %c0_95 = arith.constant 0 : index
    %c0_96 = arith.constant 0 : index
    %82 = vector.load %arg6[%c0_94, %c0_95, %c0_96] : memref<1x24x128xf32, #tpu.memory_space<vmem>>, vector<1x24x128xf32>
    %83 = vector.shape_cast %82 : vector<1x24x128xf32> to vector<24x128xf32>
    %84 = vector.shape_cast %81 : vector<24x128xf32> to vector<1x24x128xf32>
    tpu.vector_store %arg6[%c0_94, %c0_95, %c0_96], %84 {strides = array<i32>} : memref<1x24x128xf32, #tpu.memory_space<vmem>>, vector<1x24x128xf32>,
    return
  }
  func.func @transform_0(%arg0: i32) -> (i32, i32, i32) {
    %c0_i32 = arith.constant 0 : i32
    %c0_i32_0 = arith.constant 0 : i32
    %c0_i32_1 = arith.constant 0 : i32
    return %arg0, %c0_i32, %c0_i32_0 : i32, i32, i32
  }
  func.func @transform_1(%arg0: i32) -> (i32, i32, i32) {
    %c0_i32 = arith.constant 0 : i32
    %c0_i32_0 = arith.constant 0 : i32
    %c0_i32_1 = arith.constant 0 : i32
    %c0_i32_2 = arith.constant 0 : i32
    return %c0_i32, %c0_i32_0, %c0_i32_1 : i32, i32, i32
  }
  func.func @transform_2(%arg0: i32) -> (i32, i32) {
    %c0_i32 = arith.constant 0 : i32
    %c0_i32_0 = arith.constant 0 : i32
    %c0_i32_1 = arith.constant 0 : i32
    return %c0_i32, %c0_i32_0 : i32, i32
  }
  func.func @transform_3(%arg0: i32) -> (i32, i32) {
    %c0_i32 = arith.constant 0 : i32
    %c0_i32_0 = arith.constant 0 : i32
    %c0_i32_1 = arith.constant 0 : i32
    return %c0_i32, %c0_i32_0 : i32, i32
  }
  func.func @transform_4(%arg0: i32) -> (i32, i32) {
    %c0_i32 = arith.constant 0 : i32
    %c0_i32_0 = arith.constant 0 : i32
    %c0_i32_1 = arith.constant 0 : i32
    return %c0_i32, %c0_i32_0 : i32, i32
  }
  func.func @transform_5(%arg0: i32) -> (i32, i32, i32) {
    %c0_i32 = arith.constant 0 : i32
    %c0_i32_0 = arith.constant 0 : i32
    %c0_i32_1 = arith.constant 0 : i32
    return %arg0, %c0_i32, %c0_i32_0 : i32, i32, i32
  }
}

module attributes {stable_mosaic.version = 11 : i64} {
  func.func @_matmul_kernel(%arg0: i32, %arg1: i32, %arg2: i32, %arg3: memref<128x512xbf16, #tpu.memory_space<vmem>>, %arg4: memref<512x128xbf16, #tpu.memory_space<vmem>>, %arg5: memref<1x128xf32, #tpu.memory_space<vmem>>, %arg6: memref<128x128xf32, #tpu.memory_space<vmem>>, %arg7: memref<128x128xf32, #tpu.memory_space<vmem>>) attributes {dimension_semantics = [#tpu.dimension_semantics<parallel>, #tpu.dimension_semantics<parallel>, #tpu.dimension_semantics<arbitrary>], iteration_bounds = array<i64: 1, 1, 1>, scalar_prefetch = 0 : i64, scratch_operands = 1 : i64, tpu.core_type = #tpu.core_type<tc>, window_params = [{transform_indices = @transform_0, window_bounds = array<i64: 128, 512>}, {transform_indices = @transform_1, window_bounds = array<i64: 512, 128>}, {transform_indices = @transform_2, window_bounds = array<i64: 1, 128>}, {transform_indices = @transform_3, window_bounds = array<i64: 128, 128>}]} {
    %c0_i32 = arith.constant 0 : i32
    %0 = arith.cmpi eq, %arg2, %c0_i32 : i32
    %1 = arith.extui %0 : i1 to i32
    %c0_i32_0 = arith.constant 0 : i32
    %2 = arith.cmpi ne, %1, %c0_i32_0 : i32
    scf.if %2 {
      %cst_10 = arith.constant 0.000000e+00 : f32
      %12 = vector.broadcast %cst_10 : f32 to vector<128x128xf32>
      %c0_11 = arith.constant 0 : index
      %c0_12 = arith.constant 0 : index
      %13 = vector.load %arg7[%c0_11, %c0_12] : memref<128x128xf32, #tpu.memory_space<vmem>>, vector<128x128xf32>
      tpu.vector_store %arg7[%c0_11, %c0_12], %12 {strides = array<i32>} : memref<128x128xf32, #tpu.memory_space<vmem>>, vector<128x128xf32>,
    } else {
    }
    %c0 = arith.constant 0 : index
    %c0_1 = arith.constant 0 : index
    %3 = vector.load %arg7[%c0, %c0_1] : memref<128x128xf32, #tpu.memory_space<vmem>>, vector<128x128xf32>
    %c0_2 = arith.constant 0 : index
    %c0_3 = arith.constant 0 : index
    %4 = vector.load %arg3[%c0_2, %c0_3] : memref<128x512xbf16, #tpu.memory_space<vmem>>, vector<128x512xbf16>
    %c0_4 = arith.constant 0 : index
    %c0_5 = arith.constant 0 : index
    %5 = vector.load %arg4[%c0_4, %c0_5] : memref<512x128xbf16, #tpu.memory_space<vmem>>, vector<512x128xbf16>
    %cst = arith.constant dense<0.000000e+00> : vector<128x128xf32>
    %6 = tpu.matmul %4, %5, %cst {dimension_numbers = #tpu.dot_dimension_numbers<[1], [0], [0], [1], [0, 0, 1, 1], [], []>} : vector<128x512xbf16>, vector<512x128xbf16>, vector<128x128xf32> -> vector<128x128xf32>
    %7 = arith.addf %3, %6 : vector<128x128xf32>
    %c0_6 = arith.constant 0 : index
    %c0_7 = arith.constant 0 : index
    %8 = vector.load %arg7[%c0_6, %c0_7] : memref<128x128xf32, #tpu.memory_space<vmem>>, vector<128x128xf32>
    tpu.vector_store %arg7[%c0_6, %c0_7], %7 {strides = array<i32>} : memref<128x128xf32, #tpu.memory_space<vmem>>, vector<128x128xf32>,
    %c0_i32_8 = arith.constant 0 : i32
    %9 = arith.cmpi eq, %arg2, %c0_i32_8 : i32
    %10 = arith.extui %9 : i1 to i32
    %c0_i32_9 = arith.constant 0 : i32
    %11 = arith.cmpi ne, %10, %c0_i32_9 : i32
    scf.if %11 {
      %c0_10 = arith.constant 0 : index
      %c0_11 = arith.constant 0 : index
      %12 = vector.load %arg7[%c0_10, %c0_11] : memref<128x128xf32, #tpu.memory_space<vmem>>, vector<128x128xf32>
      %c0_12 = arith.constant 0 : index
      %c0_13 = arith.constant 0 : index
      %13 = vector.load %arg5[%c0_12, %c0_13] : memref<1x128xf32, #tpu.memory_space<vmem>>, vector<1x128xf32>
      %14 = vector.broadcast %13 : vector<1x128xf32> to vector<128x128xf32>
      %15 = arith.addf %12, %14 : vector<128x128xf32>
      %cst_14 = arith.constant 0.000000e+00 : f32
      %16 = vector.broadcast %cst_14 : f32 to vector<128x128xf32>
      %17 = arith.maximumf %15, %16 : vector<128x128xf32>
      %c0_15 = arith.constant 0 : index
      %c0_16 = arith.constant 0 : index
      %18 = vector.load %arg6[%c0_15, %c0_16] : memref<128x128xf32, #tpu.memory_space<vmem>>, vector<128x128xf32>
      tpu.vector_store %arg6[%c0_15, %c0_16], %17 {strides = array<i32>} : memref<128x128xf32, #tpu.memory_space<vmem>>, vector<128x128xf32>,
    } else {
    }
    return
  }
  func.func @transform_0(%arg0: i32, %arg1: i32, %arg2: i32) -> (i32, i32) {
    %c0_i32 = arith.constant 0 : i32
    return %arg0, %arg2 : i32, i32
  }
  func.func @transform_1(%arg0: i32, %arg1: i32, %arg2: i32) -> (i32, i32) {
    %c0_i32 = arith.constant 0 : i32
    return %arg2, %arg1 : i32, i32
  }
  func.func @transform_2(%arg0: i32, %arg1: i32, %arg2: i32) -> (i32, i32) {
    %c0_i32 = arith.constant 0 : i32
    %c0_i32_0 = arith.constant 0 : i32
    return %c0_i32, %arg1 : i32, i32
  }
  func.func @transform_3(%arg0: i32, %arg1: i32, %arg2: i32) -> (i32, i32) {
    %c0_i32 = arith.constant 0 : i32
    return %arg0, %arg1 : i32, i32
  }
}

module attributes {stable_mosaic.version = 11 : i64} {
  func.func @_matmul_kernel(%arg0: i32, %arg1: i32, %arg2: i32, %arg3: memref<128x128xbf16, #tpu.memory_space<vmem>>, %arg4: memref<128x128xbf16, #tpu.memory_space<vmem>>, %arg5: memref<1x128xf32, #tpu.memory_space<vmem>>, %arg6: memref<128x128xf32, #tpu.memory_space<vmem>>, %arg7: memref<128x128xf32, #tpu.memory_space<vmem>>) attributes {dimension_semantics = [#tpu.dimension_semantics<parallel>, #tpu.dimension_semantics<parallel>, #tpu.dimension_semantics<arbitrary>], iteration_bounds = array<i64: 1, 1, 1>, scalar_prefetch = 0 : i64, scratch_operands = 1 : i64, tpu.core_type = #tpu.core_type<tc>, window_params = [{transform_indices = @transform_0, window_bounds = array<i64: 128, 128>}, {transform_indices = @transform_1, window_bounds = array<i64: 128, 128>}, {transform_indices = @transform_2, window_bounds = array<i64: 1, 128>}, {transform_indices = @transform_3, window_bounds = array<i64: 128, 128>}]} {
    %c0_i32 = arith.constant 0 : i32
    %0 = arith.cmpi eq, %arg2, %c0_i32 : i32
    %1 = arith.extui %0 : i1 to i32
    %c0_i32_0 = arith.constant 0 : i32
    %2 = arith.cmpi ne, %1, %c0_i32_0 : i32
    scf.if %2 {
      %cst_10 = arith.constant 0.000000e+00 : f32
      %12 = vector.broadcast %cst_10 : f32 to vector<128x128xf32>
      %c0_11 = arith.constant 0 : index
      %c0_12 = arith.constant 0 : index
      %13 = vector.load %arg7[%c0_11, %c0_12] : memref<128x128xf32, #tpu.memory_space<vmem>>, vector<128x128xf32>
      tpu.vector_store %arg7[%c0_11, %c0_12], %12 {strides = array<i32>} : memref<128x128xf32, #tpu.memory_space<vmem>>, vector<128x128xf32>,
    } else {
    }
    %c0 = arith.constant 0 : index
    %c0_1 = arith.constant 0 : index
    %3 = vector.load %arg7[%c0, %c0_1] : memref<128x128xf32, #tpu.memory_space<vmem>>, vector<128x128xf32>
    %c0_2 = arith.constant 0 : index
    %c0_3 = arith.constant 0 : index
    %4 = vector.load %arg3[%c0_2, %c0_3] : memref<128x128xbf16, #tpu.memory_space<vmem>>, vector<128x128xbf16>
    %c0_4 = arith.constant 0 : index
    %c0_5 = arith.constant 0 : index
    %5 = vector.load %arg4[%c0_4, %c0_5] : memref<128x128xbf16, #tpu.memory_space<vmem>>, vector<128x128xbf16>
    %cst = arith.constant dense<0.000000e+00> : vector<128x128xf32>
    %6 = tpu.matmul %4, %5, %cst {dimension_numbers = #tpu.dot_dimension_numbers<[1], [0], [0], [1], [0, 0, 1, 1], [], []>} : vector<128x128xbf16>, vector<128x128xbf16>, vector<128x128xf32> -> vector<128x128xf32>
    %7 = arith.addf %3, %6 : vector<128x128xf32>
    %c0_6 = arith.constant 0 : index
    %c0_7 = arith.constant 0 : index
    %8 = vector.load %arg7[%c0_6, %c0_7] : memref<128x128xf32, #tpu.memory_space<vmem>>, vector<128x128xf32>
    tpu.vector_store %arg7[%c0_6, %c0_7], %7 {strides = array<i32>} : memref<128x128xf32, #tpu.memory_space<vmem>>, vector<128x128xf32>,
    %c0_i32_8 = arith.constant 0 : i32
    %9 = arith.cmpi eq, %arg2, %c0_i32_8 : i32
    %10 = arith.extui %9 : i1 to i32
    %c0_i32_9 = arith.constant 0 : i32
    %11 = arith.cmpi ne, %10, %c0_i32_9 : i32
    scf.if %11 {
      %c0_10 = arith.constant 0 : index
      %c0_11 = arith.constant 0 : index
      %12 = vector.load %arg7[%c0_10, %c0_11] : memref<128x128xf32, #tpu.memory_space<vmem>>, vector<128x128xf32>
      %c0_12 = arith.constant 0 : index
      %c0_13 = arith.constant 0 : index
      %13 = vector.load %arg5[%c0_12, %c0_13] : memref<1x128xf32, #tpu.memory_space<vmem>>, vector<1x128xf32>
      %14 = vector.broadcast %13 : vector<1x128xf32> to vector<128x128xf32>
      %15 = arith.addf %12, %14 : vector<128x128xf32>
      %c0_14 = arith.constant 0 : index
      %c0_15 = arith.constant 0 : index
      %16 = vector.load %arg6[%c0_14, %c0_15] : memref<128x128xf32, #tpu.memory_space<vmem>>, vector<128x128xf32>
      tpu.vector_store %arg6[%c0_14, %c0_15], %15 {strides = array<i32>} : memref<128x128xf32, #tpu.memory_space<vmem>>, vector<128x128xf32>,
    } else {
    }
    return
  }
  func.func @transform_0(%arg0: i32, %arg1: i32, %arg2: i32) -> (i32, i32) {
    %c0_i32 = arith.constant 0 : i32
    return %arg0, %arg2 : i32, i32
  }
  func.func @transform_1(%arg0: i32, %arg1: i32, %arg2: i32) -> (i32, i32) {
    %c0_i32 = arith.constant 0 : i32
    return %arg2, %arg1 : i32, i32
  }
  func.func @transform_2(%arg0: i32, %arg1: i32, %arg2: i32) -> (i32, i32) {
    %c0_i32 = arith.constant 0 : i32
    %c0_i32_0 = arith.constant 0 : i32
    return %c0_i32, %arg1 : i32, i32
  }
  func.func @transform_3(%arg0: i32, %arg1: i32, %arg2: i32) -> (i32, i32) {
    %c0_i32 = arith.constant 0 : i32
    return %arg0, %arg1 : i32, i32
  }
}

</mosaic_0001>

<bundles_post_ra>
// kernel: _lambda_.6
= control target key start
LH: loop header
LB: loop body
LE: loop exit
PB: predicated region body
PF: predicated region fallthrough
CT: control target
= control target key end

     0   :  { %s2829_s12 = smov 0   ;;  %s3287_s0 = inlined_call_operand.vmem [shape: bf16[2,110,128], index: 0, kind: input, shape index: {}]   ;;  %s3288_s1 = inlined_call_operand.vmem [shape: bf16[9,128,128], index: 1, kind: input, shape index: {}]   ;;  %s3289_s2 = inlined_call_operand.vmem [shape: f32[1,128], index: 2, kind: input, shape index: {}]   ;;  %s3290_s3 = inlined_call_operand.vmem [shape: bf16[2,80,128], index: 3, kind: output, shape index: {}]  }
   0x1 LB: > { %s2023_s13 = sadd.s32 4294967295, %s2807_s12   ;;  %p2027_p0 = scmp.ge.s32.totalorder %s2807_s12, 1  ;;  %s2807_s12 = sphi %s2829_s12, %s13_s12  }
   0x2   : > { %p137_p1 = scmp.lt.s32.totalorder %s2807_s12, 3 }
   0x4   : > { %p138_p2 = pnand %p2027_p0, %p137_p1 }
   0x5   : > { %p161_p3 = scmp.lt.s32.totalorder (!%p138_p2), %s2023_s13, 1 }
   0x6   : > { %141 = sbr.rel (%p138_p2) target bundleno = 375 (0x177), region = 32 }
   0xb   : > { %v2640_v0 = vld [vmem:[%s3288_s1 + $0x38] sm:$0xff]  ;;  %v2639_v1 = vld [vmem:[%s3288_s1 + $0x30] sm:$0xff]  ;;  %v2638_v4 = vld [vmem:[%s3288_s1 + $0x28] sm:$0xff]  ;;  %s3292_s13 = smov (!%p161_p3, %s2023_s13), 1  ;;  %vm603_vm0 = vcmask 1046528   ;;  %vm1199_vm4 = vcmask 1045504  }
   0xc   : > { %275 = vmatpush.bf16.msra.mxu0 %v2640_v0  ;;  %2774 = vmatpush.bf16.msra.mxu1 %v2640_v0  ;;  %v2679_v2 = vld [vmem:[%s3288_s1 + $0xf8] sm:$0xff]  ;;  %v2678_v3 = vld [vmem:[%s3288_s1 + $0xf0] sm:$0xff]  ;;  %v2677_v5 = vld [vmem:[%s3288_s1 + $0xe8] sm:$0xff]  ;;  %s2790_s9 = smul.u32 56, %s3292_s13  ;;  %vm385_vm1 = vsmask.f32 7424 }
   0xd   : > { %2775 = vmatpush.bf16.msra.mxu2 %v2640_v0  ;;  %852 = vmatpush.bf16.msra.mxu3 %v2679_v2  ;;  %v2637_v6 = vld [vmem:[%s3288_s1 + $0x20] sm:$0xff]  ;;  %v2636_v8 = vld [vmem:[%s3288_s1 + $0x18] sm:$0xff]  ;;  %v2635_v10 = vld [vmem:[%s3288_s1 + $0x10] sm:$0xff]  ;;  %vm972_vm2 = vsmask.f32 6400  ;;  %vm1795_vm5 = vcmask 1044480  }
   0xe   : > { %v2676_v7 = vld [vmem:[%s3288_s1 + $0xe0] sm:$0xff]  ;;  %v2675_v9 = vld [vmem:[%s3288_s1 + $0xd8] sm:$0xff]  ;;  %v2674_v11 = vld [vmem:[%s3288_s1 + $0xd0] sm:$0xff]  ;;  %s2882_s18 = scalar_lea.vmem %s3287_s0, %s2790_s9  ;;  %vm1568_vm3 = vsmask.f32 5376  ;;  %s2791_s17 = smul.u32 40, %s3292_s13 }
   0xf   : > { %v2634_v12 = vld [vmem:[%s3288_s1 + $0x8] sm:$0xff]  ;;  %v2236_v13 = vld [vmem:[%s2882_s18 + $0x4] sm:$0xe]  ;;  %v2653_v19 = vld [vmem:[%s3288_s1 + $0x78] sm:$0xff] }
  0x10   : > { %276 = vmatpush.bf16.msra.mxu0 %v2639_v1  ;;  %2776 = vmatpush.bf16.msra.mxu1 %v2639_v1  ;;  %v2667_v14 = vld [vmem:[%s2882_s18 + $0x4] sm:$0xf0]  ;;  %v2633_v16 = vld [vmem:[%s3288_s1] sm:$0xff]  ;;  %v2893_v17 = vld [vmem:[%s2882_s18 + $0xc] sm:$0xff]  ;;  %s3262_s21 = scalar_lea.vmem %s3290_s3, %s2791_s17 }
  0x11   : > { %2777 = vmatpush.bf16.msra.mxu2 %v2639_v1  ;;  %853 = vmatpush.bf16.msra.mxu3 %v2678_v3  ;;  %v2673_v15 = vld [vmem:[%s3288_s1 + $0xc8] sm:$0xff]  ;;  %v2237_v18 = vor.u32 %v2667_v14, %v2236_v13  ;;  %v2666_v20 = vld [vmem:[%s3288_s1 + $0xb8] sm:$0xff]  ;;  %v2628_v22 = vld [vmem:[%s2882_s18] sm:$0xff]  ;;  %v789_v27 = vrot.slane %v2893_v17, 1 }
  0x12   : > { %v2692_v21 = vld [vmem:[%s3288_s1 + $0x138] sm:$0xff]  ;;  %v2630_v23 = vld [vmem:[%s2882_s18 + $0x10] sm:$0xff]  ;;  %v2632_v24 = vld [vmem:[%s2882_s18 + $0x20] sm:$0xff] }
  0x13   : > { %v2672_v25 = vld [vmem:[%s3288_s1 + $0xc0] sm:$0xff]  ;;  %v788_v26 = vrot.slane %v2237_v18, 1  ;;  %v2652_v28 = vld [vmem:[%s3288_s1 + $0x70] sm:$0xff]  ;;  %v2731_v29 = vld [vmem:[%s3288_s1 + $0x1f8] sm:$0xff] }
  0x14   : > { %277 = vmatpush.bf16.msra.mxu0 %v2638_v4  ;;  %2778 = vmatpush.bf16.msra.mxu1 %v2638_v4  ;;  %v2665_v30 = vld [vmem:[%s3288_s1 + $0xb0] sm:$0xff]  ;;  %v2651_v33 = vld [vmem:[%s3288_s1 + $0x68] sm:$0xff]  ;;  %v2650_v37 = vld [vmem:[%s3288_s1 + $0x60] sm:$0xff] }
  0x15   : > { %2779 = vmatpush.bf16.msra.mxu2 %v2638_v4  ;;  %854 = vmatpush.bf16.msra.mxu3 %v2677_v5  ;;  %v2691_v31 = vld [vmem:[%s3288_s1 + $0x130] sm:$0xff]  ;;  %v790_v32 = vsel %vm603_vm0, %v788_v26, %v789_v27  ;;  %v2664_v35 = vld [vmem:[%s3288_s1 + $0xa8] sm:$0xff]  ;;  %v2663_v38 = vld [vmem:[%s3288_s1 + $0xa0] sm:$0xff] }
  0x16   : > { %v2730_v34 = vld [vmem:[%s3288_s1 + $0x1f0] sm:$0xff]  ;;  %v2690_v36 = vld [vmem:[%s3288_s1 + $0x128] sm:$0xff]  ;;  %v2689_v39 = vld [vmem:[%s3288_s1 + $0x120] sm:$0xff] }
  0x17   : > { %v2304_v40 = vld [vmem:[%s2882_s18 + $0x4] sm:$0xe]  ;;  %v2680_v41 = vld [vmem:[%s2882_s18 + $0x4] sm:$0xf0]  ;;  %v2950_v42 = vld [vmem:[%s2882_s18 + $0x14] sm:$0xff] }
  0x18   : > { %278 = vmatpush.bf16.msra.mxu0 %v2637_v6  ;;  %2780 = vmatpush.bf16.msra.mxu1 %v2637_v6  ;;  %v2649_v43 = vld [vmem:[%s3288_s1 + $0x58] sm:$0xff]  ;;  %v2629_v46 = vld [vmem:[%s2882_s18 + $0x8] sm:$0xff]  ;;  %v2641_v48 = vld [vmem:[%s2882_s18] sm:$0xff]  ;;  %v2305_v49 = vor.u32 %v2680_v41, %v2304_v40  ;;  %v791_v51 = vrot.slane %v2950_v42, 1 }
  0x19   : > { %2781 = vmatpush.bf16.msra.mxu2 %v2637_v6  ;;  %855 = vmatpush.bf16.msra.mxu3 %v2676_v7  ;;  %v2662_v44 = vld [vmem:[%s3288_s1 + $0x98] sm:$0xff]  ;;  %v2681_v50 = vld [vmem:[%s2882_s18 + $0xc] sm:$0xff]  ;;  %v2168_v55 = vld [vmem:[%s2882_s18] sm:$0xe]  ;;  %v389_v58 = vshll.u32 %v2641_v48, 16  ;;  %v387_v6 = vshrl.u32 %v2641_v48, 16 }
  0x1a   : > { %v2688_v45 = vld [vmem:[%s3288_s1 + $0x118] sm:$0xff]  ;;  %v2648_v52 = vld [vmem:[%s3288_s1 + $0x50] sm:$0xff]  ;;  %v2654_v56 = vld [vmem:[%s2882_s18] sm:$0xf0]  ;;  %v974_v59 = vshrl.u32 %v2305_v49, 16  ;;  %v977_v61 = vshll.u32 %v2305_v49, 16  ;;  %v792_v0 = vsel %vm603_vm0, %v789_v27, %v791_v51 }
  0x1b   : > { %v2631_v47 = vld [vmem:[%s2882_s18 + $0x18] sm:$0xff]  ;;  %v2661_v53 = vld [vmem:[%s3288_s1 + $0x90] sm:$0xff]  ;;  %v2978_v57 = vld [vmem:[%s2882_s18 + $0x8] sm:$0xff]  ;;  %v982_v62 = vshrl.u32 %v2681_v50, 16  ;;  %v985_v63 = vshll.u32 %v2681_v50, 16  ;;  %v2169_v5 = vor.u32 %v2654_v56, %v2168_v55  ;;  %v391_v7 = vrot.slane %v389_v58, 1 }
  0x1c   : > { %279 = vmatpush.bf16.msra.mxu0 %v2636_v8  ;;  %2782 = vmatpush.bf16.msra.mxu1 %v2636_v8  ;;  %v2687_v54 = vld [vmem:[%s3288_s1 + $0x110] sm:$0xff]  ;;  %v2729_v60 = vld [vmem:[%s3288_s1 + $0x1e8] sm:$0xff]  ;;  %v2646_v13 = vld [vmem:[%s3288_s1 + $0x40] sm:$0xff] }
  0x1d   : > { %2783 = vmatpush.bf16.msra.mxu2 %v2636_v8  ;;  %856 = vmatpush.bf16.msra.mxu3 %v2675_v9  ;;  %v2647_v1 = vld [vmem:[%s3288_s1 + $0x48] sm:$0xff]  ;;  %v394_v8 = vshll.u32 %v2978_v57, 16  ;;  %v976_v9 = vrot.slane %v974_v59, 1  ;;  %v2659_v14 = vld [vmem:[%s3288_s1 + $0x80] sm:$0xff]  ;;  %v2718_v18 = vld [vmem:[%s3288_s1 + $0x1b8] sm:$0xff] }
  0x1e   : > { %v2660_v2 = vld [vmem:[%s3288_s1 + $0x88] sm:$0xff]  ;;  %v2685_v17 = vld [vmem:[%s3288_s1 + $0x100] sm:$0xff]  ;;  %v2714_v55 = vld [vmem:[%s3288_s1 + $0x198] sm:$0xff] }
  0x1f   : > { %v2686_v3 = vld [vmem:[%s3288_s1 + $0x108] sm:$0xff]  ;;  %v2715_v48 = vld [vmem:[%s3288_s1 + $0x1a0] sm:$0xff] }
  0x20   : > { %280 = vmatpush.bf16.msra.mxu0 %v2635_v10  ;;  %2784 = vmatpush.bf16.msra.mxu1 %v2635_v10  ;;  %v2998_v4 = vld [vmem:[%s2882_s18 + $0x8] sm:$0xff]  ;;  %v2702_v49 = vld [vmem:[%s3288_s1 + $0x160] sm:$0xff] }
  0x21   : > { %2785 = vmatpush.bf16.msra.mxu2 %v2635_v10  ;;  %857 = vmatpush.bf16.msra.mxu3 %v2674_v11  ;;  %v979_v10 = vrot.slane %v977_v61, 2  ;;  %v984_v11 = vrot.slane %v982_v62, 1  ;;  %v2742_v41 = vld [vmem:[%s3288_s1 + $0x228] sm:$0xff]  ;;  %v2741_v50 = vld [vmem:[%s3288_s1 + $0x220] sm:$0xff] }
  0x22   : > { %v3079_v56 = vld [vmem:[%s2882_s18 + $0x24] sm:$0xff]  ;;  %v2683_v61 = vld [vmem:[%s2882_s18 + $0x1c] sm:$0xff] }
  0x23   : > { %v795_v62 = vrot.slane %v3079_v56, 1 }
  0x24   : > { %281 = vmatpush.bf16.msra.mxu0 %v2634_v12  ;;  %2786 = vmatpush.bf16.msra.mxu1 %v2634_v12 }
  0x25   : > { %2787 = vmatpush.bf16.msra.mxu2 %v2634_v12  ;;  %858 = vmatpush.bf16.msra.mxu3 %v2673_v15  ;;  %v987_v12 = vrot.slane %v985_v63, 2  ;;  %v604_v15 = vrot.slane %v2169_v5, 1  ;;  %v2713_v63 = vld [vmem:[%s3288_s1 + $0x190] sm:$0xff]  ;;  %v1003_v5 = vshll.u32 %v2683_v61, 16 }
  0x28   : > { %282 = vmatpush.bf16.msra.mxu0 %v2633_v16  ;;  %2788 = vmatpush.bf16.msra.mxu1 %v2633_v16 }
  0x29   : > { %2789 = vmatpush.bf16.msra.mxu2 %v2633_v16  ;;  %859 = vmatpush.bf16.msra.mxu3 %v2672_v25  ;;  %v605_v16 = vrot.slane %v2998_v4, 1  ;;  %v3021_v25 = vld [vmem:[%s2882_s18 + $0x1c] sm:$0xff]  ;;  %v1000_v4 = vshrl.u32 %v2683_v61, 16 }
  0x2b   : > { %283 = vmatmul.bf16.vlgmr.msra.gmra.mxu0 %v2628_v22  ;;  %293 = vmatmul.bf16.vlgmr.msra.gmra.mxu1 %v2630_v23  ;;  %v980_v22 = vor.u32 %v979_v10, %v976_v9  ;;  %v988_v23 = vor.u32 %v987_v12, %v984_v11  ;;  %v606_v26 = vsel %vm603_vm0, %v604_v15, %v605_v16  ;;  %v742_v9 = vld [vmem:[%s2882_s18 + $0x2c] sm:$0x1]  ;;  %v3118_v11 = vld [vmem:[%s2882_s18 + $0x18] sm:$0xff]  ;;  %v1005_v15 = vrot.slane %v1003_v5, 2 }
  0x2c   : > { %483 = vmatpush.bf16.msrb.mxu1 %v2653_v19  ;;  %1079 = vmatpush.bf16.msrb.mxu0 %v2692_v21  ;;  %v2705_v19 = vld [vmem:[%s3288_s1 + $0x178] sm:$0xff]  ;;  %v396_v21 = vrot.slane %v394_v8, 1  ;;  %v2739_v8 = vld [vmem:[%s3288_s1 + $0x210] sm:$0xff]  ;;  %v2725_v10 = vld [vmem:[%s3288_s1 + $0x1c8] sm:$0xff] }
  0x2d   : > { %668 = vmatpush.bf16.msrb.mxu2 %v2666_v20  ;;  %1675 = vmatpush.bf16.msrb.mxu3 %v2731_v29  ;;  %v392_v20 = vor.u32 %v391_v7, %v387_v6  ;;  %v2717_v29 = vld [vmem:[%s3288_s1 + $0x1b0] sm:$0xff]  ;;  %v2712_v7 = vld [vmem:[%s3288_s1 + $0x188] sm:$0xff] }
  0x2e   : > { %303 = vmatmul.bf16.vlgmr.msra.gmra.mxu2 %v2632_v24  ;;  %860 = vmatmul.bf16.vlgmr.msra.gmra.mxu3 %v790_v32  ;;  %v2744_v24 = vld [vmem:[%s3288_s1 + $0x238] sm:$0xff]  ;;  %v793_v32 = vrot.slane %v3021_v25, 1 }
  0x2f   : > { %v397_v27 = vsel %vm385_vm1, %v392_v20, %v396_v21 }
  0x30   : > { %484 = vmatpush.bf16.msrb.mxu1 %v2652_v28  ;;  %1080 = vmatpush.bf16.msrb.mxu0 %v2691_v31  ;;  %v989_v28 = vsel %vm972_vm2, %v980_v22, %v988_v23  ;;  %v2682_v31 = vld [vmem:[%s2882_s18 + $0x14] sm:$0xff]  ;;  %v794_v40 = vsel %vm603_vm0, %v791_v51, %v793_v32  ;;  %v796_v6 = vsel %vm603_vm0, %v793_v32, %v795_v62 }
  0x31   : > { %669 = vmatpush.bf16.msrb.mxu2 %v2665_v30  ;;  %1676 = vmatpush.bf16.msrb.mxu3 %v2730_v34  ;;  %v2704_v30 = vld [vmem:[%s3288_s1 + $0x170] sm:$0xff]  ;;  %v2728_v34 = vld [vmem:[%s3288_s1 + $0x1e0] sm:$0xff] }
  0x34   : > { %485 = vmatpush.bf16.msrb.mxu1 %v2651_v33  ;;  %1081 = vmatpush.bf16.msrb.mxu0 %v2690_v36  ;;  %v2743_v33 = vld [vmem:[%s3288_s1 + $0x230] sm:$0xff]  ;;  %v991_v36 = vshrl.u32 %v2682_v31, 16 }
  0x35   : > { %670 = vmatpush.bf16.msrb.mxu2 %v2664_v35  ;;  %1677 = vmatpush.bf16.msrb.mxu3 %v2729_v60  ;;  %v3043_v35 = vld [vmem:[%s2882_s18 + $0x10] sm:$0xff] }
  0x36   : > { %v993_v42 = vrot.slane %v991_v36, 1  ;;  %v406_v12 = vshrl.u32 %v3043_v35, 16 }
  0x38   : > { %486 = vmatpush.bf16.msrb.mxu1 %v2650_v37  ;;  %1082 = vmatpush.bf16.msrb.mxu0 %v2689_v39  ;;  %v994_v37 = vshll.u32 %v2682_v31, 16  ;;  %v2703_v39 = vld [vmem:[%s3288_s1 + $0x168] sm:$0xff] }
  0x39   : > { %671 = vmatpush.bf16.msrb.mxu2 %v2663_v38  ;;  %v2716_v38 = vld [vmem:[%s3288_s1 + $0x1a8] sm:$0xff]  ;;  %1678 = vmatpush.bf16.msrb.mxu3 %v2728_v34 }
  0x3a   : > { %v2738_v34 = vld [vmem:[%s3288_s1 + $0x208] sm:$0xff] }
  0x3b   : > { %288 = vmatmul.bf16.gmra.mxu0 %v2629_v46  ;;  %298 = vmatmul.bf16.gmra.mxu1 %v2631_v47  ;;  %v402_v46 = vshll.u32 %v3043_v35, 16  ;;  %v996_v47 = vrot.slane %v994_v37, 2  ;;  %v2724_v35 = vld [vmem:[%s3288_s1 + $0x1c0] sm:$0xff] }
  0x3c   : > { %487 = vmatpush.bf16.msrb.mxu1 %v2649_v43  ;;  %1083 = vmatpush.bf16.msrb.mxu0 %v2688_v45  ;;  %v2727_v43 = vld [vmem:[%s3288_s1 + $0x1d8] sm:$0xff]  ;;  %v398_v45 = vshrl.u32 %v2978_v57, 16  ;;  %v2698_v37 = vld [vmem:[%s3288_s1 + $0x140] sm:$0xff] }
  0x3d   : > { %672 = vmatpush.bf16.msrb.mxu2 %v2662_v44  ;;  %v3061_v44 = vld [vmem:[%s2882_s18 + $0x10] sm:$0xff]  ;;  %1679 = vmatpush.bf16.msrb.mxu3 %v2727_v43  ;;  %v2701_v57 = vld [vmem:[%s3288_s1 + $0x158] sm:$0xff] }
  0x3e   : > { %865 = vmatmul.bf16.gmra.mxu3 %v792_v0  ;;  %v607_v51 = vrot.slane %v3061_v44, 1  ;;  %v2740_v0 = vld [vmem:[%s3288_s1 + $0x218] sm:$0xff] }
  0x40   : > { %488 = vmatpush.bf16.msrb.mxu1 %v2648_v52  ;;  %1084 = vmatpush.bf16.msrb.mxu0 %v2687_v54  ;;  %v400_v52 = vor.u32 %v398_v45, %v396_v21  ;;  %v997_v54 = vor.u32 %v996_v47, %v993_v42  ;;  %v608_v58 = vsel %vm603_vm0, %v605_v16, %v607_v51  ;;  %v781_v16 = vunpack.c.l.b16 %v742_v9 }
  0x41   : > { %673 = vmatpush.bf16.msrb.mxu2 %v2661_v53  ;;  %v404_v53 = vrot.slane %v402_v46, 1  ;;  %v926_v46 = vld [vmem:[%s2882_s18 + $0x2c] sm:$0x3] }
  0x42   : > { %v998_v60 = vsel %vm972_vm2, %v988_v23, %v997_v54  ;;  %v787_v21 = vpack.c.b16 %v781_v16, %v781_v16  ;;  %v2684_v23 = vld [vmem:[%s2882_s18 + $0x24] sm:$0xff] }
  0x43   : > { %v405_v59 = vsel %vm385_vm1, %v400_v52, %v404_v53  ;;  %v1009_v31 = vshrl.u32 %v2684_v23, 16  ;;  %v1012_v32 = vshll.u32 %v2684_v23, 16 }
  0x44   : > { %489 = vmatpush.bf16.msrb.mxu1 %v2647_v1  ;;  %1085 = vmatpush.bf16.msrb.mxu0 %v2686_v3  ;;  %v2726_v1 = vld [vmem:[%s3288_s1 + $0x1d0] sm:$0xff]  ;;  %v3104_v3 = vld [vmem:[%s2882_s18 + $0x18] sm:$0xff] }
  0x45   : > { %674 = vmatpush.bf16.msrb.mxu2 %v2660_v2  ;;  %v2700_v2 = vld [vmem:[%s3288_s1 + $0x150] sm:$0xff]  ;;  %1680 = vmatpush.bf16.msrb.mxu3 %v2726_v1  ;;  %v1011_v44 = vrot.slane %v1009_v31, 1  ;;  %v1014_v45 = vrot.slane %v1012_v32, 2  ;;  %v2693_v31 = vld [vmem:[%s2882_s18 + $0x4] sm:$0xf0] }
  0x48   : > { %490 = vmatpush.bf16.msrb.mxu1 %v2646_v13  ;;  %1086 = vmatpush.bf16.msrb.mxu0 %v2685_v17  ;;  %v410_v13 = vshll.u32 %v3104_v3, 16  ;;  %v609_v17 = vrot.slane %v3118_v11, 1 }
  0x49   : > { %675 = vmatpush.bf16.msrb.mxu2 %v2659_v14  ;;  %v1002_v14 = vrot.slane %v1000_v4, 1  ;;  %1681 = vmatpush.bf16.msrb.mxu3 %v2725_v10  ;;  %v2721_v10 = vld [vmem:[%s2882_s18 + $0x18] sm:$0xff] }
  0x4a   : > { %v610_v22 = vsel %vm603_vm0, %v607_v51, %v609_v17  ;;  %v1587_v16 = vshrl.u32 %v2721_v10, 16 }
  0x4b   : > { %491 = vmatmul.bf16.vlgmr.msrb.gmra.mxu1 %v397_v27  ;;  %1087 = vmatmul.bf16.vlgmr.msrb.gmra.mxu0 %v989_v28  ;;  %v1006_v20 = vor.u32 %v1005_v15, %v1002_v14  ;;  %v2699_v27 = vld [vmem:[%s3288_s1 + $0x148] sm:$0xff] }
  0x4c   : > { %1264 = vmatpush.bf16.msra.mxu1 %v2705_v19  ;;  %1860 = vmatpush.bf16.msra.mxu0 %v2744_v24  ;;  %v412_v19 = vrot.slane %v410_v13, 1  ;;  %v2508_v28 = vld [vmem:[%s2882_s18 + $0x8] sm:$0xc] }
  0x4d   : > { %1448 = vmatpush.bf16.msra.mxu2 %v2718_v18  ;;  %v408_v18 = vor.u32 %v406_v12, %v404_v53  ;;  %v1007_v25 = vsel %vm972_vm2, %v997_v54, %v1006_v20  ;;  %1682 = vmatpush.bf16.msrb.mxu3 %v2724_v35  ;;  %v1015_v53 = vor.u32 %v1014_v45, %v1011_v44  ;;  %v965_v54 = vunpack.c.l.b16 %v926_v46  ;;  %v2732_v35 = vld [vmem:[%s2882_s18 + $0x8] sm:$0xf0] }
  0x4e   : > { %676 = vmatmul.bf16.vlgmr.msrb.gmra.mxu2 %v606_v26  ;;  %870 = vmatmul.bf16.gmra.mxu3 %v794_v40  ;;  %v797_v26 = vrot.slane %v787_v21, 1  ;;  %v2658_v40 = vld [vmem:[%s2882_s18 + $0x20] sm:$0xff] }
  0x4f   : > { %v413_v24 = vsel %vm385_vm1, %v408_v18, %v412_v19  ;;  %v1016_v1 = vsel %vm972_vm2, %v1006_v20, %v1015_v53 }
  0x50   : > { %1265 = vmatpush.bf16.msra.mxu1 %v2704_v30  ;;  %1861 = vmatpush.bf16.msra.mxu0 %v2743_v33  ;;  %v3133_v30 = vld [vmem:[%s2882_s18 + $0x20] sm:$0xff]  ;;  %v798_v36 = vsel %vm603_vm0, %v795_v62, %v797_v26  ;;  %v557_v62 = vld [vmem:[%s2882_s18 + $0x28] sm:$0x1] }
  0x51   : > { %1449 = vmatpush.bf16.msra.mxu2 %v2717_v29  ;;  %v2719_v29 = vld [vmem:[%s2882_s18 + $0x8] sm:$0xf0]  ;;  %v2711_v33 = vld [vmem:[%s3288_s1 + $0x180] sm:$0xff]  ;;  %v418_v43 = vshll.u32 %v3133_v30, 16  ;;  %v596_v5 = vunpack.c.l.b16 %v557_v62  ;;  %v422_v12 = vshrl.u32 %v3133_v30, 16 }
  0x52   : > { %v2372_v30 = vld [vmem:[%s2882_s18 + $0x4] sm:$0xc] }
  0x53   : > { %v420_v52 = vrot.slane %v418_v43, 1  ;;  %v602_v11 = vpack.c.b16 %v596_v5, %v596_v5  ;;  %v1522_v5 = vld [vmem:[%s2882_s18 + $0x30] sm:$0x7] }
  0x54   : > { %1266 = vmatpush.bf16.msra.mxu1 %v2703_v39  ;;  %1862 = vmatpush.bf16.msra.mxu0 %v2742_v41  ;;  %v2509_v39 = vor.u32 %v2719_v29, %v2508_v28  ;;  %v414_v41 = vshrl.u32 %v3104_v3, 16  ;;  %v2440_v28 = vld [vmem:[%s2882_s18 + $0x8] sm:$0xc]  ;;  %v2706_v29 = vld [vmem:[%s2882_s18 + $0x8] sm:$0xf0] }
  0x55   : > { %1450 = vmatpush.bf16.msra.mxu2 %v2716_v38  ;;  %v2720_v38 = vld [vmem:[%s2882_s18 + $0x10] sm:$0xff]  ;;  %v613_v18 = vrot.slane %v602_v11, 1  ;;  %v1561_v11 = vunpack.c.l.b16 %v1522_v5 }
  0x56   : > { %v1570_v42 = vshrl.u32 %v2509_v39, 16  ;;  %v1573_v47 = vshll.u32 %v2509_v39, 16  ;;  %v416_v51 = vor.u32 %v414_v41, %v412_v19  ;;  %v424_v19 = vor.u32 %v422_v12, %v420_v52 }
  0x57   : > { %v2373_v39 = vor.u32 %v2693_v31, %v2372_v30 }
  0x58   : > { %1267 = vmatpush.bf16.msra.mxu1 %v2702_v49  ;;  %1863 = vmatpush.bf16.msra.mxu0 %v2741_v50  ;;  %v1581_v49 = vshll.u32 %v2720_v38, 16  ;;  %v611_v50 = vrot.slane %v2658_v40, 1  ;;  %v1572_v56 = vrot.slane %v1570_v42, 2  ;;  %v421_v61 = vsel %vm385_vm1, %v416_v51, %v420_v52  ;;  %v2733_v40 = vld [vmem:[%s2882_s18 + $0x10] sm:$0xff] }
  0x59   : > { %1451 = vmatpush.bf16.msra.mxu2 %v2715_v48  ;;  %v1578_v48 = vshrl.u32 %v2720_v38, 16  ;;  %v2694_v38 = vld [vmem:[%s2882_s18 + $0xc] sm:$0xff]  ;;  %v1200_v42 = vrot.slane %v2373_v39, 2  ;;  %v2697_v39 = vld [vmem:[%s2882_s18 + $0x24] sm:$0xff] }
  0x5b   : > { %496 = vmatmul.bf16.gmra.mxu1 %v405_v59  ;;  %1092 = vmatmul.bf16.gmra.mxu0 %v998_v60  ;;  %v1583_v59 = vrot.slane %v1581_v49, 3  ;;  %v612_v60 = vsel %vm603_vm0, %v609_v17, %v611_v50  ;;  %v1590_v17 = vshll.u32 %v2721_v10, 16  ;;  %v1797_v49 = vrot.slane %v2733_v40, 3  ;;  %v2736_v40 = vld [vmem:[%s2882_s18 + $0x28] sm:$0xff] }
  0x5c   : > { %1268 = vmatpush.bf16.msra.mxu1 %v2701_v57  ;;  %1864 = vmatpush.bf16.msra.mxu0 %v2740_v0  ;;  %v1575_v57 = vrot.slane %v1573_v47, 3  ;;  %v2737_v0 = vld [vmem:[%s3288_s1 + $0x200] sm:$0xff]  ;;  %v1201_v47 = vrot.slane %v2694_v38, 2 }
  0x5d   : > { %1452 = vmatpush.bf16.msra.mxu2 %v2714_v55  ;;  %v339_v55 = vld [vmem:[%s2882_s18 + $0x28] sm:$0x1]  ;;  %v1592_v23 = vrot.slane %v1590_v17, 3  ;;  %v2696_v17 = vld [vmem:[%s2882_s18 + $0x1c] sm:$0xff] }
  0x5e   : > { %681 = vmatmul.bf16.gmra.mxu2 %v608_v58  ;;  %875 = vmatmul.bf16.gmra.mxu3 %v796_v6  ;;  %v1580_v58 = vrot.slane %v1578_v48, 2  ;;  %v1576_v3 = vor.u32 %v1575_v57, %v1572_v56  ;;  %v2723_v57 = vld [vmem:[%s2882_s18 + $0x28] sm:$0xff] }
  0x5f   : > { %v1608_v62 = vshll.u32 %v2723_v57, 16 }
  0x60   : > { %1269 = vmatpush.bf16.msra.mxu1 %v2700_v2  ;;  %1865 = vmatpush.bf16.msra.mxu0 %v2739_v8  ;;  %v971_v2 = vpack.c.b16 %v965_v54, %v965_v54  ;;  %v1584_v4 = vor.u32 %v1583_v59, %v1580_v58  ;;  %v2708_v58 = vld [vmem:[%s2882_s18 + $0x18] sm:$0xff] }
  0x61   : > { %1453 = vmatpush.bf16.msra.mxu2 %v2713_v63  ;;  %v378_v63 = vunpack.c.l.b16 %v339_v55  ;;  %v2695_v59 = vld [vmem:[%s2882_s18 + $0x14] sm:$0xff] }
  0x62   : > { %v1021_v8 = vshll.u32 %v971_v2, 16  ;;  %v1585_v9 = vsel %vm1568_vm3, %v1576_v3, %v1584_v4  ;;  %v1610_v3 = vrot.slane %v1608_v62, 3 }
  0x63   : > { %v384_v6 = vpack.c.b16 %v378_v63, %v378_v63  ;;  %v1387_v63 = vrot.slane %v2708_v58, 2 }
  0x64   : > { %1270 = vmatpush.bf16.msra.mxu1 %v2699_v27  ;;  %1866 = vmatpush.bf16.msra.mxu0 %v2738_v34  ;;  %v1023_v15 = vrot.slane %v1021_v8, 2  ;;  %v2576_v34 = vld [vmem:[%s2882_s18 + $0x8] sm:$0x8] }
  0x65   : > { %1454 = vmatpush.bf16.msra.mxu2 %v2712_v7  ;;  %v1018_v7 = vshrl.u32 %v971_v2, 16  ;;  %v426_v13 = vshll.u32 %v384_v6, 16  ;;  %v2577_v41 = vor.u32 %v2732_v35, %v2576_v34 }
  0x67   : > { %v1020_v14 = vrot.slane %v1018_v7, 1  ;;  %v428_v20 = vrot.slane %v426_v13, 1  ;;  %v1796_v48 = vrot.slane %v2577_v41, 3  ;;  %v1567_v13 = vpack.c.b16 %v1561_v11, %v1561_v11 }
  0x68   : > { %1271 = vmatpush.bf16.msra.mxu1 %v2698_v37  ;;  %1867 = vmatpush.bf16.msra.mxu0 %v2737_v0  ;;  %v2441_v37 = vor.u32 %v2706_v29, %v2440_v28  ;;  %v1203_v0 = vrot.slane %v2695_v59, 2 }
  0x69   : > { %1455 = vmatpush.bf16.msra.mxu2 %v2711_v33  ;;  %v1024_v21 = vor.u32 %v1023_v15, %v1020_v14  ;;  %v2722_v33 = vld [vmem:[%s2882_s18 + $0x20] sm:$0xff]  ;;  %v1798_v54 = vsel %vm1795_vm5, %v1796_v48, %v1797_v49 }
  0x6a   : > { %v1596_v43 = vshrl.u32 %v2722_v33, 16  ;;  %v1599_v44 = vshll.u32 %v2722_v33, 16  ;;  %v1384_v45 = vrot.slane %v2441_v37, 2  ;;  %v1204_v8 = vsel %vm1199_vm4, %v1201_v47, %v1203_v0  ;;  %v2709_v14 = vld [vmem:[%s2882_s18 + $0x20] sm:$0xff] }
  0x6b   : > { %501 = vmatmul.bf16.gmra.mxu1 %v413_v24  ;;  %1097 = vmatmul.bf16.gmra.mxu0 %v1007_v25  ;;  %v614_v24 = vsel %vm603_vm0, %v611_v50, %v613_v18  ;;  %v429_v25 = vsel %vm385_vm1, %v424_v19, %v428_v20  ;;  %v1025_v26 = vsel %vm972_vm2, %v1015_v53, %v1024_v21  ;;  %v2735_v18 = vld [vmem:[%s2882_s18 + $0x20] sm:$0xff]  ;;  %v1614_v19 = vshrl.u32 %v1567_v13, 16 }
  0x6c   : > { %v1598_v50 = vrot.slane %v1596_v43, 2  ;;  %v1601_v51 = vrot.slane %v1599_v44, 3  ;;  %v1202_v53 = vsel %vm1199_vm4, %v1200_v42, %v1201_v47  ;;  %v1617_v20 = vshll.u32 %v1567_v13, 16  ;;  %v1338_v47 = vld [vmem:[%s2882_s18 + $0x30] sm:$0x3] }
  0x6d   : > { %v1389_v21 = vrot.slane %v2709_v14, 2 }
  0x6e   : > { %686 = vmatmul.bf16.gmra.mxu2 %v610_v22  ;;  %880 = vmatmul.bf16.gmra.mxu3 %v798_v36  ;;  %v1589_v22 = vrot.slane %v1587_v16, 2  ;;  %v2707_v36 = vld [vmem:[%s2882_s18 + $0x10] sm:$0xff]  ;;  %v1602_v55 = vor.u32 %v1601_v51, %v1598_v50 }
  0x6f   : > { %v1385_v46 = vrot.slane %v2707_v36, 2  ;;  %v2710_v36 = vld [vmem:[%s2882_s18 + $0x28] sm:$0xff] }
  0x70   : > { %v1593_v27 = vor.u32 %v1592_v23, %v1589_v22  ;;  %v1205_v23 = vrot.slane %v2696_v17, 2  ;;  %v1391_v41 = vrot.slane %v2710_v36, 2 }
  0x71   : > { %v1386_v52 = vsel %vm1199_vm4, %v1384_v45, %v1385_v46  ;;  %v1207_v45 = vrot.slane %v2697_v39, 2 }
  0x72   : > { %v1594_v32 = vsel %vm1568_vm3, %v1584_v4, %v1593_v27  ;;  %v1603_v56 = vsel %vm1568_vm3, %v1593_v27, %v1602_v55  ;;  %v1388_v4 = vsel %vm1199_vm4, %v1385_v46, %v1387_v63  ;;  %v1390_v27 = vsel %vm1199_vm4, %v1387_v63, %v1389_v21 }
  0x73   : > { %v1206_v30 = vsel %vm1199_vm4, %v1203_v0, %v1205_v23  ;;  %v1803_v46 = vrot.slane %v2736_v40, 3  ;;  %v1392_v42 = vsel %vm1199_vm4, %v1389_v21, %v1391_v41  ;;  %v1208_v50 = vsel %vm1199_vm4, %v1205_v23, %v1207_v45 }
  0x7b   : > { %506 = vmatmul.bf16.gmra.mxu1 %v421_v61  ;;  %1102 = vmatmul.bf16.gmra.mxu0 %v1016_v1  ;;  %v1605_v61 = vshrl.u32 %v2723_v57, 16 }
  0x7d   : > { %v1607_v2 = vrot.slane %v1605_v61, 2 }
  0x7e   : > { %691 = vmatmul.bf16.gmra.mxu2 %v612_v60  ;;  %1683 = vmatmul.bf16.vlgmr.msrb.gmra.mxu3 %v1585_v9  ;;  %v2734_v60 = vld [vmem:[%s2882_s18 + $0x18] sm:$0xff] }
  0x7f   : > { %v1799_v1 = vrot.slane %v2734_v60, 3  ;;  %v1611_v10 = vor.u32 %v1610_v3, %v1607_v2 }
  0x81   : > { %v1800_v9 = vsel %vm1795_vm5, %v1797_v49, %v1799_v1  ;;  %v1612_v12 = vsel %vm1568_vm3, %v1602_v55, %v1611_v10  ;;  %v1377_v55 = vunpack.c.l.b16 %v1338_v47 }
  0x83   : > { %v1383_v61 = vpack.c.b16 %v1377_v55, %v1377_v55 }
  0x85   : > { %v1393_v5 = vrot.slane %v1383_v61, 2 }
  0x8b   : > { %511 = vmatmul.bf16.gmra.mxu1 %v429_v25  ;;  %1107 = vmatmul.bf16.gmra.mxu0 %v1025_v26  ;;  %v1616_v25 = vrot.slane %v1614_v19, 2  ;;  %v1619_v26 = vrot.slane %v1617_v20, 3 }
  0x8e   : > { %696 = vmatmul.bf16.gmra.mxu2 %v614_v24  ;;  %1688 = vmatmul.bf16.gmra.mxu3 %v1594_v32  ;;  %v1801_v24 = vrot.slane %v2735_v18, 3  ;;  %v1620_v32 = vor.u32 %v1619_v26, %v1616_v25 }
  0x90   : > { %v1802_v31 = vsel %vm1795_vm5, %v1799_v1, %v1801_v24  ;;  %v1621_v35 = vsel %vm1568_vm3, %v1611_v10, %v1620_v32  ;;  %v1804_v51 = vsel %vm1795_vm5, %v1801_v24, %v1803_v46 }
  0x9b   : > { %1272 = vmatmul.bf16.vlgmr.msra.gmra.mxu1 %v1202_v53  ;;  %1868 = vmatmul.bf16.vlgmr.msra.gmra.mxu0 %v1798_v54  ;;  %v1153_v53 = vld [vmem:[%s2882_s18 + $0x2c] sm:$0x3]  ;;  %v1749_v54 = vld [vmem:[%s2882_s18 + $0x30] sm:$0x7] }
  0x9c   : > { %v1192_v58 = vunpack.c.l.b16 %v1153_v53  ;;  %v1788_v59 = vunpack.c.l.b16 %v1749_v54 }
  0x9e   : > { %1456 = vmatmul.bf16.vlgmr.msra.gmra.mxu2 %v1386_v52  ;;  %1693 = vmatmul.bf16.gmra.mxu3 %v1603_v56  ;;  %v1198_v1 = vpack.c.b16 %v1192_v58, %v1192_v58  ;;  %v1794_v2 = vpack.c.b16 %v1788_v59, %v1788_v59 }
  0xa0   : > { %v1805_v10 = vrot.slane %v1794_v2, 3 }
  0xa2   : > { %v1806_v19 = vsel %vm1795_vm5, %v1803_v46, %v1805_v10 }
  0xa8   : > { %v284_v6 = vpop.f32.mrf.mxu0  ;;  %v3188_v7 = vpop.f32.mrf.mxu1 }
  0xab   : > { %1277 = vmatmul.bf16.gmra.mxu1 %v1204_v8  ;;  %1873 = vmatmul.bf16.gmra.mxu0 %v1800_v9  ;;  %v1209_v9 = vrot.slane %v1198_v1, 2 }
  0xad   : > { %v1210_v18 = vsel %vm1199_vm4, %v1207_v45, %v1209_v9 }
  0xae   : > { %1461 = vmatmul.bf16.gmra.mxu2 %v1388_v4  ;;  %1698 = vmatmul.bf16.gmra.mxu3 %v1612_v12  ;;  %v1394_v12 = vsel %vm1199_vm4, %v1391_v41, %v1393_v5 }
  0xb0   : > { %v286_v15 = vpop.f32.mrf.mxu0  ;;  %v3194_v16 = vpop.f32.mrf.mxu1 }
  0xb1   : > { %v861_v22 = vpop.f32.mrf.mxu3  ;;  %v3203_v33 = vpop.f32.mrf.mxu2 }
  0xb8   : > { %v289_v28 = vpop.f32.mrf.mxu0  ;;  %v3199_v29 = vpop.f32.mrf.mxu1 }
  0xb9   : > { %v863_v34 = vpop.f32.mrf.mxu3  ;;  %v3211_v44 = vpop.f32.mrf.mxu2 }
  0xbb   : > { %1282 = vmatmul.bf16.gmra.mxu1 %v1206_v30  ;;  %1878 = vmatmul.bf16.gmra.mxu0 %v1802_v31 }
  0xbe   : > { %1466 = vmatmul.bf16.gmra.mxu2 %v1390_v27  ;;  %1703 = vmatmul.bf16.gmra.mxu3 %v1621_v35 }
  0xc0   : > { %v291_v37 = vpop.f32.mrf.mxu0  ;;  %v3207_v38 = vpop.f32.mrf.mxu1 }
  0xc1   : > { %v866_v43 = vpop.f32.mrf.mxu3 }
  0xc8   : > { %v492_v48 = vpop.f32.mrf.mxu1  ;;  %v1088_v49 = vpop.f32.mrf.mxu0 }
  0xc9   : > { %v517_v52 = vadd.f32 %v492_v48, %v284_v6  ;;  %v868_v56 = vpop.f32.mrf.mxu3 }
  0xcb   : > { %1287 = vmatmul.bf16.gmra.mxu1 %v1208_v50  ;;  %1883 = vmatmul.bf16.gmra.mxu0 %v1804_v51 }
  0xce   : > { %1471 = vmatmul.bf16.gmra.mxu2 %v1392_v42 }
  0xd0   : > { %v494_v63 = vpop.f32.mrf.mxu1  ;;  %v1090_v0 = vpop.f32.mrf.mxu0 }
  0xd1   : > { %v677_v57 = vpop.f32.mrf.mxu2  ;;  %v518_v3 = vadd.f32 %v494_v63, %v286_v15  ;;  %v871_v6 = vpop.f32.mrf.mxu3 }
  0xd2   : > { %v702_v60 = vadd.f32 %v677_v57, %v517_v52 }
  0xd4   : > { %v886_v62 = vadd.f32 %v861_v22, %v702_v60 }
  0xd6   : > { %v3219_v4 = vadd.f32 %v1088_v49, %v886_v62 }
  0xd8   : > { %v497_v14 = vpop.f32.mrf.mxu1  ;;  %v1093_v17 = vpop.f32.mrf.mxu0 }
  0xd9   : > { %v679_v8 = vpop.f32.mrf.mxu2  ;;  %v519_v20 = vadd.f32 %v497_v14, %v289_v28  ;;  %v873_v21 = vpop.f32.mrf.mxu3 }
  0xda   : > { %v703_v11 = vadd.f32 %v679_v8, %v518_v3 }
  0xdb   : > { %1292 = vmatmul.bf16.gmra.mxu1 %v1210_v18  ;;  %1888 = vmatmul.bf16.gmra.mxu0 %v1806_v19 }
  0xdc   : > { %v887_v13 = vadd.f32 %v863_v34, %v703_v11 }
  0xde   : > { %1476 = vmatmul.bf16.gmra.mxu2 %v1394_v12  ;;  %v3224_v15 = vadd.f32 %v1090_v0, %v887_v13 }
  0xe0   : > { %v499_v25 = vpop.f32.mrf.mxu1  ;;  %v1095_v26 = vpop.f32.mrf.mxu0 }
  0xe1   : > { %v682_v22 = vpop.f32.mrf.mxu2  ;;  %v520_v27 = vadd.f32 %v499_v25, %v291_v37  ;;  %v876_v31 = vpop.f32.mrf.mxu3 }
  0xe2   : > { %v704_v23 = vadd.f32 %v682_v22, %v519_v20 }
  0xe4   : > { %v888_v24 = vadd.f32 %v866_v43, %v704_v23 }
  0xe6   : > { %v3226_v30 = vadd.f32 %v1093_v17, %v888_v24 }
  0xe8   : > { %v502_v36 = vpop.f32.mrf.mxu1  ;;  %v1098_v28 = vpop.f32.mrf.mxu0 }
  0xe9   : > { %v684_v32 = vpop.f32.mrf.mxu2  ;;  %v521_v39 = vadd.f32 %v502_v36, %v3188_v7  ;;  %v878_v46 = vpop.f32.mrf.mxu3 }
  0xea   : > { %v705_v34 = vadd.f32 %v684_v32, %v520_v27 }
  0xec   : > { %v889_v35 = vadd.f32 %v868_v56, %v705_v34 }
  0xee   : > { %v3229_v40 = vadd.f32 %v1095_v26, %v889_v35  ;;  %v3253_v35 = vld [vmem:[%s3289_s2] ss:$0 sm:$0xff] }
  0xf0   : > { %v504_v43 = vpop.f32.mrf.mxu1  ;;  %v1100_v47 = vpop.f32.mrf.mxu0 }
  0xf1   : > { %v687_v41 = vpop.f32.mrf.mxu2  ;;  %v522_v37 = vadd.f32 %v504_v43, %v3194_v16  ;;  %v881_v52 = vpop.f32.mrf.mxu3 }
  0xf2   : > { %v706_v45 = vadd.f32 %v687_v41, %v521_v39 }
  0xf4   : > { %v890_v42 = vadd.f32 %v871_v6, %v706_v45 }
  0xf6   : > { %v3232_v48 = vadd.f32 %v1098_v28, %v890_v42 }
  0xf8   : > { %v507_v53 = vpop.f32.mrf.mxu1  ;;  %v1103_v54 = vpop.f32.mrf.mxu0 }
  0xf9   : > { %v689_v49 = vpop.f32.mrf.mxu2  ;;  %v523_v7 = vadd.f32 %v507_v53, %v3199_v29  ;;  %v883_v16 = vpop.f32.mrf.mxu3 }
  0xfa   : > { %v707_v50 = vadd.f32 %v689_v49, %v522_v37 }
  0xfc   : > { %v891_v51 = vadd.f32 %v873_v21, %v707_v50 }
  0xfe   : > { %v3235_v55 = vadd.f32 %v1100_v47, %v891_v51 }
 0x100   : > { %v509_v59 = vpop.f32.mrf.mxu1  ;;  %v1105_v60 = vpop.f32.mrf.mxu0 }
 0x101   : > { %v692_v56 = vpop.f32.mrf.mxu2  ;;  %v524_v61 = vadd.f32 %v509_v59, %v3207_v38  ;;  %v1684_v6 = vpop.f32.mrf.mxu3 }
 0x102   : > { %v708_v57 = vadd.f32 %v692_v56, %v523_v7 }
 0x104   : > { %v892_v58 = vadd.f32 %v876_v31, %v708_v57 }
 0x106   : > { %v3238_v62 = vadd.f32 %v1103_v54, %v892_v58 }
 0x108   : > { %v512_v2 = vpop.f32.mrf.mxu1  ;;  %v1108_v3 = vpop.f32.mrf.mxu0 }
 0x109   : > { %v694_v63 = vpop.f32.mrf.mxu2  ;;  %v525_v5 = vadd.f32 %v512_v2, %v3203_v33  ;;  %v1686_v18 = vpop.f32.mrf.mxu3 }
 0x10a   : > { %v709_v0 = vadd.f32 %v694_v63, %v524_v61 }
 0x10c   : > { %v893_v1 = vadd.f32 %v878_v46, %v709_v0 }
 0x10e   : > { %v3241_v29 = vadd.f32 %v1105_v60, %v893_v1 }
 0x110   : > { %v514_v11 = vpop.f32.mrf.mxu1  ;;  %v1110_v12 = vpop.f32.mrf.mxu0 }
 0x111   : > { %v697_v8 = vpop.f32.mrf.mxu2  ;;  %v526_v38 = vadd.f32 %v514_v11, %v3211_v44  ;;  %v1689_v25 = vpop.f32.mrf.mxu3 }
 0x112   : > { %v710_v9 = vadd.f32 %v697_v8, %v525_v5 }
 0x114   : > { %v894_v10 = vadd.f32 %v881_v52, %v710_v9 }
 0x116   : > { %v3244_v13 = vadd.f32 %v1108_v3, %v894_v10 }
 0x118   : > { %v1273_v20 = vpop.f32.mrf.mxu1  ;;  %v1869_v21 = vpop.f32.mrf.mxu0 }
 0x119   : > { %v699_v14 = vpop.f32.mrf.mxu2  ;;  %v1298_v33 = vadd.f32 %v1273_v20, %v3219_v4  ;;  %v1691_v42 = vpop.f32.mrf.mxu3 }
 0x11a   : > { %v711_v17 = vadd.f32 %v699_v14, %v526_v38 }
 0x11c   : > { %v895_v19 = vadd.f32 %v883_v16, %v711_v17 }
 0x11e   : > { %v3247_v22 = vadd.f32 %v1110_v12, %v895_v19 }
 0x120   : > { %v1275_v26 = vpop.f32.mrf.mxu1  ;;  %v1871_v27 = vpop.f32.mrf.mxu0 }
 0x121   : > { %v1457_v23 = vpop.f32.mrf.mxu2  ;;  %v1299_v44 = vadd.f32 %v1275_v26, %v3224_v15  ;;  %v1694_v7 = vpop.f32.mrf.mxu3 }
 0x122   : > { %v1482_v24 = vadd.f32 %v1457_v23, %v1298_v33 }
 0x124   : > { %v1709_v31 = vadd.f32 %v1684_v6, %v1482_v24 }
 0x126   : > { %v1894_v34 = vadd.f32 %v1869_v21, %v1709_v31 }
 0x128   : > { %v1278_v28 = vpop.f32.mrf.mxu1  ;;  %v1874_v39 = vpop.f32.mrf.mxu0  ;;  %v1928_v41 = vadd.f32 %v3253_v35, %v1894_v34 }
 0x129   : > { %v1459_v32 = vpop.f32.mrf.mxu2  ;;  %v1300_v46 = vadd.f32 %v1278_v28, %v3226_v30 }
 0x12a   : > { %v1483_v36 = vadd.f32 %v1459_v32, %v1299_v44  ;;  %v1938_v47 = vmax.f32 %v1928_v41, 0.0 }
 0x12c   : > { %v1710_v4 = vadd.f32 %v1686_v18, %v1483_v36 }
 0x12e   : > { %v1895_v45 = vadd.f32 %v1871_v27, %v1710_v4 }
 0x130   : > { %v1929_v15 = vadd.f32 %v3253_v35, %v1895_v45  ;;  %v1280_v51 = vpop.f32.mrf.mxu1  ;;  %v1876_v52 = vpop.f32.mrf.mxu0 }
 0x131   : > { %v1462_v43 = vpop.f32.mrf.mxu2  ;;  %v1301_v30 = vadd.f32 %v1280_v51, %v3229_v40  ;;  %v1696_v40 = vpop.f32.mrf.mxu3 }
 0x132   : > { %v1939_v37 = vmax.f32 %v1929_v15, 0.0  ;;  %v1484_v49 = vadd.f32 %v1462_v43, %v1300_v46 }
 0x134   : > { %v2748_v50 = vpack.c.bf16 %v1939_v37, %v1938_v47  ;;  %v1711_v53 = vadd.f32 %v1689_v25, %v1484_v49 }
 0x136   : > { %2749 = vst [vmem:[%s3262_s21] sm:$0xff] %v2748_v50   ;;  %v1896_v56 = vadd.f32 %v1874_v39, %v1711_v53 }
 0x138   : > { %v1283_v59 = vpop.f32.mrf.mxu1  ;;  %v1879_v60 = vpop.f32.mrf.mxu0  ;;  %v1930_v61 = vadd.f32 %v3253_v35, %v1896_v56 }
 0x139   : > { %v1464_v54 = vpop.f32.mrf.mxu2  ;;  %v1302_v63 = vadd.f32 %v1283_v59, %v3232_v48  ;;  %v1699_v48 = vpop.f32.mrf.mxu3 }
 0x13a   : > { %v1485_v57 = vadd.f32 %v1464_v54, %v1301_v30  ;;  %v1940_v2 = vmax.f32 %v1930_v61, 0.0 }
 0x13c   : > { %v1712_v58 = vadd.f32 %v1691_v42, %v1485_v57 }
 0x13e   : > { %v1897_v16 = vadd.f32 %v1876_v52, %v1712_v58 }
 0x140   : > { %v1931_v0 = vadd.f32 %v3253_v35, %v1897_v16  ;;  %v1285_v8 = vpop.f32.mrf.mxu1  ;;  %v1881_v9 = vpop.f32.mrf.mxu0 }
 0x141   : > { %v1467_v1 = vpop.f32.mrf.mxu2  ;;  %v1303_v11 = vadd.f32 %v1285_v8, %v3235_v55  ;;  %v1701_v34 = vpop.f32.mrf.mxu3 }
 0x142   : > { %v1941_v3 = vmax.f32 %v1931_v0, 0.0  ;;  %v1486_v5 = vadd.f32 %v1467_v1, %v1302_v63 }
 0x144   : > { %v2753_v6 = vpack.c.bf16 %v1941_v3, %v1940_v2  ;;  %v1713_v10 = vadd.f32 %v1694_v7, %v1486_v5 }
 0x146   : > { %2770 = vst [vmem:[%s3262_s21 + $0x8] sm:$0xff] %v2753_v6   ;;  %v1898_v38 = vadd.f32 %v1879_v60, %v1713_v10 }
 0x148   : > { %v1288_v18 = vpop.f32.mrf.mxu1  ;;  %v1932_v19 = vadd.f32 %v3253_v35, %v1898_v38  ;;  %v1884_v33 = vpop.f32.mrf.mxu0 }
 0x149   : > { %v1469_v12 = vpop.f32.mrf.mxu2  ;;  %v1304_v21 = vadd.f32 %v1288_v18, %v3238_v62  ;;  %v1704_v43 = vpop.f32.mrf.mxu3 }
 0x14a   : > { %v1487_v14 = vadd.f32 %v1469_v12, %v1303_v11  ;;  %v1942_v25 = vmax.f32 %v1932_v19, 0.0 }
 0x14c   : > { %v1714_v17 = vadd.f32 %v1696_v40, %v1487_v14 }
 0x14e   : > { %v1899_v20 = vadd.f32 %v1881_v9, %v1714_v17 }
 0x150   : > { %v1933_v23 = vadd.f32 %v3253_v35, %v1899_v20  ;;  %v1290_v31 = vpop.f32.mrf.mxu1  ;;  %v1886_v36 = vpop.f32.mrf.mxu0 }
 0x151   : > { %v1472_v24 = vpop.f32.mrf.mxu2  ;;  %v1305_v32 = vadd.f32 %v1290_v31, %v3241_v29  ;;  %v1706_v57 = vpop.f32.mrf.mxu3 }
 0x152   : > { %v1943_v26 = vmax.f32 %v1933_v23, 0.0  ;;  %v1488_v27 = vadd.f32 %v1472_v24, %v1304_v21 }
 0x154   : > { %v2758_v55 = vpack.c.bf16 %v1943_v26, %v1942_v25  ;;  %v1715_v44 = vadd.f32 %v1699_v48, %v1488_v27 }
 0x156   : > { %2771 = vst [vmem:[%s3262_s21 + $0x10] sm:$0xff] %v2758_v55   ;;  %v1900_v28 = vadd.f32 %v1884_v33, %v1715_v44 }
 0x158   : > { %v1293_v41 = vpop.f32.mrf.mxu1  ;;  %v1934_v45 = vadd.f32 %v3253_v35, %v1900_v28  ;;  %v1889_v50 = vpop.f32.mrf.mxu0 }
 0x159   : > { %v1474_v4 = vpop.f32.mrf.mxu2  ;;  %v1306_v42 = vadd.f32 %v1293_v41, %v3244_v13 }
 0x15a   : > { %v1489_v39 = vadd.f32 %v1474_v4, %v1305_v32  ;;  %v1944_v37 = vmax.f32 %v1934_v45, 0.0 }
 0x15c   : > { %v1716_v62 = vadd.f32 %v1701_v34, %v1489_v39 }
 0x15e   : > { %v1901_v46 = vadd.f32 %v1886_v36, %v1716_v62 }
 0x160   : > { %v1935_v15 = vadd.f32 %v3253_v35, %v1901_v46  ;;  %v1295_v53 = vpop.f32.mrf.mxu1  ;;  %v1891_v59 = vpop.f32.mrf.mxu0 }
 0x161   : > { %v1477_v47 = vpop.f32.mrf.mxu2  ;;  %v1307_v54 = vadd.f32 %v1295_v53, %v3247_v22 }
 0x162   : > { %v1945_v49 = vmax.f32 %v1935_v15, 0.0  ;;  %v1490_v29 = vadd.f32 %v1477_v47, %v1306_v42 }
 0x164   : > { %v2763_v51 = vpack.c.bf16 %v1945_v49, %v1944_v37  ;;  %v1717_v52 = vadd.f32 %v1704_v43, %v1490_v29 }
 0x166   : > { %2772 = vst [vmem:[%s3262_s21 + $0x18] sm:$0xff] %v2763_v51   ;;  %v1902_v30 = vadd.f32 %v1889_v50, %v1717_v52 }
 0x168   : > { %v1936_v7 = vadd.f32 %v3253_v35, %v1902_v30 }
 0x169   : > { %v1479_v56 = vpop.f32.mrf.mxu2 }
 0x16a   : > { %v1491_v13 = vadd.f32 %v1479_v56, %v1307_v54  ;;  %v1946_v16 = vmax.f32 %v1936_v7, 0.0 }
 0x16c   : > { %v1718_v58 = vadd.f32 %v1706_v57, %v1491_v13 }
 0x16e   : > { %v1903_v60 = vadd.f32 %v1891_v59, %v1718_v58 }
 0x170   : > { %v1937_v61 = vadd.f32 %v3253_v35, %v1903_v60 }
 0x172   : > { %v1947_v63 = vmax.f32 %v1937_v61, 0.0 }
 0x174   : > { %v2768_v0 = vpack.c.bf16 %v1947_v63, %v1946_v16 }
 0x176   : > { %2773 = vst [vmem:[%s3262_s21 + $0x20] sm:$0xff] %v2768_v0  }
 0x177 PF: > { %s13_s12 = sadd.s32 1, %s2807_s12  }
 0x178   : > { %p10_p4 = scmp.ge.s32.totalorder %s13_s12, 4  }
 0x17a   :  { %12 = sbr.rel (!%p10_p4) target bundleno = 1 (0x1), region = 70 }

// kernel: _lambda_.7
= control target key start
LH: loop header
LB: loop body
LE: loop exit
PB: predicated region body
PF: predicated region fallthrough
CT: control target
= control target key end

     0   :  { %s2092_s18 = smov 0   ;;  %s2412_s0 = inlined_call_operand.vmem [shape: bf16[2,42,128], index: 0, kind: input, shape index: {}]   ;;  %s2413_s1 = inlined_call_operand.vmem [shape: bf16[9,128,128], index: 1, kind: input, shape index: {}]   ;;  %s2414_s2 = inlined_call_operand.vmem [shape: f32[1,128], index: 2, kind: input, shape index: {}, may-alias: {2,4}]   ;;  %s2415_s3 = inlined_call_operand.vmem [shape: bf16[128,128], index: 3, kind: input, shape index: {}]   ;;  %s2416_s4 = inlined_call_operand.vmem [shape: f32[1,128], index: 4, kind: input, shape index: {}, may-alias: {2,4}]   ;;  %s2417_s5 = inlined_call_operand.vmem [shape: f32[2,24,128], index: 5, kind: output, shape index: {}]  }
   0x1 LB: > { %s1410_s19 = sadd.s32 4294967295, %s2060_s18   ;;  %p1414_p0 = scmp.ge.s32.totalorder %s2060_s18, 1  ;;  %s2060_s18 = sphi %s2092_s18, %s15_s18  }
   0x2   : > { %p187_p1 = scmp.lt.s32.totalorder %s2060_s18, 3 }
   0x4   : > { %p188_p2 = pnand %p1414_p0, %p187_p1 }
   0x5   : > { %p215_p3 = scmp.lt.s32.totalorder (!%p188_p2), %s1410_s19, 1 }
   0x6   : > { %191 = sbr.rel (%p188_p2) target bundleno = 389 (0x185), region = 40 }
   0xb   : > { %v1939_v0 = vld [vmem:[%s2413_s1 + $0x38] sm:$0xff]  ;;  %v1938_v4 = vld [vmem:[%s2413_s1 + $0x30] sm:$0xff]  ;;  %s2419_s19 = smov (!%p215_p3, %s1410_s19), 1  ;;  %v1937_v8 = vld [vmem:[%s2413_s1 + $0x28] sm:$0xff]  ;;  %vm357_vm0 = vsmask.f32 7424 }
   0xc   : > { %v1949_v1 = vld [vmem:[%s2413_s1 + $0x78] sm:$0xff]  ;;  %302 = vmatpush.bf16.msra.mxu0 %v1939_v0  ;;  %v1948_v5 = vld [vmem:[%s2413_s1 + $0x70] sm:$0xff]  ;;  %v1947_v9 = vld [vmem:[%s2413_s1 + $0x68] sm:$0xff]  ;;  %s2043_s21 = smul.u32 24, %s2419_s19  ;;  %vm481_vm1 = vcmask 1046528   ;;  %vm593_vm2 = vcmask 1044480  }
   0xd   : > { %v1959_v2 = vld [vmem:[%s2413_s1 + $0xb8] sm:$0xff]  ;;  %423 = vmatpush.bf16.msra.mxu1 %v1949_v1  ;;  %v1958_v6 = vld [vmem:[%s2413_s1 + $0xb0] sm:$0xff]  ;;  %v1957_v10 = vld [vmem:[%s2413_s1 + $0xa8] sm:$0xff]  ;;  %vm705_vm3 = vsmask.f32 4352  ;;  %vm936_vm4 = vcmask 1045504  }
   0xe   : > { %v1969_v3 = vld [vmem:[%s2413_s1 + $0xf8] sm:$0xff]  ;;  %535 = vmatpush.bf16.msra.mxu2 %v1959_v2  ;;  %v1968_v7 = vld [vmem:[%s2413_s1 + $0xf0] sm:$0xff]  ;;  %v1967_v11 = vld [vmem:[%s2413_s1 + $0xe8] sm:$0xff]  ;;  %s2156_s7 = scalar_lea.vmem %s2412_s0, %s2043_s21  ;;  %vm1048_vm5 = vsmask.f32 5376 }
   0xf   : > { %647 = vmatpush.bf16.msra.mxu3 %v1969_v3  ;;  %v1936_v12 = vld [vmem:[%s2413_s1 + $0x20] sm:$0xff]  ;;  %v1935_v16 = vld [vmem:[%s2413_s1 + $0x18] sm:$0xff]  ;;  %v1475_v21 = vld [vmem:[%s2156_s7 + $0x8] sm:$0xf] }
  0x10   : > { %303 = vmatpush.bf16.msra.mxu0 %v1938_v4  ;;  %v1946_v13 = vld [vmem:[%s2413_s1 + $0x60] sm:$0xff]  ;;  %v1945_v17 = vld [vmem:[%s2413_s1 + $0x58] sm:$0xff]  ;;  %v1941_v22 = vld [vmem:[%s2156_s7 + $0x8] sm:$0x10] }
  0x11   : > { %424 = vmatpush.bf16.msra.mxu1 %v1948_v5  ;;  %v1956_v14 = vld [vmem:[%s2413_s1 + $0xa0] sm:$0xff]  ;;  %v1955_v18 = vld [vmem:[%s2413_s1 + $0x98] sm:$0xff]  ;;  %v1934_v23 = vld [vmem:[%s2413_s1 + $0x10] sm:$0xff]  ;;  %v2185_v27 = vor.u32 %v1941_v22, %v1475_v21 }
  0x12   : > { %536 = vmatpush.bf16.msra.mxu2 %v1958_v6  ;;  %v1966_v15 = vld [vmem:[%s2413_s1 + $0xe0] sm:$0xff]  ;;  %v1965_v20 = vld [vmem:[%s2413_s1 + $0xd8] sm:$0xff]  ;;  %v1944_v24 = vld [vmem:[%s2413_s1 + $0x50] sm:$0xff] }
  0x13   : > { %648 = vmatpush.bf16.msra.mxu3 %v1968_v7  ;;  %v1940_v19 = vld [vmem:[%s2156_s7] sm:$0xff]  ;;  %v1954_v25 = vld [vmem:[%s2413_s1 + $0x90] sm:$0xff]  ;;  %v1531_v31 = vld [vmem:[%s2156_s7 + $0x8] sm:$0xf]  ;;  %v366_v41 = vshll.u32 %v2185_v27, 16 }
  0x14   : > { %304 = vmatpush.bf16.msra.mxu0 %v1937_v8  ;;  %v1964_v26 = vld [vmem:[%s2413_s1 + $0xd0] sm:$0xff]  ;;  %v361_v28 = vshll.u32 %v1940_v19, 16  ;;  %v1527_v29 = vld [vmem:[%s2156_s7] sm:$0xe]  ;;  %v1950_v30 = vld [vmem:[%s2156_s7] sm:$0xf0] }
  0x15   : > { %425 = vmatpush.bf16.msra.mxu1 %v1947_v9  ;;  %v1951_v32 = vld [vmem:[%s2156_s7 + $0x8] sm:$0x10]  ;;  %v1583_v33 = vld [vmem:[%s2156_s7] sm:$0x8]  ;;  %v1960_v34 = vld [vmem:[%s2156_s7] sm:$0xf0]  ;;  %v1528_v42 = vor.u32 %v1950_v30, %v1527_v29 }
  0x16   : > { %537 = vmatpush.bf16.msra.mxu2 %v1957_v10  ;;  %v1587_v35 = vld [vmem:[%s2156_s7 + $0x8] sm:$0xf]  ;;  %v1961_v36 = vld [vmem:[%s2156_s7 + $0x8] sm:$0x70]  ;;  %v359_v39 = vshrl.u32 %v1940_v19, 16  ;;  %v363_v40 = vrot.slane %v361_v28, 1  ;;  %v1532_v45 = vor.u32 %v1951_v32, %v1531_v31  ;;  %v1584_v46 = vor.u32 %v1960_v34, %v1583_v33 }
  0x17   : > { %649 = vmatpush.bf16.msra.mxu3 %v1967_v11  ;;  %v1933_v37 = vld [vmem:[%s2413_s1 + $0x8] sm:$0xff]  ;;  %v1588_v47 = vor.u32 %v1961_v36, %v1587_v35  ;;  %v1932_v48 = vld [vmem:[%s2413_s1] sm:$0xff]  ;;  %v368_v51 = vrot.slane %v366_v41, 1  ;;  %v482_v54 = vrot.slane %v1528_v42, 1  ;;  %v1998_v58 = vld [vmem:[%s2413_s1 + $0x1b8] sm:$0xff] }
  0x18   : > { %305 = vmatpush.bf16.msra.mxu0 %v1936_v12  ;;  %v1943_v38 = vld [vmem:[%s2413_s1 + $0x48] sm:$0xff]  ;;  %v1942_v49 = vld [vmem:[%s2413_s1 + $0x40] sm:$0xff]  ;;  %v364_v50 = vor.u32 %v363_v40, %v359_v39  ;;  %v2220_v55 = vrot.slane %v1532_v45, 1  ;;  %v594_v56 = vrot.slane %v1584_v46, 3  ;;  %v1979_v59 = vld [vmem:[%s2413_s1 + $0x138] sm:$0xff] }
  0x19   : > { %426 = vmatpush.bf16.msra.mxu1 %v1946_v13  ;;  %v1953_v43 = vld [vmem:[%s2413_s1 + $0x88] sm:$0xff]  ;;  %v1952_v52 = vld [vmem:[%s2413_s1 + $0x80] sm:$0xff]  ;;  %v2222_v57 = vrot.slane %v1588_v47, 3  ;;  %v1988_v0 = vld [vmem:[%s2413_s1 + $0x178] sm:$0xff] }
  0x1a   : > { %538 = vmatpush.bf16.msra.mxu2 %v1956_v14  ;;  %v1963_v44 = vld [vmem:[%s2413_s1 + $0xc8] sm:$0xff]  ;;  %v1962_v53 = vld [vmem:[%s2413_s1 + $0xc0] sm:$0xff]  ;;  %v369_v61 = vsel %vm357_vm0, %v364_v50, %v368_v51  ;;  %v484_v62 = vsel %vm481_vm1, %v482_v54, %v2220_v55  ;;  %v2008_v1 = vld [vmem:[%s2413_s1 + $0x1f8] sm:$0xff]  ;;  %v370_v14 = vshrl.u32 %v2185_v27, 16 }
  0x1b   : > { %650 = vmatpush.bf16.msra.mxu3 %v1966_v15  ;;  %v1931_v60 = vld [vmem:[%s2156_s7] sm:$0xff]  ;;  %v596_v63 = vsel %vm593_vm2, %v594_v56, %v2222_v57  ;;  %v1997_v2 = vld [vmem:[%s2413_s1 + $0x1b0] sm:$0xff]  ;;  %v1996_v6 = vld [vmem:[%s2413_s1 + $0x1a8] sm:$0xff] }
  0x1c   : > { %306 = vmatpush.bf16.msra.mxu0 %v1935_v16  ;;  %v1978_v3 = vld [vmem:[%s2413_s1 + $0x130] sm:$0xff]  ;;  %v1977_v7 = vld [vmem:[%s2413_s1 + $0x128] sm:$0xff]  ;;  %v1995_v11 = vld [vmem:[%s2413_s1 + $0x1a0] sm:$0xff] }
  0x1d   : > { %427 = vmatpush.bf16.msra.mxu1 %v1945_v17  ;;  %v1987_v4 = vld [vmem:[%s2413_s1 + $0x170] sm:$0xff]  ;;  %v2260_v8 = vld [vmem:[%s2156_s7 + $0x8] sm:$0xff]   ;;  %v1976_v12 = vld [vmem:[%s2413_s1 + $0x120] sm:$0xff] }
  0x1e   : > { %539 = vmatpush.bf16.msra.mxu2 %v1955_v18  ;;  %v2007_v5 = vld [vmem:[%s2413_s1 + $0x1f0] sm:$0xff]  ;;  %v1986_v9 = vld [vmem:[%s2413_s1 + $0x168] sm:$0xff]  ;;  %v249_v13 = vunpack.c.l.b16 %v2260_v8  ;;  %v1985_v15 = vld [vmem:[%s2413_s1 + $0x160] sm:$0xff] }
  0x1f   : > { %651 = vmatpush.bf16.msra.mxu3 %v1965_v20  ;;  %v2006_v10 = vld [vmem:[%s2413_s1 + $0x1e8] sm:$0xff]  ;;  %v2005_v16 = vld [vmem:[%s2413_s1 + $0x1e0] sm:$0xff]  ;;  %v1994_v19 = vld [vmem:[%s2413_s1 + $0x198] sm:$0xff] }
  0x20   : > { %307 = vmatpush.bf16.msra.mxu0 %v1934_v23  ;;  %v1639_v17 = vld [vmem:[%s2156_s7] sm:$0x8]  ;;  %v1970_v18 = vld [vmem:[%s2156_s7] sm:$0xf0]  ;;  %v1975_v20 = vld [vmem:[%s2413_s1 + $0x118] sm:$0xff]  ;;  %v251_v22 = vpack.c.b16 %v249_v13, %v249_v13  ;;  %v372_v23 = vor.u32 %v370_v14, %v368_v51 }
  0x21   : > { %428 = vmatpush.bf16.msra.mxu1 %v1944_v24  ;;  %v1803_v21 = vld [vmem:[%s2156_s7 + $0x4] sm:$0xc]  ;;  %v1999_v24 = vld [vmem:[%s2156_s7 + $0x4] sm:$0xf0]  ;;  %v1640_v28 = vor.u32 %v1970_v18, %v1639_v17  ;;  %v1984_v29 = vld [vmem:[%s2413_s1 + $0x158] sm:$0xff] }
  0x22   : > { %540 = vmatpush.bf16.msra.mxu2 %v1954_v25  ;;  %v1807_v25 = vld [vmem:[%s2156_s7 + $0xc] sm:$0xf]  ;;  %v2004_v30 = vld [vmem:[%s2413_s1 + $0x1d8] sm:$0xff]  ;;  %v1993_v31 = vld [vmem:[%s2413_s1 + $0x190] sm:$0xff]  ;;  %v1804_v33 = vor.u32 %v1999_v24, %v1803_v21 }
  0x23   : > { %652 = vmatpush.bf16.msra.mxu3 %v1964_v26  ;;  %v2000_v26 = vld [vmem:[%s2156_s7 + $0xc] sm:$0x70]  ;;  %v1971_v27 = vld [vmem:[%s2156_s7 + $0x8] sm:$0xff]  ;;  %v707_v39 = vshrl.u32 %v1640_v28, 16  ;;  %v710_v40 = vshll.u32 %v1640_v28, 16  ;;  %v2015_v17 = vld [vmem:[%s2413_s1 + $0x220] sm:$0xff] }
  0x24   : > { %308 = vmatpush.bf16.msra.mxu0 %v1933_v37  ;;  %v1974_v32 = vld [vmem:[%s2413_s1 + $0x110] sm:$0xff]  ;;  %v1808_v34 = vor.u32 %v2000_v26, %v1807_v25  ;;  %v1992_v37 = vld [vmem:[%s2413_s1 + $0x188] sm:$0xff]  ;;  %v715_v41 = vshrl.u32 %v1971_v27, 16  ;;  %v718_v42 = vshll.u32 %v1971_v27, 16  ;;  %v1050_v47 = vshrl.u32 %v1804_v33, 16  ;;  %v2014_v18 = vld [vmem:[%s2413_s1 + $0x218] sm:$0xff] }
  0x25   : > { %429 = vmatpush.bf16.msra.mxu1 %v1943_v38  ;;  %v1983_v35 = vld [vmem:[%s2413_s1 + $0x150] sm:$0xff]  ;;  %v1973_v38 = vld [vmem:[%s2413_s1 + $0x108] sm:$0xff]  ;;  %v709_v51 = vrot.slane %v707_v39, 3  ;;  %v2011_v26 = vld [vmem:[%s2413_s1 + $0x200] sm:$0xff] }
  0x26   : > { %541 = vmatpush.bf16.msra.mxu2 %v1953_v43  ;;  %v2003_v36 = vld [vmem:[%s2413_s1 + $0x1d0] sm:$0xff]  ;;  %v1747_v43 = vld [vmem:[%s2156_s7 + $0x4] sm:$0xc]  ;;  %v1751_v45 = vld [vmem:[%s2156_s7 + $0xc] sm:$0xf]  ;;  %v1061_v50 = vshll.u32 %v1808_v34, 16 }
  0x27   : > { %653 = vmatpush.bf16.msra.mxu3 %v1963_v44  ;;  %v1989_v44 = vld [vmem:[%s2156_s7 + $0x4] sm:$0xf0]  ;;  %v1990_v46 = vld [vmem:[%s2156_s7 + $0xc] sm:$0x30]  ;;  %v720_v54 = vrot.slane %v718_v42, 4 }
  0x28   : > { %309 = vmatpush.bf16.msra.mxu0 %v1932_v48  ;;  %v1053_v48 = vshll.u32 %v1804_v33, 16  ;;  %v2002_v56 = vld [vmem:[%s2413_s1 + $0x1c8] sm:$0xff]  ;;  %v2010_v25 = vld [vmem:[%s2156_s7 + $0xc] sm:$0x70] }
  0x29   : > { %430 = vmatpush.bf16.msra.mxu1 %v1942_v49  ;;  %v1058_v49 = vshrl.u32 %v1808_v34, 16  ;;  %v1980_v13 = vld [vmem:[%s2156_s7 + $0x4] sm:$0xff]  ;;  %v1863_v24 = vld [vmem:[%s2156_s7 + $0xc] sm:$0xf] }
  0x2a   : > { %542 = vmatpush.bf16.msra.mxu2 %v1952_v52  ;;  %v712_v52 = vrot.slane %v710_v40, 4  ;;  %v1864_v28 = vor.u32 %v2010_v25, %v1863_v24  ;;  %v2026_v40 = vld [vmem:[%s2415_s3 + $0x38] sm:$0xff] }
  0x2b   : > { %654 = vmatpush.bf16.msra.mxu3 %v1962_v53  ;;  %310 = vmatmul.bf16.vlgmr.msra.gmra.mxu0 %v1931_v60  ;;  %v717_v53 = vrot.slane %v715_v41, 3  ;;  %v1972_v60 = vld [vmem:[%s2413_s1 + $0x100] sm:$0xff] }
  0x2c   : > { %773 = vmatpush.bf16.msrb.mxu0 %v1979_v59  ;;  %431 = vmatmul.bf16.vlgmr.msra.gmra.mxu1 %v369_v61  ;;  %v1991_v59 = vld [vmem:[%s2413_s1 + $0x180] sm:$0xff]  ;;  %v1052_v61 = vrot.slane %v1050_v47, 2 }
  0x2d   : > { %543 = vmatmul.bf16.vlgmr.msra.gmra.mxu2 %v484_v62  ;;  %878 = vmatpush.bf16.msrb.mxu1 %v1988_v0  ;;  %v1055_v62 = vrot.slane %v1053_v48, 3  ;;  %v1063_v0 = vrot.slane %v1061_v50, 3 }
  0x2e   : > { %990 = vmatpush.bf16.msrb.mxu2 %v1998_v58  ;;  %655 = vmatmul.bf16.vlgmr.msra.gmra.mxu3 %v596_v63  ;;  %v1752_v58 = vor.u32 %v1990_v46, %v1751_v45  ;;  %v1060_v63 = vrot.slane %v1058_v49, 2  ;;  %v2024_v46 = vld [vmem:[%s2415_s3 + $0x28] sm:$0xff]  ;;  %v2023_v49 = vld [vmem:[%s2415_s3 + $0x20] sm:$0xff] }
  0x2f   : > { %1116 = vmatpush.bf16.msrb.mxu3 %v2008_v1  ;;  %v2018_v1 = vld [vmem:[%s2413_s1 + $0x238] sm:$0xff] }
  0x30   : > { %774 = vmatpush.bf16.msrb.mxu0 %v1978_v3  ;;  %v721_v3 = vor.u32 %v720_v54, %v717_v53 }
  0x31   : > { %879 = vmatpush.bf16.msrb.mxu1 %v1987_v4  ;;  %v1981_v4 = vld [vmem:[%s2413_s1 + $0x140] sm:$0xff] }
  0x32   : > { %991 = vmatpush.bf16.msrb.mxu2 %v1997_v2  ;;  %v713_v2 = vor.u32 %v712_v52, %v709_v51  ;;  %v2022_v52 = vld [vmem:[%s2415_s3 + $0x18] sm:$0xff] }
  0x33   : > { %1117 = vmatpush.bf16.msrb.mxu3 %v2007_v5  ;;  %v2001_v5 = vld [vmem:[%s2413_s1 + $0x1c0] sm:$0xff] }
  0x34   : > { %775 = vmatpush.bf16.msrb.mxu0 %v1977_v7  ;;  %v938_v7 = vrot.slane %v1752_v58, 2 }
  0x35   : > { %880 = vmatpush.bf16.msrb.mxu1 %v1986_v9  ;;  %v1056_v9 = vor.u32 %v1055_v62, %v1052_v61  ;;  %v2019_v61 = vld [vmem:[%s2415_s3] sm:$0xff] }
  0x36   : > { %992 = vmatpush.bf16.msrb.mxu2 %v1996_v6 }
  0x37   : > { %1118 = vmatpush.bf16.msrb.mxu3 %v2006_v10  ;;  %v1064_v10 = vor.u32 %v1063_v0, %v1060_v63 }
  0x38   : > { %776 = vmatpush.bf16.msrb.mxu0 %v1976_v12  ;;  %v722_v12 = vsel %vm705_vm3, %v713_v2, %v721_v3 }
  0x39   : > { %881 = vmatpush.bf16.msrb.mxu1 %v1985_v15  ;;  %v1065_v15 = vsel %vm1048_vm5, %v1056_v9, %v1064_v10 }
  0x3a   : > { %993 = vmatpush.bf16.msrb.mxu2 %v1995_v11  ;;  %v2017_v11 = vld [vmem:[%s2413_s1 + $0x230] sm:$0xff] }
  0x3b   : > { %1119 = vmatpush.bf16.msrb.mxu3 %v2005_v16  ;;  %315 = vmatmul.bf16.gmra.mxu0 %v251_v22  ;;  %v2016_v16 = vld [vmem:[%s2413_s1 + $0x228] sm:$0xff] }
  0x3c   : > { %777 = vmatpush.bf16.msrb.mxu0 %v1975_v20  ;;  %436 = vmatmul.bf16.gmra.mxu1 %v372_v23  ;;  %v2013_v20 = vld [vmem:[%s2413_s1 + $0x210] sm:$0xff]  ;;  %v2012_v22 = vld [vmem:[%s2413_s1 + $0x208] sm:$0xff]  ;;  %v1859_v23 = vld [vmem:[%s2156_s7 + $0x4] sm:$0x8] }
  0x3d   : > { %548 = vmatmul.bf16.gmra.mxu2 %v2220_v55  ;;  %882 = vmatpush.bf16.msrb.mxu1 %v1984_v29  ;;  %v1982_v55 = vld [vmem:[%s2413_s1 + $0x148] sm:$0xff] }
  0x3e   : > { %994 = vmatpush.bf16.msrb.mxu2 %v1994_v19  ;;  %660 = vmatmul.bf16.gmra.mxu3 %v2222_v57  ;;  %v1748_v57 = vor.u32 %v1989_v44, %v1747_v43  ;;  %v825_v19 = vunpack.c.h.b16 %v2260_v8  ;;  %v2009_v8 = vld [vmem:[%s2156_s7 + $0x4] sm:$0xf0]  ;;  %v2025_v43 = vld [vmem:[%s2415_s3 + $0x30] sm:$0xff]  ;;  %s224_s7 = scalar_lea.vmem %s2417_s5, %s2043_s21 }
  0x3f   : > { %1120 = vmatpush.bf16.msrb.mxu3 %v2004_v30  ;;  %v1860_v27 = vor.u32 %v2009_v8, %v1859_v23  ;;  %v1175_v30 = vrot.slane %v1864_v28, 3 }
  0x40   : > { %778 = vmatpush.bf16.msrb.mxu0 %v1974_v32  ;;  %v937_v6 = vrot.slane %v1748_v57, 2  ;;  %v827_v21 = vpack.c.b16 %v825_v19, %v825_v19  ;;  %v2020_v57 = vld [vmem:[%s2415_s3 + $0x8] sm:$0xff] }
  0x41   : > { %883 = vmatpush.bf16.msrb.mxu1 %v1983_v35  ;;  %v1174_v29 = vrot.slane %v1860_v27, 3 }
  0x42   : > { %995 = vmatpush.bf16.msrb.mxu2 %v1993_v31  ;;  %v939_v14 = vsel %vm936_vm4, %v937_v6, %v938_v7 }
  0x43   : > { %1121 = vmatpush.bf16.msrb.mxu3 %v2003_v36  ;;  %v1176_v31 = vsel %vm593_vm2, %v1174_v29, %v1175_v30  ;;  %v2052_v29 = vld [vmem:[%s2414_s2] ss:$0 sm:$0xff] }
  0x44   : > { %779 = vmatpush.bf16.msrb.mxu0 %v1973_v38 }
  0x45   : > { %884 = vmatpush.bf16.msrb.mxu1 %v1982_v55  ;;  %v2021_v55 = vld [vmem:[%s2415_s3 + $0x10] sm:$0xff] }
  0x46   : > { %996 = vmatpush.bf16.msrb.mxu2 %v1992_v37 }
  0x47   : > { %1122 = vmatpush.bf16.msrb.mxu3 %v2002_v56 }
  0x48   : > { %780 = vmatpush.bf16.msrb.mxu0 %v1972_v60 }
  0x49   : > { %885 = vmatpush.bf16.msrb.mxu1 %v1981_v4 }
  0x4a   : > { %997 = vmatpush.bf16.msrb.mxu2 %v1991_v59 }
  0x4b   : > { %1123 = vmatpush.bf16.msrb.mxu3 %v2001_v5  ;;  %781 = vmatmul.bf16.vlgmr.msrb.gmra.mxu0 %v722_v12 }
  0x4c   : > { %1227 = vmatpush.bf16.msra.mxu0 %v2018_v1  ;;  %886 = vmatmul.bf16.vlgmr.msrb.gmra.mxu1 %v1980_v13 }
  0x4d   : > { %998 = vmatmul.bf16.vlgmr.msrb.gmra.mxu2 %v939_v14  ;;  %1334 = vmatpush.bf16.msra.mxu1 %v2026_v40 }
  0x4e   : > { %2027 = vmatpush.bf16.msra.mxu2 %v2018_v1  ;;  %1124 = vmatmul.bf16.vlgmr.msrb.gmra.mxu3 %v1065_v15 }
  0x4f   : > { %2035 = vmatpush.bf16.msra.mxu3 %v2026_v40 }
  0x50   : > { %1228 = vmatpush.bf16.msra.mxu0 %v2017_v11 }
  0x51   : > { %1335 = vmatpush.bf16.msra.mxu1 %v2025_v43 }
  0x52   : > { %2028 = vmatpush.bf16.msra.mxu2 %v2017_v11 }
  0x53   : > { %2036 = vmatpush.bf16.msra.mxu3 %v2025_v43 }
  0x54   : > { %1229 = vmatpush.bf16.msra.mxu0 %v2016_v16 }
  0x55   : > { %1336 = vmatpush.bf16.msra.mxu1 %v2024_v46 }
  0x56   : > { %2029 = vmatpush.bf16.msra.mxu2 %v2016_v16 }
  0x57   : > { %2037 = vmatpush.bf16.msra.mxu3 %v2024_v46 }
  0x58   : > { %1230 = vmatpush.bf16.msra.mxu0 %v2015_v17 }
  0x59   : > { %1337 = vmatpush.bf16.msra.mxu1 %v2023_v49 }
  0x5a   : > { %2030 = vmatpush.bf16.msra.mxu2 %v2015_v17 }
  0x5b   : > { %786 = vmatmul.bf16.gmra.mxu0 %v721_v3  ;;  %2038 = vmatpush.bf16.msra.mxu3 %v2023_v49 }
  0x5c   : > { %1231 = vmatpush.bf16.msra.mxu0 %v2014_v18  ;;  %891 = vmatmul.bf16.gmra.mxu1 %v827_v21 }
  0x5d   : > { %1003 = vmatmul.bf16.gmra.mxu2 %v938_v7  ;;  %1338 = vmatpush.bf16.msra.mxu1 %v2022_v52 }
  0x5e   : > { %2031 = vmatpush.bf16.msra.mxu2 %v2014_v18  ;;  %1129 = vmatmul.bf16.gmra.mxu3 %v1064_v10 }
  0x5f   : > { %2039 = vmatpush.bf16.msra.mxu3 %v2022_v52 }
  0x60   : > { %1232 = vmatpush.bf16.msra.mxu0 %v2013_v20 }
  0x61   : > { %1339 = vmatpush.bf16.msra.mxu1 %v2021_v55 }
  0x62   : > { %2032 = vmatpush.bf16.msra.mxu2 %v2013_v20 }
  0x63   : > { %2040 = vmatpush.bf16.msra.mxu3 %v2021_v55 }
  0x64   : > { %1233 = vmatpush.bf16.msra.mxu0 %v2012_v22 }
  0x65   : > { %1340 = vmatpush.bf16.msra.mxu1 %v2020_v57 }
  0x66   : > { %2033 = vmatpush.bf16.msra.mxu2 %v2012_v22 }
  0x67   : > { %2041 = vmatpush.bf16.msra.mxu3 %v2020_v57 }
  0x68   : > { %1234 = vmatpush.bf16.msra.mxu0 %v2011_v26 }
  0x69   : > { %1341 = vmatpush.bf16.msra.mxu1 %v2019_v61 }
  0x6a   : > { %2034 = vmatpush.bf16.msra.mxu2 %v2011_v26 }
  0x6b   : > { %1235 = vmatmul.bf16.vlgmr.msra.gmra.mxu0 %v1176_v31  ;;  %2042 = vmatpush.bf16.msra.mxu3 %v2019_v61 }
  0x6d   : > { %1240 = vmatmul.bf16.vlgmr.msra.gmra.mxu2 %v1175_v30 }
  0xa8   : > { %v311_v32 = vpop.f32.mrf.mxu0 }
  0xa9   : > { %v432_v33 = vpop.f32.mrf.mxu1 }
  0xaa   : > { %v441_v1 = vadd.f32 %v432_v33, %v311_v32 }
  0xb0   : > { %v544_v34 = vpop.f32.mrf.mxu2  ;;  %v313_v36 = vpop.f32.mrf.mxu0 }
  0xb1   : > { %v656_v35 = vpop.f32.mrf.mxu3  ;;  %v434_v37 = vpop.f32.mrf.mxu1  ;;  %v553_v3 = vadd.f32 %v544_v34, %v441_v1 }
  0xb2   : > { %v442_v5 = vadd.f32 %v434_v37, %v313_v36 }
  0xb3   : > { %v665_v7 = vadd.f32 %v656_v35, %v553_v3 }
  0xb8   : > { %v546_v38 = vpop.f32.mrf.mxu2  ;;  %v316_v41 = vpop.f32.mrf.mxu0 }
  0xb9   : > { %v658_v39 = vpop.f32.mrf.mxu3  ;;  %v437_v42 = vpop.f32.mrf.mxu1  ;;  %v554_v9 = vadd.f32 %v546_v38, %v442_v5 }
  0xba   : > { %v443_v4 = vadd.f32 %v437_v42, %v316_v41 }
  0xbb   : > { %v666_v16 = vadd.f32 %v658_v39, %v554_v9 }
  0xc0   : > { %v549_v44 = vpop.f32.mrf.mxu2  ;;  %v318_v47 = vpop.f32.mrf.mxu0 }
  0xc1   : > { %v661_v45 = vpop.f32.mrf.mxu3  ;;  %v439_v48 = vpop.f32.mrf.mxu1  ;;  %v555_v6 = vadd.f32 %v549_v44, %v443_v4 }
  0xc3   : > { %v667_v15 = vadd.f32 %v661_v45, %v555_v6  ;;  %v2053_v45 = vld [vmem:[%s2416_s4] ss:$0 sm:$0xff] }
  0xc8   : > { %v551_v50 = vpop.f32.mrf.mxu2  ;;  %v782_v53 = vpop.f32.mrf.mxu0 }
  0xc9   : > { %v663_v51 = vpop.f32.mrf.mxu3  ;;  %v887_v54 = vpop.f32.mrf.mxu1  ;;  %v791_v13 = vadd.f32 %v782_v53, %v665_v7 }
  0xcb   : > { %v896_v18 = vadd.f32 %v887_v54, %v791_v13 }
  0xd0   : > { %v999_v56 = vpop.f32.mrf.mxu2  ;;  %v784_v58 = vpop.f32.mrf.mxu0 }
  0xd1   : > { %v1125_v59 = vpop.f32.mrf.mxu3  ;;  %v889_v60 = vpop.f32.mrf.mxu1  ;;  %v792_v19 = vadd.f32 %v784_v58, %v666_v16  ;;  %v1008_v20 = vadd.f32 %v999_v56, %v896_v18 }
  0xd3   : > { %v897_v24 = vadd.f32 %v889_v60, %v792_v19  ;;  %v1134_v26 = vadd.f32 %v1125_v59, %v1008_v20 }
  0xd8   : > { %v1001_v62 = vpop.f32.mrf.mxu2  ;;  %v787_v63 = vpop.f32.mrf.mxu0 }
  0xd9   : > { %v1127_v0 = vpop.f32.mrf.mxu3  ;;  %v892_v2 = vpop.f32.mrf.mxu1  ;;  %v793_v17 = vadd.f32 %v787_v63, %v667_v15  ;;  %v1009_v27 = vadd.f32 %v1001_v62, %v897_v24 }
  0xdb   : > { %v898_v22 = vadd.f32 %v892_v2, %v793_v17  ;;  %v1135_v31 = vadd.f32 %v1127_v0, %v1009_v27 }
  0xe0   : > { %v1004_v10 = vpop.f32.mrf.mxu2  ;;  %v789_v11 = vpop.f32.mrf.mxu0 }
  0xe1   : > { %v1130_v12 = vpop.f32.mrf.mxu3  ;;  %v894_v14 = vpop.f32.mrf.mxu1  ;;  %v1010_v25 = vadd.f32 %v1004_v10, %v898_v22 }
  0xe3   : > { %v1136_v30 = vadd.f32 %v1130_v12, %v1010_v25 }
  0xe8   : > { %v1006_v21 = vpop.f32.mrf.mxu2  ;;  %v1236_v23 = vpop.f32.mrf.mxu0 }
  0xe9   : > { %v1132_v8 = vpop.f32.mrf.mxu3  ;;  %v1245_v28 = vadd.f32 %v1236_v23, %v1134_v26 }
  0xeb   : > { %v1258_v35 = vadd.f32 %v2052_v29, %v1245_v28 }
  0xed   : > { %v1261_v40 = vmax.f32 %v1258_v35, 0.0 }
  0xf0   : > { %v1241_v32 = vpop.f32.mrf.mxu2  ;;  %v1238_v34 = vpop.f32.mrf.mxu0 }
  0xf1   : > { %v1247_v33 = vadd.f32 %v1241_v32, %v1136_v30  ;;  %v1246_v36 = vadd.f32 %v1238_v34, %v1135_v31 }
  0xf3   : > { %v1260_v37 = vadd.f32 %v2052_v29, %v1247_v33  ;;  %v1259_v38 = vadd.f32 %v2052_v29, %v1246_v36 }
  0xf5   : > { %v1263_v39 = vmax.f32 %v1260_v37, 0.0  ;;  %v1262_v41 = vmax.f32 %v1259_v38, 0.0 }
  0xf7   : > { %v1265_v42 = vpack.c.bf16 %v1263_v39, %v1263_v39  ;;  %v1264_v43 = vpack.c.bf16 %v1262_v41, %v1261_v40 }
  0xf8   : > { %v1243_v44 = vpop.f32.mrf.mxu2 }
  0xf9   : > { %1347 = vmatmul.bf16.vlgmr.msra.gmra.mxu3 %v1265_v42  ;;  %1342 = vmatmul.bf16.vlgmr.msra.gmra.mxu1 %v1264_v43 }
 0x176   : > { %v1343_v46 = vpop.f32.mrf.mxu1 }
 0x177   : > { %v1344_v47 = vadd.f32 %v2053_v45, %v1343_v46 }
 0x179   : > { %1352 = vst [vmem:[%s224_s7] sm:$0xff] %v1344_v47 }
 0x17c   : > { %v1348_v48 = vpop.f32.mrf.mxu3 }
 0x17d   : > { %v1349_v49 = vadd.f32 %v2053_v45, %v1348_v48 }
 0x17e   : > { %v1345_v50 = vpop.f32.mrf.mxu1 }
 0x17f   : > { %1354 = vst [vmem:[%s224_s7 + $0x10] sm:$0xff] %v1349_v49  ;;  %v1346_v51 = vadd.f32 %v2053_v45, %v1345_v50 }
 0x181   : > { %1353 = vst [vmem:[%s224_s7 + $0x8] sm:$0xff] %v1346_v51 }
 0x184   : > { %v1350_v52 = vpop.f32.mrf.mxu3 }
 0x185 PF: > { %s15_s18 = sadd.s32 1, %s2060_s18  }
 0x186   : > { %p12_p4 = scmp.ge.s32.totalorder %s15_s18, 4  }
 0x188   :  { %14 = sbr.rel (!%p12_p4) target bundleno = 1 (0x1), region = 78 }

// kernel: _lambda_.5
= control target key start
LH: loop header
LB: loop body
LE: loop exit
PB: predicated region body
PF: predicated region fallthrough
CT: control target
= control target key end

     0   :  { %s5718_s12 = smov 0   ;;  %s6783_s0 = inlined_call_operand.vmem [shape: bf16[2,342,4], index: 0, kind: input, shape index: {}]   ;;  %s6784_s1 = inlined_call_operand.vmem [shape: bf16[9,4,128], index: 1, kind: input, shape index: {}]   ;;  %s6785_s2 = inlined_call_operand.vmem [shape: f32[1,128], index: 2, kind: input, shape index: {}]   ;;  %s6786_s3 = inlined_call_operand.vmem [shape: bf16[2,288,128], index: 3, kind: output, shape index: {}]  }
   0x1 LB: > { %s4579_s13 = sadd.s32 4294967295, %s5696_s12   ;;  %p4583_p0 = scmp.ge.s32.totalorder %s5696_s12, 1  ;;  %s5696_s12 = sphi %s5718_s12, %s13_s12  }
   0x2   : > { %p137_p1 = scmp.lt.s32.totalorder %s5696_s12, 3 }
   0x4   : > { %p138_p2 = pnand %p4583_p0, %p137_p1 }
   0x6   : > { %141 = sbr.rel (%p138_p2) target bundleno = 812 (0x32c), region = 32 }
   0xb   : > { %v208_v0 = vld [vmem:[%s6784_s1] sm:$0x3]  ;;  %vm354_vm0 = vcmask 1041408   ;;  %p161_p3 = scmp.lt.s32.totalorder %s4579_s13, 1  ;;  %v4767_v2 = vld [vmem:[%s6784_s1 + $0x4] sm:$0x3] }
   0xc   : > { %v356_v1 = vsel %vm354_vm0, %v208_v0, 0  ;;  %v4676_v3 = vld [vmem:[%s6784_s1 + $0x2] sm:$0x3]  ;;  %v1299_v4 = vsel %vm354_vm0, %v4767_v2, 0  ;;  %v4949_v6 = vld [vmem:[%s6784_s1 + $0x8] sm:$0x3] }
   0xd   : > { %5675 = vmatpush.bf16.msra.mxu1 %v356_v1  ;;  %5676 = vmatpush.bf16.msra.mxu2 %v356_v1  ;;  %s6808_s13 = smov (!%p161_p3, %s4579_s13), 1  ;;  %v865_v5 = vsel %vm354_vm0, %v4676_v3, 0  ;;  %v2299_v7 = vsel %vm354_vm0, %v4949_v6, 0  ;;  %vm299_vm1 = vcmask 31744   ;;  %v4858_v12 = vld [vmem:[%s6784_s1 + $0x6] sm:$0x3] }
   0xe   : > { %365 = vmatpush.bf16.msra.mxu0 %v356_v1  ;;  %s5678_s22 = smul.u32 172, %s6808_s13  ;;  %5677 = vmatpush.bf16.msra.mxu3 %v356_v1  ;;  %v1732_v13 = vsel %vm354_vm0, %v4858_v12, 0  ;;  %vm1206_vm2 = vcmask 1046528   ;;  %v5131_v32 = vld [vmem:[%s6784_s1 + $0xc] sm:$0x3]  ;;  %vm2640_vm6 = vcmask 1045504  }
   0xf   : > { %v3166_v33 = vsel %vm354_vm0, %v5131_v32, 0  ;;  %v5222_v34 = vld [vmem:[%s6784_s1 + $0xe] sm:$0x3]  ;;  %v5040_v35 = vld [vmem:[%s6784_s1 + $0xa] sm:$0x3]  ;;  %vm4074_vm7 = vcmask 1044480  }
  0x10   : > { %s5748_s25 = scalar_lea.vmem %s6783_s0, %s5678_s22  ;;  %v3733_v36 = vsel %vm354_vm0, %v5222_v34, 0  ;;  %v2733_v37 = vsel %vm354_vm0, %v5040_v35, 0  ;;  %v5313_v38 = vld [vmem:[%s6784_s1 + $0x10] sm:$0x3]  ;;  %vm661_vm3 = vsmask.f32 7424 }
  0x11   : > { %1308 = vmatpush.bf16.msrb.mxu2 %v1299_v4  ;;  %874 = vmatpush.bf16.msrb.mxu1 %v865_v5  ;;  %v5411_v8 = vld [vmem:[%s5748_s25 + $0x28] sm:$0xff]  ;;  %v5416_v9 = vld [vmem:[%s5748_s25 + $0x50] sm:$0xff]  ;;  %v5406_v10 = vld [vmem:[%s5748_s25] sm:$0xff]  ;;  %v4167_v39 = vsel %vm354_vm0, %v5313_v38, 0  ;;  %vm2073_vm4 = vsmask.f32 6400 }
  0x12   : > { %2308 = vmatpush.bf16.msrb.mxu0 %v2299_v7  ;;  %4663 = vmatmul.msk.bf16.vlgmr.msra.gmra.mxu1 %vm299_vm1, %v5411_v8  ;;  %v5421_v11 = vld [vmem:[%s5748_s25 + $0x78] sm:$0xff]  ;;  %v5412_v14 = vld [vmem:[%s5748_s25 + $0x30] sm:$0xff]  ;;  %v5407_v16 = vld [vmem:[%s5748_s25 + $0x8] sm:$0xff]  ;;  %vm3507_vm5 = vsmask.f32 5376  ;;  %s5679_s11 = smul.u32 144, %s6808_s13 }
  0x13   : > { %4668 = vmatmul.msk.bf16.vlgmr.msra.gmra.mxu2 %vm299_vm1, %v5416_v9  ;;  %4658 = vmatmul.msk.bf16.vlgmr.msra.gmra.mxu0 %vm299_vm1, %v5406_v10  ;;  %v5417_v15 = vld [vmem:[%s5748_s25 + $0x58] sm:$0xff]  ;;  %v5422_v17 = vld [vmem:[%s5748_s25 + $0x80] sm:$0xff]  ;;  %v5408_v20 = vld [vmem:[%s5748_s25 + $0x10] sm:$0xff] }
  0x14   : > { %4673 = vmatmul.msk.bf16.vlgmr.msra.gmra.mxu3 %vm299_vm1, %v5421_v11  ;;  %v5413_v18 = vld [vmem:[%s5748_s25 + $0x38] sm:$0xff]  ;;  %v5418_v19 = vld [vmem:[%s5748_s25 + $0x60] sm:$0xff]  ;;  %v5423_v21 = vld [vmem:[%s5748_s25 + $0x88] sm:$0xff]  ;;  %s6514_s13 = scalar_lea.vmem %s6786_s3, %s5679_s11 }
  0x15   : > { %1741 = vmatpush.bf16.msrb.mxu3 %v1732_v13  ;;  %v4861_v22 = vld [vmem:[%s5748_s25 + $0x8] sm:$0xe]  ;;  %v5460_v23 = vld [vmem:[%s5748_s25 + $0x8] sm:$0xf0]  ;;  %v5461_v24 = vld [vmem:[%s5748_s25 + $0x10] sm:$0xff]  ;;  %3175 = vmatpush.bf16.msra.mxu2 %v3166_v33 }
  0x16   : > { %v4862_v25 = vor.u32 %v5460_v23, %v4861_v22  ;;  %v1641_v27 = vrot.slane %v5461_v24, 1  ;;  %v5414_v28 = vld [vmem:[%s5748_s25 + $0x40] sm:$0xff]  ;;  %v5419_v29 = vld [vmem:[%s5748_s25 + $0x68] sm:$0xff]  ;;  %v5409_v30 = vld [vmem:[%s5748_s25 + $0x18] sm:$0xff]  ;;  %2742 = vmatpush.bf16.msra.mxu1 %v2733_v37  ;;  %4176 = vmatpush.bf16.msra.mxu0 %v4167_v39 }
  0x17   : > { %v5462_v40 = vld [vmem:[%s5748_s25 + $0x18] sm:$0xff]  ;;  %v4952_v41 = vld [vmem:[%s5748_s25 + $0x8] sm:$0xe]  ;;  %v5478_v42 = vld [vmem:[%s5748_s25 + $0x8] sm:$0xf0] }
  0x18   : > { %v1640_v26 = vrot.slane %v4862_v25, 1  ;;  %v1643_v43 = vrot.slane %v5462_v40, 1  ;;  %v5415_v44 = vld [vmem:[%s5748_s25 + $0x48] sm:$0xff]  ;;  %v5420_v45 = vld [vmem:[%s5748_s25 + $0x70] sm:$0xff]  ;;  %v5410_v46 = vld [vmem:[%s5748_s25 + $0x20] sm:$0xff]  ;;  %v4953_v49 = vor.u32 %v5478_v42, %v4952_v41 }
  0x19   : > { %3742 = vmatpush.bf16.msra.mxu3 %v3733_v36  ;;  %v5424_v47 = vld [vmem:[%s5748_s25] sm:$0xff]  ;;  %v5479_v48 = vld [vmem:[%s5748_s25 + $0x10] sm:$0xff]  ;;  %v5425_v51 = vld [vmem:[%s5748_s25 + $0x8] sm:$0xff] }
  0x1a   : > { %v1642_v31 = vsel %vm1206_vm2, %v1640_v26, %v1641_v27  ;;  %v1644_v50 = vsel %vm1206_vm2, %v1641_v27, %v1643_v43  ;;  %v665_v52 = vshll.u32 %v5424_v47, 16  ;;  %v4770_v53 = vld [vmem:[%s5748_s25] sm:$0xe]  ;;  %v5442_v54 = vld [vmem:[%s5748_s25] sm:$0xf0]  ;;  %v2075_v55 = vshrl.u32 %v4953_v49, 16 }
  0x1b   : > { %v2078_v56 = vshll.u32 %v4953_v49, 16  ;;  %v2083_v57 = vshrl.u32 %v5479_v48, 16  ;;  %v2086_v58 = vshll.u32 %v5479_v48, 16  ;;  %v663_v59 = vshrl.u32 %v5424_v47, 16  ;;  %v5443_v62 = vld [vmem:[%s5748_s25 + $0x8] sm:$0xff]  ;;  %v5463_v4 = vld [vmem:[%s5748_s25 + $0x20] sm:$0xff] }
  0x1c   : > { %v667_v60 = vrot.slane %v665_v52, 1  ;;  %v670_v61 = vshll.u32 %v5425_v51, 16  ;;  %v4771_v63 = vor.u32 %v5442_v54, %v4770_v53  ;;  %v2077_v0 = vrot.slane %v2075_v55, 1  ;;  %v5444_v22 = vld [vmem:[%s5748_s25 + $0x10] sm:$0xff]  ;;  %v5464_v25 = vld [vmem:[%s5748_s25 + $0x28] sm:$0xff]  ;;  %v5481_v34 = vld [vmem:[%s5748_s25 + $0x20] sm:$0xff] }
  0x1d   : > { %v2080_v1 = vrot.slane %v2078_v56, 2  ;;  %v2085_v2 = vrot.slane %v2083_v57, 1  ;;  %v2088_v3 = vrot.slane %v2086_v58, 2  ;;  %v1208_v8 = vrot.slane %v5443_v62, 1  ;;  %v5427_v36 = vld [vmem:[%s5748_s25 + $0x18] sm:$0xff]  ;;  %v5482_v53 = vld [vmem:[%s5748_s25 + $0x28] sm:$0xff] }
  0x1e   : > { %v668_v5 = vor.u32 %v667_v60, %v663_v59  ;;  %v672_v6 = vrot.slane %v670_v61, 1  ;;  %v1207_v7 = vrot.slane %v4771_v63, 1  ;;  %v1645_v11 = vrot.slane %v5463_v4, 1  ;;  %v5445_v41 = vld [vmem:[%s5748_s25 + $0x18] sm:$0xff]  ;;  %v5428_v55 = vld [vmem:[%s5748_s25 + $0x20] sm:$0xff] }
  0x1f   : > { %v2081_v9 = vor.u32 %v2080_v1, %v2077_v0  ;;  %v2089_v10 = vor.u32 %v2088_v3, %v2085_v2  ;;  %v2101_v37 = vshrl.u32 %v5481_v34, 16  ;;  %v2104_v38 = vshll.u32 %v5481_v34, 16  ;;  %v5446_v60 = vld [vmem:[%s5748_s25 + $0x20] sm:$0xff]  ;;  %v5466_v63 = vld [vmem:[%s5748_s25 + $0x38] sm:$0xff] }
  0x20   : > { %v673_v12 = vsel %vm661_vm3, %v668_v5, %v672_v6  ;;  %v1209_v13 = vsel %vm1206_vm2, %v1207_v7, %v1208_v8  ;;  %v686_v40 = vshll.u32 %v5427_v36, 16  ;;  %v1212_v47 = vrot.slane %v5445_v41, 1 }
  0x21   : > { %v2103_v42 = vrot.slane %v2101_v37, 1  ;;  %v2110_v56 = vshrl.u32 %v5482_v53, 16  ;;  %v2113_v57 = vshll.u32 %v5482_v53, 16  ;;  %v690_v58 = vshrl.u32 %v5427_v36, 16  ;;  %v5484_v37 = vld [vmem:[%s5748_s25 + $0x38] sm:$0xff] }
  0x22   : > { %4664 = vmatmul.msk.bf16.gmra.mxu1 %vm299_vm1, %v5412_v14  ;;  %v2090_v14 = vsel %vm2073_vm4, %v2081_v9, %v2089_v10  ;;  %v694_v59 = vshll.u32 %v5428_v55, 16  ;;  %v1214_v2 = vrot.slane %v5446_v60, 1  ;;  %v1651_v4 = vrot.slane %v5466_v63, 1 }
  0x23   : > { %4669 = vmatmul.msk.bf16.gmra.mxu2 %vm299_vm1, %v5417_v15  ;;  %4659 = vmatmul.msk.bf16.gmra.mxu0 %vm299_vm1, %v5407_v16  ;;  %v5480_v15 = vld [vmem:[%s5748_s25 + $0x18] sm:$0xff]  ;;  %v1646_v16 = vsel %vm1206_vm2, %v1643_v43, %v1645_v11  ;;  %v2106_v43 = vrot.slane %v2104_v38, 2  ;;  %v2112_v61 = vrot.slane %v2110_v56, 1  ;;  %v2115_v62 = vrot.slane %v2113_v57, 2 }
  0x24   : > { %4674 = vmatmul.msk.bf16.gmra.mxu3 %vm299_vm1, %v5422_v17  ;;  %v5426_v17 = vld [vmem:[%s5748_s25 + $0x10] sm:$0xff]  ;;  %v696_v1 = vrot.slane %v694_v59, 1  ;;  %v1215_v7 = vsel %vm1206_vm2, %v1212_v47, %v1214_v2  ;;  %v2131_v41 = vshll.u32 %v5484_v37, 16 }
  0x25   : > { %v682_v39 = vshrl.u32 %v5426_v17, 16  ;;  %v2107_v48 = vor.u32 %v2106_v43, %v2103_v42  ;;  %v2116_v3 = vor.u32 %v2115_v62, %v2112_v61 }
  0x27   : > { %v2117_v9 = vsel %vm2073_vm4, %v2107_v48, %v2116_v3 }
  0x32   : > { %4665 = vmatmul.msk.bf16.gmra.mxu1 %vm299_vm1, %v5413_v18  ;;  %v2092_v18 = vshrl.u32 %v5480_v15, 16 }
  0x33   : > { %4670 = vmatmul.msk.bf16.gmra.mxu2 %vm299_vm1, %v5418_v19  ;;  %4660 = vmatmul.msk.bf16.gmra.mxu0 %vm299_vm1, %v5408_v20  ;;  %v2095_v19 = vshll.u32 %v5480_v15, 16  ;;  %v674_v20 = vshrl.u32 %v5425_v51, 16 }
  0x34   : > { %4675 = vmatmul.msk.bf16.gmra.mxu3 %vm299_vm1, %v5423_v21  ;;  %v678_v21 = vshll.u32 %v5426_v17, 16  ;;  %v2094_v23 = vrot.slane %v2092_v18, 1  ;;  %v698_v17 = vshrl.u32 %v5428_v55, 16 }
  0x35   : > { %v2097_v24 = vrot.slane %v2095_v19, 2  ;;  %v676_v26 = vor.u32 %v674_v20, %v672_v6  ;;  %v5447_v19 = vld [vmem:[%s5748_s25 + $0x28] sm:$0xff] }
  0x36   : > { %v680_v27 = vrot.slane %v678_v21, 1 }
  0x42   : > { %4666 = vmatmul.msk.bf16.gmra.mxu1 %vm299_vm1, %v5414_v28  ;;  %v1210_v28 = vrot.slane %v5444_v22, 1 }
  0x43   : > { %4671 = vmatmul.msk.bf16.gmra.mxu2 %vm299_vm1, %v5419_v29  ;;  %4661 = vmatmul.msk.bf16.gmra.mxu0 %vm299_vm1, %v5409_v30  ;;  %v2098_v29 = vor.u32 %v2097_v24, %v2094_v23  ;;  %v1647_v30 = vrot.slane %v5464_v25, 1  ;;  %v5467_v24 = vld [vmem:[%s5748_s25 + $0x40] sm:$0xff]  ;;  %v700_v25 = vor.u32 %v698_v17, %v696_v1 }
  0x44   : > { %4931 = vmatmul.msk.bf16.vlgmr.msrb.gmra.mxu3 %vm299_vm1, %v1642_v31  ;;  %v681_v31 = vsel %vm661_vm3, %v676_v26, %v680_v27  ;;  %v1211_v32 = vsel %vm1206_vm2, %v1208_v8, %v1210_v28  ;;  %v1213_v51 = vsel %vm1206_vm2, %v1210_v28, %v1212_v47 }
  0x45   : > { %v2099_v33 = vsel %vm2073_vm4, %v2089_v10, %v2098_v29  ;;  %v1648_v35 = vsel %vm1206_vm2, %v1645_v11, %v1647_v30  ;;  %v2108_v52 = vsel %vm2073_vm4, %v2098_v29, %v2107_v48  ;;  %v5483_v10 = vld [vmem:[%s5748_s25 + $0x30] sm:$0xff] }
  0x52   : > { %4667 = vmatmul.msk.bf16.gmra.mxu1 %vm299_vm1, %v5415_v44  ;;  %v5465_v44 = vld [vmem:[%s5748_s25 + $0x30] sm:$0xff] }
  0x53   : > { %4672 = vmatmul.msk.bf16.gmra.mxu2 %vm299_vm1, %v5420_v45  ;;  %4662 = vmatmul.msk.bf16.gmra.mxu0 %vm299_vm1, %v5410_v46  ;;  %v684_v45 = vor.u32 %v682_v39, %v680_v27  ;;  %v688_v46 = vrot.slane %v686_v40, 1  ;;  %v1649_v49 = vrot.slane %v5465_v44, 1  ;;  %v1216_v27 = vrot.slane %v5447_v19, 1  ;;  %v5430_v39 = vld [vmem:[%s5748_s25 + $0x30] sm:$0xff] }
  0x54   : > { %4932 = vmatmul.msk.bf16.gmra.mxu3 %vm299_vm1, %v1644_v50  ;;  %v2128_v40 = vshrl.u32 %v5484_v37, 16  ;;  %v5486_v37 = vld [vmem:[%s5748_s25 + $0x48] sm:$0xff] }
  0x55   : > { %v689_v50 = vsel %vm661_vm3, %v684_v45, %v688_v46  ;;  %v1650_v54 = vsel %vm1206_vm2, %v1647_v30, %v1649_v49  ;;  %v692_v0 = vor.u32 %v690_v58, %v688_v46  ;;  %v1652_v11 = vsel %vm1206_vm2, %v1649_v49, %v1651_v4  ;;  %v5448_v46 = vld [vmem:[%s5748_s25 + $0x30] sm:$0xff] }
  0x56   : > { %v1653_v30 = vrot.slane %v5467_v24, 1  ;;  %v710_v45 = vshll.u32 %v5430_v39, 16  ;;  %v2130_v49 = vrot.slane %v2128_v40, 1  ;;  %v2146_v40 = vshrl.u32 %v5486_v37, 16 }
  0x57   : > { %v697_v6 = vsel %vm661_vm3, %v692_v0, %v696_v1  ;;  %v5485_v0 = vld [vmem:[%s5748_s25 + $0x40] sm:$0xff] }
  0x58   : > { %v1654_v38 = vsel %vm1206_vm2, %v1651_v4, %v1653_v30  ;;  %v712_v53 = vrot.slane %v710_v45, 1  ;;  %v2140_v4 = vshll.u32 %v5485_v0, 16 }
  0x5a   : > { %v2142_v17 = vrot.slane %v2140_v4, 2 }
  0x62   : > { %4749 = vmatmul.msk.bf16.vlgmr.msrb.gmra.mxu1 %vm299_vm1, %v673_v12  ;;  %v5429_v12 = vld [vmem:[%s5748_s25 + $0x28] sm:$0xff] }
  0x63   : > { %4840 = vmatmul.msk.bf16.vlgmr.msrb.gmra.mxu2 %vm299_vm1, %v1209_v13  ;;  %5022 = vmatmul.msk.bf16.vlgmr.msrb.gmra.mxu0 %vm299_vm1, %v2090_v14  ;;  %v2119_v13 = vshrl.u32 %v5483_v10, 16  ;;  %v2122_v14 = vshll.u32 %v5483_v10, 16  ;;  %v702_v18 = vshll.u32 %v5429_v12, 16  ;;  %v706_v44 = vshrl.u32 %v5429_v12, 16 }
  0x64   : > { %4933 = vmatmul.msk.bf16.gmra.mxu3 %vm299_vm1, %v1646_v16 }
  0x65   : > { %v2121_v22 = vrot.slane %v2119_v13, 1  ;;  %v2124_v23 = vrot.slane %v2122_v14, 2  ;;  %v704_v26 = vrot.slane %v702_v18, 1  ;;  %v5469_v18 = vld [vmem:[%s5748_s25 + $0x50] sm:$0xff] }
  0x67   : > { %v2125_v28 = vor.u32 %v2124_v23, %v2121_v22 }
  0x69   : > { %v2126_v36 = vsel %vm2073_vm4, %v2116_v3, %v2125_v28  ;;  %v2137_v3 = vshrl.u32 %v5485_v0, 16 }
  0x6b   : > { %v2139_v14 = vrot.slane %v2137_v3, 1 }
  0x6d   : > { %v2143_v24 = vor.u32 %v2142_v17, %v2139_v14  ;;  %v5487_v14 = vld [vmem:[%s5748_s25 + $0x50] sm:$0xff] }
  0x72   : > { %4750 = vmatmul.msk.bf16.gmra.mxu1 %vm299_vm1, %v681_v31 }
  0x73   : > { %4841 = vmatmul.msk.bf16.gmra.mxu2 %vm299_vm1, %v1211_v32  ;;  %5023 = vmatmul.msk.bf16.gmra.mxu0 %vm299_vm1, %v2099_v33  ;;  %v705_v32 = vsel %vm661_vm3, %v700_v25, %v704_v26  ;;  %v1217_v33 = vsel %vm1206_vm2, %v1214_v2, %v1216_v27  ;;  %v5431_v2 = vld [vmem:[%s5748_s25 + $0x38] sm:$0xff] }
  0x74   : > { %4934 = vmatmul.msk.bf16.gmra.mxu3 %vm299_vm1, %v1648_v35  ;;  %v718_v10 = vshll.u32 %v5431_v2, 16 }
  0x76   : > { %v720_v22 = vrot.slane %v718_v10, 1 }
  0x82   : > { %4751 = vmatmul.msk.bf16.gmra.mxu1 %vm299_vm1, %v689_v50  ;;  %v2133_v50 = vrot.slane %v2131_v41, 2  ;;  %v2149_v41 = vshll.u32 %v5486_v37, 16 }
  0x83   : > { %4842 = vmatmul.msk.bf16.gmra.mxu2 %vm299_vm1, %v1213_v51  ;;  %5024 = vmatmul.msk.bf16.gmra.mxu0 %vm299_vm1, %v2108_v52  ;;  %v5468_v51 = vld [vmem:[%s5748_s25 + $0x48] sm:$0xff]  ;;  %v708_v52 = vor.u32 %v706_v44, %v704_v26  ;;  %v1657_v26 = vrot.slane %v5469_v18, 1 }
  0x84   : > { %4935 = vmatmul.msk.bf16.gmra.mxu3 %vm299_vm1, %v1650_v54  ;;  %v1218_v54 = vrot.slane %v5448_v46, 1  ;;  %v2134_v55 = vor.u32 %v2133_v50, %v2130_v49  ;;  %v1655_v57 = vrot.slane %v5468_v51, 1  ;;  %v722_v46 = vshrl.u32 %v5431_v2, 16  ;;  %v5450_v50 = vld [vmem:[%s5748_s25 + $0x40] sm:$0xff]  ;;  %v5433_v18 = vld [vmem:[%s5748_s25 + $0x48] sm:$0xff] }
  0x85   : > { %v713_v59 = vsel %vm661_vm3, %v708_v52, %v712_v53 }
  0x86   : > { %v1219_v60 = vsel %vm1206_vm2, %v1216_v27, %v1218_v54  ;;  %v2135_v63 = vsel %vm2073_vm4, %v2125_v28, %v2134_v55  ;;  %v1656_v1 = vsel %vm1206_vm2, %v1653_v30, %v1655_v57 }
  0x8f   : > { %v5859_v5 = vpop.f32.mrf.mxu1 }
  0x90   : > { %v5863_v8 = vpop.f32.mrf.mxu0 }
  0x92   : > { %4752 = vmatmul.msk.bf16.gmra.mxu1 %vm299_vm1, %v697_v6 }
  0x93   : > { %4843 = vmatmul.msk.bf16.gmra.mxu2 %vm299_vm1, %v1215_v7  ;;  %5025 = vmatmul.msk.bf16.gmra.mxu0 %vm299_vm1, %v2117_v9  ;;  %v714_v9 = vshrl.u32 %v5430_v39, 16  ;;  %v5432_v39 = vld [vmem:[%s5748_s25 + $0x40] sm:$0xff] }
  0x94   : > { %4936 = vmatmul.msk.bf16.gmra.mxu3 %vm299_vm1, %v1652_v11  ;;  %v5449_v11 = vld [vmem:[%s5748_s25 + $0x38] sm:$0xff]  ;;  %v726_v49 = vshll.u32 %v5432_v39, 16 }
  0x95   : > { %v716_v19 = vor.u32 %v714_v9, %v712_v53  ;;  %v1220_v23 = vrot.slane %v5449_v11, 1  ;;  %v2148_v53 = vrot.slane %v2146_v40, 1 }
  0x96   : > { %v5873_v15 = vpop.f32.mrf.mxu2 }
  0x97   : > { %v5875_v16 = vpop.f32.mrf.mxu1  ;;  %v5878_v20 = vpop.f32.mrf.mxu3  ;;  %v721_v28 = vsel %vm661_vm3, %v716_v19, %v720_v22  ;;  %v1221_v30 = vsel %vm1206_vm2, %v1218_v54, %v1220_v23  ;;  %v2151_v54 = vrot.slane %v2149_v41, 2  ;;  %v2155_v19 = vshrl.u32 %v5487_v14, 16  ;;  %v5471_v41 = vld [vmem:[%s5748_s25 + $0x60] sm:$0xff] }
  0x98   : > { %v5880_v21 = vpop.f32.mrf.mxu0 }
  0x9e   : > { %v5883_v29 = vpop.f32.mrf.mxu2 }
  0x9f   : > { %v5885_v31 = vpop.f32.mrf.mxu1  ;;  %v5889_v34 = vpop.f32.mrf.mxu3 }
  0xa0   : > { %v5891_v35 = vpop.f32.mrf.mxu0 }
  0xa2   : > { %4753 = vmatmul.msk.bf16.gmra.mxu1 %vm299_vm1, %v705_v32 }
  0xa3   : > { %4844 = vmatmul.msk.bf16.gmra.mxu2 %vm299_vm1, %v1217_v33  ;;  %5026 = vmatmul.msk.bf16.gmra.mxu0 %vm299_vm1, %v2126_v36  ;;  %v2144_v36 = vsel %vm2073_vm4, %v2134_v55, %v2143_v24  ;;  %v5470_v55 = vld [vmem:[%s5748_s25 + $0x58] sm:$0xff] }
  0xa4   : > { %4937 = vmatmul.msk.bf16.gmra.mxu3 %vm299_vm1, %v1654_v38  ;;  %v1658_v38 = vsel %vm1206_vm2, %v1655_v57, %v1657_v26  ;;  %v724_v57 = vor.u32 %v722_v46, %v720_v22  ;;  %v2158_v22 = vshll.u32 %v5487_v14, 16 }
  0xa6   : > { %v5901_v42 = vpop.f32.mrf.mxu2  ;;  %v2160_v40 = vrot.slane %v2158_v22, 2 }
  0xa7   : > { %v5903_v43 = vpop.f32.mrf.mxu1  ;;  %v5906_v47 = vpop.f32.mrf.mxu3 }
  0xa8   : > { %6788 = vst [vmem:[#allocation3_spill] sm:$0xff] %v5906_v47  ;;  %v5908_v48 = vpop.f32.mrf.mxu0 }
  0xae   : > { %v5911_v56 = vpop.f32.mrf.mxu2 }
  0xaf   : > { %v5913_v58 = vpop.f32.mrf.mxu1  ;;  %v5917_v61 = vpop.f32.mrf.mxu3 }
  0xb0   : > { %6789 = vst [vmem:[#allocation4_spill] sm:$0xff] %v5917_v61  ;;  %v5919_v62 = vpop.f32.mrf.mxu0 }
  0xb2   : > { %4754 = vmatmul.msk.bf16.gmra.mxu1 %vm299_vm1, %v713_v59  ;;  %v728_v59 = vrot.slane %v726_v49, 1 }
  0xb3   : > { %4845 = vmatmul.msk.bf16.gmra.mxu2 %vm299_vm1, %v1219_v60  ;;  %5027 = vmatmul.msk.bf16.gmra.mxu0 %vm299_vm1, %v2135_v63  ;;  %v1222_v60 = vrot.slane %v5450_v50, 1  ;;  %v2152_v63 = vor.u32 %v2151_v54, %v2148_v53 }
  0xb4   : > { %4938 = vmatmul.msk.bf16.gmra.mxu3 %vm299_vm1, %v1656_v1  ;;  %v1659_v1 = vrot.slane %v5470_v55, 1  ;;  %v729_v2 = vsel %vm661_vm3, %v724_v57, %v728_v59  ;;  %v1661_v55 = vrot.slane %v5471_v41, 1 }
  0xb5   : > { %v1223_v4 = vsel %vm1206_vm2, %v1220_v23, %v1222_v60  ;;  %v2153_v11 = vsel %vm2073_vm4, %v2143_v24, %v2152_v63  ;;  %v730_v24 = vshrl.u32 %v5432_v39, 16 }
  0xb6   : > { %v5929_v6 = vpop.f32.mrf.mxu2  ;;  %v1660_v17 = vsel %vm1206_vm2, %v1657_v26, %v1659_v1 }
  0xb7   : > { %v5931_v7 = vpop.f32.mrf.mxu1  ;;  %v5934_v12 = vpop.f32.mrf.mxu3  ;;  %v732_v46 = vor.u32 %v730_v24, %v728_v59  ;;  %v1662_v59 = vsel %vm1206_vm2, %v1659_v1, %v1661_v55  ;;  %v5452_v1 = vld [vmem:[%s5748_s25 + $0x50] sm:$0xff] }
  0xb8   : > { %6790 = vst [vmem:[#allocation5_spill] sm:$0xff] %v5934_v12  ;;  %v5936_v13 = vpop.f32.mrf.mxu0 }
  0xbe   : > { %v5939_v25 = vpop.f32.mrf.mxu2 }
  0xbf   : > { %v5941_v27 = vpop.f32.mrf.mxu1  ;;  %v5945_v32 = vpop.f32.mrf.mxu3 }
  0xc0   : > { %6791 = vst [vmem:[#allocation6_spill] sm:$0xff] %v5945_v32  ;;  %v5947_v33 = vpop.f32.mrf.mxu0  ;;  %v5472_v32 = vld [vmem:[%s5748_s25 + $0x68] sm:$0xff] }
  0xc2   : > { %4755 = vmatmul.msk.bf16.gmra.mxu1 %vm299_vm1, %v721_v28 }
  0xc3   : > { %4846 = vmatmul.msk.bf16.gmra.mxu2 %vm299_vm1, %v1221_v30  ;;  %5028 = vmatmul.msk.bf16.gmra.mxu0 %vm299_vm1, %v2144_v36  ;;  %v734_v30 = vshll.u32 %v5433_v18, 16  ;;  %v5451_v36 = vld [vmem:[%s5748_s25 + $0x48] sm:$0xff] }
  0xc4   : > { %4939 = vmatmul.msk.bf16.gmra.mxu3 %vm299_vm1, %v1658_v38  ;;  %v2157_v38 = vrot.slane %v2155_v19, 1  ;;  %v1224_v50 = vrot.slane %v5451_v36, 1  ;;  %v5434_v19 = vld [vmem:[%s5748_s25 + $0x50] sm:$0xff] }
  0xc5   : > { %v736_v49 = vrot.slane %v734_v30, 1 }
  0xc6   : > { %v5957_v44 = vpop.f32.mrf.mxu2  ;;  %v2161_v53 = vor.u32 %v2160_v40, %v2157_v38  ;;  %v738_v38 = vshrl.u32 %v5433_v18, 16  ;;  %v742_v40 = vshll.u32 %v5434_v19, 16 }
  0xc7   : > { %v5959_v45 = vpop.f32.mrf.mxu1  ;;  %v5962_v51 = vpop.f32.mrf.mxu3  ;;  %v737_v39 = vsel %vm661_vm3, %v732_v46, %v736_v49 }
  0xc8   : > { %v5964_v52 = vpop.f32.mrf.mxu0  ;;  %v2162_v14 = vsel %vm2073_vm4, %v2152_v63, %v2161_v53 }
  0xce   : > { %v5967_v0 = vpop.f32.mrf.mxu2 }
  0xcf   : > { %v5969_v3 = vpop.f32.mrf.mxu1  ;;  %v5973_v9 = vpop.f32.mrf.mxu3 }
  0xd0   : > { %v5975_v10 = vpop.f32.mrf.mxu0 }
  0xd2   : > { %4756 = vmatmul.msk.bf16.gmra.mxu1 %vm299_vm1, %v729_v2  ;;  %v1225_v2 = vsel %vm1206_vm2, %v1222_v60, %v1224_v50 }
  0xd3   : > { %4847 = vmatmul.msk.bf16.gmra.mxu2 %vm299_vm1, %v1223_v4  ;;  %5029 = vmatmul.msk.bf16.gmra.mxu0 %vm299_vm1, %v2153_v11 }
  0xd4   : > { %4940 = vmatmul.msk.bf16.gmra.mxu3 %vm299_vm1, %v1660_v17  ;;  %v5488_v17 = vld [vmem:[%s5748_s25 + $0x58] sm:$0xff] }
  0xd5   : > { %v2164_v60 = vshrl.u32 %v5488_v17, 16  ;;  %v2167_v24 = vshll.u32 %v5488_v17, 16  ;;  %v1226_v17 = vrot.slane %v5452_v1, 1 }
  0xd6   : > { %v5985_v23 = vpop.f32.mrf.mxu2 }
  0xd7   : > { %v5987_v28 = vpop.f32.mrf.mxu1  ;;  %v5990_v26 = vpop.f32.mrf.mxu3 }
  0xd8   : > { %v5992_v37 = vpop.f32.mrf.mxu0 }
  0xde   : > { %v5995_v54 = vpop.f32.mrf.mxu2 }
  0xdf   : > { %v876_v57 = vpop.f32.mrf.mxu1  ;;  %v5999_v4 = vpop.f32.mrf.mxu3 }
  0xe0   : > { %v2310_v11 = vpop.f32.mrf.mxu0  ;;  %v966_v22 = vadd.f32 %v876_v57, %v5863_v8  ;;  %v740_v8 = vor.u32 %v738_v38, %v736_v49  ;;  %v744_v57 = vrot.slane %v742_v40, 1  ;;  %v5489_v38 = vld [vmem:[%s5748_s25 + $0x60] sm:$0xff] }
  0xe2   : > { %4757 = vmatmul.msk.bf16.gmra.mxu1 %vm299_vm1, %v737_v39 }
  0xe3   : > { %4848 = vmatmul.msk.bf16.gmra.mxu2 %vm299_vm1, %v1225_v2  ;;  %5030 = vmatmul.msk.bf16.gmra.mxu0 %vm299_vm1, %v2162_v14  ;;  %v2166_v2 = vrot.slane %v2164_v60, 1  ;;  %v2169_v14 = vrot.slane %v2167_v24, 2  ;;  %v1227_v60 = vsel %vm1206_vm2, %v1224_v50, %v1226_v17  ;;  %v5435_v50 = vld [vmem:[%s5748_s25 + $0x58] sm:$0xff] }
  0xe4   : > { %4941 = vmatmul.msk.bf16.gmra.mxu3 %vm299_vm1, %v1662_v59 }
  0xe6   : > { %v1310_v30 = vpop.f32.mrf.mxu2 }
  0xe7   : > { %v1400_v63 = vadd.f32 %v1310_v30, %v966_v22  ;;  %v878_v36 = vpop.f32.mrf.mxu1  ;;  %v6011_v41 = vpop.f32.mrf.mxu3  ;;  %v2170_v22 = vor.u32 %v2169_v14, %v2166_v2  ;;  %v1663_v30 = vrot.slane %v5472_v32, 1  ;;  %v5453_v2 = vld [vmem:[%s5748_s25 + $0x58] sm:$0xff] }
  0xe8   : > { %v2312_v39 = vpop.f32.mrf.mxu0  ;;  %v967_v59 = vadd.f32 %v878_v36, %v5880_v21 }
  0xe9   : > { %v1833_v46 = vadd.f32 %v5962_v51, %v1400_v63  ;;  %v745_v51 = vsel %vm661_vm3, %v740_v8, %v744_v57  ;;  %v2171_v49 = vsel %vm2073_vm4, %v2161_v53, %v2170_v22  ;;  %v1664_v21 = vsel %vm1206_vm2, %v1661_v55, %v1663_v30 }
  0xea   : > { %v746_v55 = vshrl.u32 %v5434_v19, 16 }
  0xeb   : > { %v6015_v12 = vadd.f32 %v2310_v11, %v1833_v46  ;;  %v750_v46 = vshll.u32 %v5435_v50, 16 }
  0xee   : > { %v1312_v18 = vpop.f32.mrf.mxu2 }
  0xef   : > { %v1401_v61 = vadd.f32 %v1312_v18, %v967_v59  ;;  %v881_v47 = vpop.f32.mrf.mxu1  ;;  %v6020_v24 = vpop.f32.mrf.mxu3 }
  0xf0   : > { %v2315_v63 = vpop.f32.mrf.mxu0  ;;  %v968_v36 = vadd.f32 %v881_v47, %v5891_v35  ;;  %v748_v35 = vor.u32 %v746_v55, %v744_v57  ;;  %v752_v47 = vrot.slane %v750_v46, 1  ;;  %v5490_v55 = vld [vmem:[%s5748_s25 + $0x68] sm:$0xff] }
  0xf1   : > { %v1834_v11 = vadd.f32 %v5973_v9, %v1401_v61  ;;  %v2173_v61 = vshrl.u32 %v5489_v38, 16  ;;  %v2176_v9 = vshll.u32 %v5489_v38, 16 }
  0xf2   : > { %4758 = vmatmul.msk.bf16.gmra.mxu1 %vm299_vm1, %v745_v51  ;;  %v5473_v51 = vld [vmem:[%s5748_s25 + $0x70] sm:$0xff] }
  0xf3   : > { %4849 = vmatmul.msk.bf16.gmra.mxu2 %vm299_vm1, %v1227_v60  ;;  %v6028_v32 = vadd.f32 %v2312_v39, %v1834_v11  ;;  %5031 = vmatmul.msk.bf16.gmra.mxu0 %vm299_vm1, %v2171_v49  ;;  %v2175_v59 = vrot.slane %v2173_v61, 1  ;;  %v2178_v18 = vrot.slane %v2176_v9, 2  ;;  %v1228_v11 = vrot.slane %v5453_v2, 1 }
  0xf4   : > { %4942 = vmatmul.msk.bf16.gmra.mxu3 %vm299_vm1, %v1664_v21  ;;  %v1665_v21 = vrot.slane %v5473_v51, 1  ;;  %v2185_v2 = vshll.u32 %v5490_v55, 16  ;;  %v5454_v51 = vld [vmem:[%s5748_s25 + $0x60] sm:$0xff] }
  0xf5   : > { %v2179_v38 = vor.u32 %v2178_v18, %v2175_v59  ;;  %v1229_v61 = vsel %vm1206_vm2, %v1226_v17, %v1228_v11  ;;  %v5436_v17 = vld [vmem:[%s5748_s25 + $0x60] sm:$0xff] }
  0xf6   : > { %v1315_v53 = vpop.f32.mrf.mxu2  ;;  %v758_v18 = vshll.u32 %v5436_v17, 16 }
  0xf7   : > { %v1402_v40 = vadd.f32 %v1315_v53, %v968_v36  ;;  %v883_v1 = vpop.f32.mrf.mxu1  ;;  %v6035_v14 = vpop.f32.mrf.mxu3  ;;  %v2180_v57 = vsel %vm2073_vm4, %v2170_v22, %v2179_v38 }
  0xf8   : > { %v2317_v8 = vpop.f32.mrf.mxu0  ;;  %v969_v49 = vadd.f32 %v883_v1, %v5908_v48  ;;  %v1666_v48 = vsel %vm1206_vm2, %v1663_v30, %v1665_v21  ;;  %v754_v30 = vshrl.u32 %v5435_v50, 16 }
  0xf9   : > { %v1835_v39 = vadd.f32 %v5990_v26, %v1402_v40  ;;  %v753_v26 = vsel %vm661_vm3, %v748_v35, %v752_v47 }
  0xfb   : > { %v6039_v60 = vadd.f32 %v2315_v63, %v1835_v39 }
  0xfe   : > { %v1317_v19 = vpop.f32.mrf.mxu2 }
  0xff   : > { %v1403_v36 = vadd.f32 %v1317_v19, %v969_v49  ;;  %v886_v53 = vpop.f32.mrf.mxu1  ;;  %v6044_v9 = vpop.f32.mrf.mxu3 }
 0x100   : > { %v2320_v40 = vpop.f32.mrf.mxu0  ;;  %v970_v46 = vadd.f32 %v886_v53, %v5919_v62  ;;  %v756_v62 = vor.u32 %v754_v30, %v752_v47  ;;  %v760_v53 = vrot.slane %v758_v18, 1  ;;  %v5491_v30 = vld [vmem:[%s5748_s25 + $0x70] sm:$0xff] }
 0x101   : > { %v1836_v63 = vadd.f32 %v5999_v4, %v1403_v36  ;;  %v2182_v4 = vshrl.u32 %v5490_v55, 16  ;;  %v2187_v36 = vrot.slane %v2185_v2, 2 }
 0x102   : > { %4759 = vmatmul.msk.bf16.gmra.mxu1 %vm299_vm1, %v753_v26  ;;  %v5474_v26 = vld [vmem:[%s5748_s25 + $0x78] sm:$0xff] }
 0x103   : > { %4850 = vmatmul.msk.bf16.gmra.mxu2 %vm299_vm1, %v1229_v61  ;;  %v6052_v1 = vadd.f32 %v2317_v8, %v1836_v63  ;;  %5032 = vmatmul.msk.bf16.gmra.mxu0 %vm299_vm1, %v2180_v57  ;;  %v2184_v19 = vrot.slane %v2182_v4, 1  ;;  %v1230_v63 = vrot.slane %v5454_v51, 1  ;;  %v2194_v51 = vshll.u32 %v5491_v30, 16 }
 0x104   : > { %4943 = vmatmul.msk.bf16.gmra.mxu3 %vm299_vm1, %v1666_v48  ;;  %v1667_v48 = vrot.slane %v5474_v26, 1  ;;  %v5455_v26 = vld [vmem:[%s5748_s25 + $0x68] sm:$0xff] }
 0x105   : > { %v2188_v55 = vor.u32 %v2187_v36, %v2184_v19  ;;  %v1231_v4 = vsel %vm1206_vm2, %v1228_v11, %v1230_v63  ;;  %v5437_v11 = vld [vmem:[%s5748_s25 + $0x68] sm:$0xff] }
 0x106   : > { %v1320_v22 = vpop.f32.mrf.mxu2  ;;  %v766_v36 = vshll.u32 %v5437_v11, 16 }
 0x107   : > { %v1404_v39 = vadd.f32 %v1320_v22, %v970_v46  ;;  %v888_v59 = vpop.f32.mrf.mxu1  ;;  %v6059_v35 = vpop.f32.mrf.mxu3  ;;  %v2189_v47 = vsel %vm2073_vm4, %v2179_v38, %v2188_v55 }
 0x108   : > { %v2322_v49 = vpop.f32.mrf.mxu0  ;;  %v971_v57 = vadd.f32 %v888_v59, %v5936_v13  ;;  %v1668_v13 = vsel %vm1206_vm2, %v1665_v21, %v1667_v48  ;;  %v762_v21 = vshrl.u32 %v5436_v17, 16 }
 0x109   : > { %v1837_v8 = vadd.f32 %v6011_v41, %v1404_v39  ;;  %v761_v41 = vsel %vm661_vm3, %v756_v62, %v760_v53 }
 0x10b   : > { %v6063_v61 = vadd.f32 %v2320_v40, %v1837_v8 }
 0x10e   : > { %v1322_v50 = vpop.f32.mrf.mxu2 }
 0x10f   : > { %v1405_v46 = vadd.f32 %v1322_v50, %v971_v57  ;;  %v891_v22 = vpop.f32.mrf.mxu1  ;;  %v6068_v2 = vpop.f32.mrf.mxu3 }
 0x110   : > { %v2325_v39 = vpop.f32.mrf.mxu0  ;;  %v972_v18 = vadd.f32 %v891_v22, %v5947_v33  ;;  %v764_v33 = vor.u32 %v762_v21, %v760_v53  ;;  %v768_v22 = vrot.slane %v766_v36, 1  ;;  %v5492_v21 = vld [vmem:[%s5748_s25 + $0x78] sm:$0xff] }
 0x111   : > { %v1838_v40 = vadd.f32 %v6020_v24, %v1405_v46  ;;  %v2191_v24 = vshrl.u32 %v5491_v30, 16  ;;  %v2196_v46 = vrot.slane %v2194_v51, 2 }
 0x112   : > { %4760 = vmatmul.msk.bf16.gmra.mxu1 %vm299_vm1, %v761_v41  ;;  %v5475_v41 = vld [vmem:[%s5748_s25 + $0x80] sm:$0xff] }
 0x113   : > { %4851 = vmatmul.msk.bf16.gmra.mxu2 %vm299_vm1, %v1231_v4  ;;  %v6076_v59 = vadd.f32 %v2322_v49, %v1838_v40  ;;  %5033 = vmatmul.msk.bf16.gmra.mxu0 %vm299_vm1, %v2189_v47  ;;  %v2193_v50 = vrot.slane %v2191_v24, 1  ;;  %v1232_v40 = vrot.slane %v5455_v26, 1  ;;  %v2203_v26 = vshll.u32 %v5492_v21, 16 }
 0x114   : > { %4944 = vmatmul.msk.bf16.gmra.mxu3 %vm299_vm1, %v1668_v13  ;;  %v1669_v13 = vrot.slane %v5475_v41, 1  ;;  %v5456_v41 = vld [vmem:[%s5748_s25 + $0x70] sm:$0xff] }
 0x115   : > { %v2197_v30 = vor.u32 %v2196_v46, %v2193_v50  ;;  %v1233_v24 = vsel %vm1206_vm2, %v1230_v63, %v1232_v40  ;;  %v5438_v63 = vld [vmem:[%s5748_s25 + $0x70] sm:$0xff] }
 0x116   : > { %v1325_v38 = vpop.f32.mrf.mxu2  ;;  %v774_v46 = vshll.u32 %v5438_v63, 16 }
 0x117   : > { %v1406_v8 = vadd.f32 %v1325_v38, %v972_v18  ;;  %v893_v19 = vpop.f32.mrf.mxu1  ;;  %v6083_v62 = vpop.f32.mrf.mxu3  ;;  %v2198_v53 = vsel %vm2073_vm4, %v2188_v55, %v2197_v30 }
 0x118   : > { %v2327_v57 = vpop.f32.mrf.mxu0  ;;  %v973_v47 = vadd.f32 %v893_v19, %v5964_v52  ;;  %v1670_v52 = vsel %vm1206_vm2, %v1667_v48, %v1669_v13  ;;  %v770_v48 = vshrl.u32 %v5437_v11, 16 }
 0x119   : > { %v1839_v49 = vadd.f32 %v6035_v14, %v1406_v8  ;;  %v769_v14 = vsel %vm661_vm3, %v764_v33, %v768_v22 }
 0x11b   : > { %v6087_v4 = vadd.f32 %v2325_v39, %v1839_v49 }
 0x11e   : > { %v1327_v17 = vpop.f32.mrf.mxu2 }
 0x11f   : > { %v1407_v18 = vadd.f32 %v1327_v17, %v973_v47  ;;  %v896_v38 = vpop.f32.mrf.mxu1  ;;  %v6092_v51 = vpop.f32.mrf.mxu3 }
 0x120   : > { %v2330_v8 = vpop.f32.mrf.mxu0  ;;  %v974_v36 = vadd.f32 %v896_v38, %v5975_v10  ;;  %v772_v10 = vor.u32 %v770_v48, %v768_v22  ;;  %v776_v38 = vrot.slane %v774_v46, 1  ;;  %v5493_v48 = vld [vmem:[%s5748_s25 + $0x80] sm:$0xff] }
 0x121   : > { %v1840_v39 = vadd.f32 %v6044_v9, %v1407_v18  ;;  %v2200_v9 = vshrl.u32 %v5492_v21, 16  ;;  %v2205_v18 = vrot.slane %v2203_v26, 2 }
 0x122   : > { %4761 = vmatmul.msk.bf16.gmra.mxu1 %vm299_vm1, %v769_v14  ;;  %v5476_v14 = vld [vmem:[%s5748_s25 + $0x88] sm:$0xff] }
 0x123   : > { %4852 = vmatmul.msk.bf16.gmra.mxu2 %vm299_vm1, %v1233_v24  ;;  %v6100_v19 = vadd.f32 %v2327_v57, %v1840_v39  ;;  %5034 = vmatmul.msk.bf16.gmra.mxu0 %vm299_vm1, %v2198_v53  ;;  %v2202_v17 = vrot.slane %v2200_v9, 1  ;;  %v1234_v39 = vrot.slane %v5456_v41, 1  ;;  %v2212_v41 = vshll.u32 %v5493_v48, 16 }
 0x124   : > { %4945 = vmatmul.msk.bf16.gmra.mxu3 %vm299_vm1, %v1670_v52  ;;  %v1671_v52 = vrot.slane %v5476_v14, 1  ;;  %v5457_v14 = vld [vmem:[%s5748_s25 + $0x78] sm:$0xff] }
 0x125   : > { %v2206_v21 = vor.u32 %v2205_v18, %v2202_v17  ;;  %v1235_v9 = vsel %vm1206_vm2, %v1232_v40, %v1234_v39  ;;  %v5439_v40 = vld [vmem:[%s5748_s25 + $0x78] sm:$0xff] }
 0x126   : > { %v1330_v55 = vpop.f32.mrf.mxu2  ;;  %v782_v18 = vshll.u32 %v5439_v40, 16 }
 0x127   : > { %v1408_v49 = vadd.f32 %v1330_v55, %v974_v36  ;;  %v898_v50 = vpop.f32.mrf.mxu1  ;;  %v6107_v33 = vpop.f32.mrf.mxu3  ;;  %v2207_v22 = vsel %vm2073_vm4, %v2197_v30, %v2206_v21 }
 0x128   : > { %v2332_v47 = vpop.f32.mrf.mxu0  ;;  %v975_v53 = vadd.f32 %v898_v50, %v5992_v37  ;;  %v1672_v37 = vsel %vm1206_vm2, %v1669_v13, %v1671_v52  ;;  %v778_v13 = vshrl.u32 %v5438_v63, 16 }
 0x129   : > { %v1841_v57 = vadd.f32 %v6059_v35, %v1408_v49  ;;  %v777_v35 = vsel %vm661_vm3, %v772_v10, %v776_v38 }
 0x12b   : > { %v6111_v24 = vadd.f32 %v2330_v8, %v1841_v57 }
 0x12e   : > { %v1332_v11 = vpop.f32.mrf.mxu2 }
 0x12f   : > { %v1409_v36 = vadd.f32 %v1332_v11, %v975_v53  ;;  %v901_v55 = vpop.f32.mrf.mxu1  ;;  %v6116_v26 = vpop.f32.mrf.mxu3 }
 0x130   : > { %v2335_v49 = vpop.f32.mrf.mxu0  ;;  %v976_v46 = vadd.f32 %v901_v55, %v5859_v5  ;;  %v780_v5 = vor.u32 %v778_v13, %v776_v38  ;;  %v784_v55 = vrot.slane %v782_v18, 1  ;;  %v5494_v13 = vld [vmem:[%s5748_s25 + $0x88] sm:$0xff] }
 0x131   : > { %v1842_v8 = vadd.f32 %v6068_v2, %v1409_v36  ;;  %v2209_v2 = vshrl.u32 %v5493_v48, 16  ;;  %v2214_v36 = vrot.slane %v2212_v41, 2 }
 0x132   : > { %4762 = vmatmul.msk.bf16.gmra.mxu1 %vm299_vm1, %v777_v35  ;;  %v5477_v35 = vld [vmem:[%s5748_s25 + $0x90] sm:$0xff] }
 0x133   : > { %4853 = vmatmul.msk.bf16.gmra.mxu2 %vm299_vm1, %v1235_v9  ;;  %v6124_v50 = vadd.f32 %v2332_v47, %v1842_v8  ;;  %5035 = vmatmul.msk.bf16.gmra.mxu0 %vm299_vm1, %v2207_v22  ;;  %v2211_v11 = vrot.slane %v2209_v2, 1  ;;  %v1236_v8 = vrot.slane %v5457_v14, 1  ;;  %v2221_v14 = vshll.u32 %v5494_v13, 16 }
 0x134   : > { %4946 = vmatmul.msk.bf16.gmra.mxu3 %vm299_vm1, %v1672_v37  ;;  %v1673_v37 = vrot.slane %v5477_v35, 1  ;;  %v786_v35 = vshrl.u32 %v5439_v40, 16 }
 0x135   : > { %6792 = vst [vmem:[#allocation7_spill] sm:$0xff] %v6124_v50  ;;  %v2215_v48 = vor.u32 %v2214_v36, %v2211_v11  ;;  %v1237_v2 = vsel %vm1206_vm2, %v1234_v39, %v1236_v8  ;;  %v6152_v39 = vld [vmem:[%s5748_s25 + $0x80] sm:$0xff] }
 0x136   : > { %v1335_v30 = vpop.f32.mrf.mxu2 }
 0x137   : > { %v1410_v57 = vadd.f32 %v1335_v30, %v976_v46  ;;  %v903_v17 = vpop.f32.mrf.mxu1  ;;  %v6131_v10 = vpop.f32.mrf.mxu3 }
 0x138   : > { %v2337_v53 = vpop.f32.mrf.mxu0  ;;  %v977_v22 = vadd.f32 %v903_v17, %v5875_v16  ;;  %v1674_v16 = vsel %vm1206_vm2, %v1671_v52, %v1673_v37 }
 0x139   : > { %v1843_v47 = vadd.f32 %v6083_v62, %v1410_v57  ;;  %v785_v62 = vsel %vm661_vm3, %v780_v5, %v784_v55  ;;  %v2216_v57 = vsel %vm2073_vm4, %v2206_v21, %v2215_v48  ;;  %v1544_v21 = vld [vmem:[%s5748_s25 + $0x98] sm:$0x1]  ;;  %v790_v5 = vshll.u32 %v6152_v39, 16 }
 0x13a   : > { %v1620_v52 = vunpack.c.l.b16 %v1544_v21 }
 0x13b   : > { %v6135_v9 = vadd.f32 %v2335_v49, %v1843_v47 }
 0x13d   : > { %6793 = vst [vmem:[#allocation8_spill] sm:$0xff] %v6135_v9  ;;  %v565_v9 = vld [vmem:[%s5748_s25 + $0x90] sm:$0x1] }
 0x13e   : > { %v1337_v63 = vpop.f32.mrf.mxu2 }
 0x13f   : > { %v1411_v46 = vadd.f32 %v1337_v63, %v977_v22  ;;  %v906_v30 = vpop.f32.mrf.mxu1  ;;  %v6140_v41 = vpop.f32.mrf.mxu3 }
 0x140   : > { %v2340_v38 = vpop.f32.mrf.mxu0  ;;  %v978_v18 = vadd.f32 %v906_v30, %v5885_v31  ;;  %v2223_v30 = vrot.slane %v2221_v14, 2 }
 0x141   : > { %v1844_v49 = vadd.f32 %v6092_v51, %v1411_v46  ;;  %v2218_v51 = vshrl.u32 %v5494_v13, 16 }
 0x142   : > { %4763 = vmatmul.msk.bf16.gmra.mxu1 %vm299_vm1, %v785_v62  ;;  %v1639_v62 = vpack.c.b16 %v1620_v52, %v1620_v52 }
 0x143   : > { %4854 = vmatmul.msk.bf16.gmra.mxu2 %vm299_vm1, %v1237_v2  ;;  %v6148_v17 = vadd.f32 %v2337_v53, %v1844_v49  ;;  %5036 = vmatmul.msk.bf16.gmra.mxu0 %vm299_vm1, %v2216_v57  ;;  %v6159_v53 = vld [vmem:[%s5748_s25 + $0x80] sm:$0xff]  ;;  %v2220_v31 = vrot.slane %v2218_v51, 1  ;;  %v788_v49 = vor.u32 %v786_v35, %v784_v55  ;;  %v792_v57 = vrot.slane %v790_v5, 1  ;;  %v5225_v35 = vld [vmem:[%s5748_s25 + $0x10] sm:$0xc] }
 0x144   : > { %4947 = vmatmul.msk.bf16.gmra.mxu3 %vm299_vm1, %v1674_v16  ;;  %v6787_v13 = vrot.slane %v6159_v53, 1  ;;  %v1675_v21 = vrot.slane %v1639_v62, 1  ;;  %v5532_v5 = vld [vmem:[%s5748_s25 + $0x10] sm:$0xf0] }
 0x145   : > { %6794 = vst [vmem:[#allocation9_spill] sm:$0xff] %v6148_v17  ;;  %v6168_v16 = vor.u32 %v2223_v30, %v2220_v31  ;;  %v5226_v31 = vor.u32 %v5532_v5, %v5225_v35  ;;  %v1977_v35 = vld [vmem:[%s5748_s25 + $0x98] sm:$0x3] }
 0x146   : > { %v1340_v47 = vpop.f32.mrf.mxu2  ;;  %v1239_v55 = vsel %vm1206_vm2, %v1236_v8, %v6787_v13  ;;  %v6189_v8 = vld [vmem:[%s5748_s25 + $0x88] sm:$0xff] }
 0x147   : > { %v1412_v11 = vadd.f32 %v1340_v47, %v978_v18  ;;  %v908_v36 = vpop.f32.mrf.mxu1  ;;  %v6161_v22 = vpop.f32.mrf.mxu3  ;;  %v2225_v52 = vsel %vm2073_vm4, %v2215_v48, %v6168_v16 }
 0x148   : > { %v2342_v46 = vpop.f32.mrf.mxu0  ;;  %v979_v40 = vadd.f32 %v908_v36, %v5903_v43  ;;  %v1676_v36 = vsel %vm1206_vm2, %v1673_v37, %v1675_v21 }
 0x149   : > { %v1845_v63 = vadd.f32 %v6107_v33, %v1412_v11  ;;  %v5495_v11 = vld [vmem:[%s5748_s25 + $0x90] sm:$0xff] }
 0x14a   : > { %v2227_v30 = vshrl.u32 %v5495_v11, 16  ;;  %v2230_v62 = vshll.u32 %v5495_v11, 16 }
 0x14b   : > { %v6164_v2 = vadd.f32 %v2340_v38, %v1845_v63  ;;  %v793_v38 = vsel %vm661_vm3, %v788_v49, %v792_v57  ;;  %v3509_v49 = vshrl.u32 %v5226_v31, 16 }
 0x14c   : > { %v2229_v11 = vrot.slane %v2227_v30, 1 }
 0x14d   : > { %6795 = vst [vmem:[#allocation10_spill] sm:$0xff] %v6164_v2  ;;  %v3511_v5 = vrot.slane %v3509_v49, 2 }
 0x14e   : > { %v1342_v18 = vpop.f32.mrf.mxu2 }
 0x14f   : > { %v1413_v33 = vadd.f32 %v1342_v18, %v979_v40  ;;  %v911_v51 = vpop.f32.mrf.mxu1  ;;  %v6174_v14 = vpop.f32.mrf.mxu3  ;;  %v3512_v40 = vshll.u32 %v5226_v31, 16 }
 0x150   : > { %v2345_v47 = vpop.f32.mrf.mxu0  ;;  %v980_v48 = vadd.f32 %v911_v51, %v5913_v58 }
 0x151   : > { %v1846_v43 = vadd.f32 %v6116_v26, %v1413_v33  ;;  %v5533_v26 = vld [vmem:[%s5748_s25 + $0x18] sm:$0xff]  ;;  %v3514_v31 = vrot.slane %v3512_v40, 3 }
 0x152   : > { %4764 = vmatmul.msk.bf16.gmra.mxu1 %vm299_vm1, %v793_v38  ;;  %v3517_v18 = vshrl.u32 %v5533_v26, 16  ;;  %v794_v38 = vshrl.u32 %v6152_v39, 16 }
 0x153   : > { %4855 = vmatmul.msk.bf16.gmra.mxu2 %vm299_vm1, %v1239_v55  ;;  %v6185_v63 = vadd.f32 %v2342_v46, %v1846_v43  ;;  %5037 = vmatmul.msk.bf16.gmra.mxu0 %vm299_vm1, %v2225_v52  ;;  %v3520_v46 = vshll.u32 %v5533_v26, 16  ;;  %v798_v55 = vshll.u32 %v6189_v8, 16  ;;  %v6197_v43 = vld [vmem:[%s5748_s25 + $0x88] sm:$0xff]  ;;  %v3515_v30 = vor.u32 %v3514_v31, %v3511_v5 }
 0x154   : > { %4948 = vmatmul.msk.bf16.gmra.mxu3 %vm299_vm1, %v1676_v36  ;;  %v2232_v36 = vrot.slane %v2230_v62, 2  ;;  %v3519_v26 = vrot.slane %v3517_v18, 2  ;;  %v796_v39 = vor.u32 %v794_v38, %v792_v57  ;;  %v641_v18 = vunpack.c.l.b16 %v565_v9 }
 0x155   : > { %6796 = vst [vmem:[#allocation11_spill] sm:$0xff] %v6185_v63  ;;  %v800_v13 = vrot.slane %v798_v55, 1  ;;  %v1240_v63 = vrot.slane %v6197_v43, 1  ;;  %v1110_v55 = vld [vmem:[%s5748_s25 + $0x90] sm:$0x1] }
 0x156   : > { %v1345_v37 = vpop.f32.mrf.mxu2  ;;  %v2233_v17 = vor.u32 %v2232_v36, %v2229_v11  ;;  %v660_v9 = vpack.c.b16 %v641_v18, %v641_v18  ;;  %v5534_v11 = vld [vmem:[%s5748_s25 + $0x20] sm:$0xff] }
 0x157   : > { %v1414_v21 = vadd.f32 %v1345_v37, %v980_v48  ;;  %v913_v33 = vpop.f32.mrf.mxu1  ;;  %v6199_v52 = vpop.f32.mrf.mxu3  ;;  %v3522_v48 = vrot.slane %v3520_v46, 3  ;;  %v801_v40 = vsel %vm661_vm3, %v796_v39, %v800_v13  ;;  %v3529_v5 = vshll.u32 %v5534_v11, 16 }
 0x158   : > { %v2347_v51 = vpop.f32.mrf.mxu0  ;;  %v981_v2 = vadd.f32 %v913_v33, %v5931_v7  ;;  %v2234_v38 = vsel %vm2073_vm4, %v6168_v16, %v2233_v17 }
 0x159   : > { %v1847_v58 = vadd.f32 %v6131_v10, %v1414_v21  ;;  %v2053_v10 = vunpack.c.l.b16 %v1977_v35  ;;  %v3523_v62 = vor.u32 %v3522_v48, %v3519_v26  ;;  %v3526_v35 = vshrl.u32 %v5534_v11, 16 }
 0x15a   : > { %v802_v48 = vshrl.u32 %v6189_v8, 16 }
 0x15b   : > { %v6203_v37 = vadd.f32 %v2345_v47, %v1847_v58  ;;  %v6797_v47 = vrot.slane %v6159_v53, 1  ;;  %v3524_v43 = vsel %vm3507_vm5, %v3515_v30, %v3523_v62  ;;  %v1186_v58 = vunpack.c.l.b16 %v1110_v55 }
 0x15c   : > { %v804_v18 = vor.u32 %v802_v48, %v800_v13 }
 0x15d   : > { %v1241_v57 = vsel %vm1206_vm2, %v6797_v47, %v1240_v63  ;;  %v1205_v39 = vpack.c.b16 %v1186_v58, %v1186_v58  ;;  %v3531_v47 = vrot.slane %v3529_v5, 3  ;;  %v5134_v5 = vld [vmem:[%s5748_s25 + $0x10] sm:$0xc] }
 0x15e   : > { %v1347_v21 = vpop.f32.mrf.mxu2 }
 0x15f   : > { %v1415_v50 = vadd.f32 %v1347_v21, %v981_v2  ;;  %v916_v49 = vpop.f32.mrf.mxu1  ;;  %v6212_v46 = vpop.f32.mrf.mxu3  ;;  %v2072_v2 = vpack.c.b16 %v2053_v10, %v2053_v10 }
 0x160   : > { %v2350_v33 = vpop.f32.mrf.mxu0 }
 0x161   : > { %v1848_v7 = vadd.f32 %v6140_v41, %v1415_v50  ;;  %v982_v50 = vadd.f32 %v916_v49, %v5941_v27  ;;  %v2236_v41 = vshrl.u32 %v2072_v2, 16  ;;  %v2239_v36 = vshll.u32 %v2072_v2, 16 }
 0x162   : > { %4765 = vmatmul.msk.bf16.gmra.mxu1 %vm299_vm1, %v801_v40  ;;  %v3528_v49 = vrot.slane %v3526_v35, 2  ;;  %v5496_v35 = vld [vmem:[%s5748_s25 + $0x8] sm:$0xf0] }
 0x163   : > { %4856 = vmatmul.msk.bf16.gmra.mxu2 %vm299_vm1, %v1241_v57  ;;  %v6221_v53 = vadd.f32 %v2347_v51, %v1848_v7  ;;  %5038 = vmatmul.msk.bf16.gmra.mxu0 %vm299_vm1, %v2234_v38  ;;  %v806_v51 = vshll.u32 %v660_v9, 16  ;;  %v2238_v40 = vrot.slane %v2236_v41, 1  ;;  %v2241_v27 = vrot.slane %v2239_v36, 2 }
 0x164   : > { %5295 = vmatmul.msk.bf16.vlgmr.msra.gmra.mxu3 %vm299_vm1, %v3524_v43  ;;  %v1242_v38 = vrot.slane %v1205_v39, 1  ;;  %v3532_v43 = vor.u32 %v3531_v47, %v3528_v49 }
 0x165   : > { %v808_v7 = vrot.slane %v806_v51, 1  ;;  %v2242_v2 = vor.u32 %v2241_v27, %v2238_v40  ;;  %v5515_v27 = vld [vmem:[%s5748_s25 + $0x18] sm:$0xff] }
 0x166   : > { %v1350_v16 = vpop.f32.mrf.mxu2  ;;  %v3533_v41 = vsel %vm3507_vm5, %v3523_v62, %v3532_v43  ;;  %v5316_v62 = vld [vmem:[%s5748_s25 + $0x10] sm:$0x8] }
 0x167   : > { %v1416_v31 = vadd.f32 %v1350_v16, %v982_v50  ;;  %v918_v26 = vpop.f32.mrf.mxu1  ;;  %v6228_v10 = vpop.f32.mrf.mxu3  ;;  %v809_v58 = vsel %vm661_vm3, %v804_v18, %v808_v7  ;;  %v2243_v50 = vsel %vm2073_vm4, %v2233_v17, %v2242_v2  ;;  %v5535_v16 = vld [vmem:[%s5748_s25 + $0x28] sm:$0xff]  ;;  %v5551_v7 = vld [vmem:[%s5748_s25 + $0x18] sm:$0xff] }
 0x168   : > { %v2352_v30 = vpop.f32.mrf.mxu0  ;;  %v983_v55 = vadd.f32 %v918_v26, %v5959_v45  ;;  %v5550_v26 = vld [vmem:[%s5748_s25 + $0x10] sm:$0xf0]  ;;  %v3535_v48 = vshrl.u32 %v5535_v16, 16  ;;  %v3538_v51 = vshll.u32 %v5535_v16, 16 }
 0x169   : > { %v1849_v21 = vadd.f32 %v6161_v22, %v1416_v31  ;;  %v5514_v31 = vld [vmem:[%s5748_s25 + $0x10] sm:$0xf0] }
 0x16a   : > { %v5135_v49 = vor.u32 %v5514_v31, %v5134_v5  ;;  %v3540_v2 = vrot.slane %v3538_v51, 3 }
 0x16b   : > { %v6231_v57 = vadd.f32 %v2350_v33, %v1849_v21  ;;  %v1243_v33 = vsel %vm1206_vm2, %v1240_v63, %v1242_v38  ;;  %v5043_v63 = vld [vmem:[%s5748_s25 + $0x8] sm:$0xc]  ;;  %v5317_v38 = vor.u32 %v5550_v26, %v5316_v62 }
 0x16c   : > { %v5044_v40 = vor.u32 %v5496_v35, %v5043_v63 }
 0x16e   : > { %v1352_v8 = vpop.f32.mrf.mxu2 }
 0x16f   : > { %v1417_v9 = vadd.f32 %v1352_v8, %v983_v55  ;;  %v921_v22 = vpop.f32.mrf.mxu1  ;;  %v6236_v11 = vpop.f32.mrf.mxu3  ;;  %v3537_v55 = vrot.slane %v3535_v48, 2  ;;  %v5536_v48 = vld [vmem:[%s5748_s25 + $0x30] sm:$0xff] }
 0x170   : > { %v2355_v45 = vpop.f32.mrf.mxu0 }
 0x171   : > { %v1850_v13 = vadd.f32 %v6174_v14, %v1417_v9  ;;  %v984_v14 = vadd.f32 %v921_v22, %v5969_v3  ;;  %v2641_v9 = vrot.slane %v5044_v40, 2 }
 0x172   : > { %4766 = vmatmul.msk.bf16.gmra.mxu1 %vm299_vm1, %v809_v58  ;;  %v3074_v58 = vrot.slane %v5135_v49, 2 }
 0x173   : > { %4857 = vmatmul.msk.bf16.gmra.mxu2 %vm299_vm1, %v1243_v33  ;;  %v6243_v36 = vadd.f32 %v2352_v30, %v1850_v13  ;;  %5039 = vmatmul.msk.bf16.gmra.mxu0 %vm299_vm1, %v2243_v50  ;;  %v6256_v30 = vld [vmem:[%s5748_s25 + $0x10] sm:$0xff]  ;;  %v3075_v33 = vrot.slane %v5515_v27, 2  ;;  %v4075_v50 = vrot.slane %v5317_v38, 3  ;;  %v5516_v27 = vld [vmem:[%s5748_s25 + $0x20] sm:$0xff] }
 0x174   : > { %5296 = vmatmul.msk.bf16.gmra.mxu3 %vm299_vm1, %v3533_v41  ;;  %v2642_v22 = vrot.slane %v6256_v30, 2  ;;  %v4076_v41 = vrot.slane %v5551_v7, 3  ;;  %v5552_v7 = vld [vmem:[%s5748_s25 + $0x20] sm:$0xff] }
 0x176   : > { %v1355_v17 = vpop.f32.mrf.mxu2  ;;  %v2643_v35 = vsel %vm2640_vm6, %v2641_v9, %v2642_v22  ;;  %v3077_v9 = vrot.slane %v5516_v27, 2 }
 0x177   : > { %v1418_v39 = vadd.f32 %v1355_v17, %v984_v14  ;;  %v923_v21 = vpop.f32.mrf.mxu1  ;;  %v6259_v47 = vpop.f32.mrf.mxu3 }
 0x178   : > { %v2357_v18 = vpop.f32.mrf.mxu0  ;;  %v985_v13 = vadd.f32 %v923_v21, %v5987_v28  ;;  %v4077_v28 = vsel %vm4074_vm7, %v4075_v50, %v4076_v41  ;;  %v3547_v21 = vshll.u32 %v5536_v48, 16 }
 0x179   : > { %v1851_v3 = vadd.f32 %v6199_v52, %v1418_v39  ;;  %v3541_v52 = vor.u32 %v3540_v2, %v3537_v55  ;;  %v3544_v39 = vshrl.u32 %v5536_v48, 16 }
 0x17a   : > { %v3549_v55 = vrot.slane %v3547_v21, 3 }
 0x17b   : > { %v6263_v8 = vadd.f32 %v2355_v45, %v1851_v3  ;;  %v3076_v45 = vsel %vm2640_vm6, %v3074_v58, %v3075_v33  ;;  %v3542_v62 = vsel %vm3507_vm5, %v3532_v43, %v3541_v52  ;;  %v5498_v43 = vld [vmem:[%s5748_s25 + $0x18] sm:$0xff]  ;;  %v3546_v38 = vrot.slane %v3544_v39, 2  ;;  %v5517_v39 = vld [vmem:[%s5748_s25 + $0x28] sm:$0xff] }
 0x17e   : > { %v1357_v63 = vpop.f32.mrf.mxu2 }
 0x17f   : > { %v1419_v16 = vadd.f32 %v1357_v63, %v985_v13  ;;  %v926_v14 = vpop.f32.mrf.mxu1  ;;  %v6269_v5 = vpop.f32.mrf.mxu3  ;;  %v4078_v13 = vrot.slane %v5552_v7, 3  ;;  %v3550_v63 = vor.u32 %v3549_v55, %v3546_v38  ;;  %v3079_v7 = vrot.slane %v5517_v39, 2 }
 0x180   : > { %v2360_v17 = vpop.f32.mrf.mxu0  ;;  %v986_v51 = vadd.f32 %v926_v14, %v5873_v15  ;;  %v2644_v15 = vrot.slane %v5498_v43, 2  ;;  %v5553_v43 = vld [vmem:[%s5748_s25 + $0x28] sm:$0xff] }
 0x181   : > { %v1852_v31 = vadd.f32 %v6212_v46, %v1419_v16  ;;  %v4080_v55 = vrot.slane %v5553_v43, 3 }
 0x182   : > { %5113 = vmatmul.msk.bf16.vlgmr.msra.gmra.mxu1 %vm299_vm1, %v2643_v35  ;;  %v2645_v35 = vsel %vm2640_vm6, %v2642_v22, %v2644_v15  ;;  %v5537_v22 = vld [vmem:[%s5748_s25 + $0x38] sm:$0xff] }
 0x183   : > { %5204 = vmatmul.msk.bf16.vlgmr.msra.gmra.mxu2 %vm299_vm1, %v3076_v45  ;;  %v6276_v26 = vadd.f32 %v2357_v18, %v1852_v31  ;;  %5386 = vmatmul.msk.bf16.vlgmr.msra.gmra.mxu0 %vm299_vm1, %v4077_v28  ;;  %v4079_v28 = vsel %vm4074_vm7, %v4076_v41, %v4078_v13  ;;  %v3553_v48 = vshrl.u32 %v5537_v22, 16 }
 0x184   : > { %5297 = vmatmul.msk.bf16.gmra.mxu3 %vm299_vm1, %v3542_v62 }
 0x185   : > { %v3555_v27 = vrot.slane %v3553_v48, 2  ;;  %v5518_v48 = vld [vmem:[%s5748_s25 + $0x30] sm:$0xff] }
 0x186   : > { %v1360_v46 = vpop.f32.mrf.mxu2  ;;  %v3081_v43 = vrot.slane %v5518_v48, 2 }
 0x187   : > { %v1420_v30 = vadd.f32 %v1360_v46, %v986_v51  ;;  %v928_v40 = vpop.f32.mrf.mxu1  ;;  %v6284_v49 = vpop.f32.mrf.mxu3  ;;  %v3556_v51 = vshll.u32 %v5537_v22, 16 }
 0x188   : > { %v2362_v18 = vpop.f32.mrf.mxu0  ;;  %v987_v58 = vadd.f32 %v928_v40, %v5883_v29  ;;  %v3551_v29 = vsel %vm3507_vm5, %v3541_v52, %v3550_v63  ;;  %v5499_v52 = vld [vmem:[%s5748_s25 + $0x20] sm:$0xff] }
 0x189   : > { %v1853_v3 = vadd.f32 %v6228_v10, %v1420_v30  ;;  %v3078_v10 = vsel %vm2640_vm6, %v3075_v33, %v3077_v9 }
 0x18b   : > { %v6288_v2 = vadd.f32 %v2360_v17, %v1853_v3  ;;  %v3558_v3 = vrot.slane %v3556_v51, 3 }
 0x18e   : > { %v1362_v50 = vpop.f32.mrf.mxu2 }
 0x18f   : > { %v1421_v16 = vadd.f32 %v1362_v50, %v987_v58  ;;  %v931_v14 = vpop.f32.mrf.mxu1  ;;  %v6293_v45 = vpop.f32.mrf.mxu3  ;;  %v3559_v50 = vor.u32 %v3558_v3, %v3555_v27 }
 0x190   : > { %v2365_v17 = vpop.f32.mrf.mxu0  ;;  %v988_v33 = vadd.f32 %v931_v14, %v5901_v42  ;;  %v2646_v42 = vrot.slane %v5499_v52, 2  ;;  %v5554_v52 = vld [vmem:[%s5748_s25 + $0x30] sm:$0xff] }
 0x191   : > { %v1854_v31 = vadd.f32 %v6236_v11, %v1421_v16  ;;  %v4082_v3 = vrot.slane %v5554_v52, 3 }
 0x192   : > { %5114 = vmatmul.msk.bf16.gmra.mxu1 %vm299_vm1, %v2645_v35  ;;  %v2647_v35 = vsel %vm2640_vm6, %v2644_v15, %v2646_v42  ;;  %v5538_v15 = vld [vmem:[%s5748_s25 + $0x40] sm:$0xff] }
 0x193   : > { %5205 = vmatmul.msk.bf16.gmra.mxu2 %vm299_vm1, %v3078_v10  ;;  %v6300_v62 = vadd.f32 %v2362_v18, %v1854_v31  ;;  %5387 = vmatmul.msk.bf16.gmra.mxu0 %vm299_vm1, %v4079_v28  ;;  %v4081_v28 = vsel %vm4074_vm7, %v4078_v13, %v4080_v55  ;;  %v3562_v22 = vshrl.u32 %v5538_v15, 16 }
 0x194   : > { %5298 = vmatmul.msk.bf16.gmra.mxu3 %vm299_vm1, %v3551_v29 }
 0x195   : > { %v3564_v39 = vrot.slane %v3562_v22, 2  ;;  %v5519_v22 = vld [vmem:[%s5748_s25 + $0x38] sm:$0xff] }
 0x196   : > { %v1365_v11 = vpop.f32.mrf.mxu2  ;;  %v3083_v52 = vrot.slane %v5519_v22, 2 }
 0x197   : > { %v1422_v41 = vadd.f32 %v1365_v11, %v988_v33  ;;  %v933_v46 = vpop.f32.mrf.mxu1  ;;  %v6308_v21 = vpop.f32.mrf.mxu3  ;;  %v3565_v33 = vshll.u32 %v5538_v15, 16 }
 0x198   : > { %v2367_v40 = vpop.f32.mrf.mxu0  ;;  %v989_v38 = vadd.f32 %v933_v46, %v5911_v56  ;;  %v3560_v56 = vsel %vm3507_vm5, %v3550_v63, %v3559_v50  ;;  %v5500_v63 = vld [vmem:[%s5748_s25 + $0x28] sm:$0xff] }
 0x199   : > { %v1855_v30 = vadd.f32 %v6259_v47, %v1422_v41  ;;  %v3080_v47 = vsel %vm2640_vm6, %v3077_v9, %v3079_v7 }
 0x19b   : > { %v6312_v18 = vadd.f32 %v2365_v17, %v1855_v30  ;;  %v3567_v30 = vrot.slane %v3565_v33, 3 }
 0x19e   : > { %v1367_v58 = vpop.f32.mrf.mxu2 }
 0x19f   : > { %v1423_v16 = vadd.f32 %v1367_v58, %v989_v38  ;;  %v936_v14 = vpop.f32.mrf.mxu1  ;;  %v6317_v10 = vpop.f32.mrf.mxu3  ;;  %v3568_v58 = vor.u32 %v3567_v30, %v3564_v39 }
 0x1a0   : > { %v2370_v17 = vpop.f32.mrf.mxu0  ;;  %v990_v9 = vadd.f32 %v936_v14, %v5929_v6  ;;  %v2648_v6 = vrot.slane %v5500_v63, 2  ;;  %v5555_v63 = vld [vmem:[%s5748_s25 + $0x38] sm:$0xff] }
 0x1a1   : > { %v1856_v31 = vadd.f32 %v6269_v5, %v1423_v16  ;;  %v4084_v30 = vrot.slane %v5555_v63, 3 }
 0x1a2   : > { %5115 = vmatmul.msk.bf16.gmra.mxu1 %vm299_vm1, %v2647_v35  ;;  %v2649_v35 = vsel %vm2640_vm6, %v2646_v42, %v2648_v6  ;;  %v5539_v42 = vld [vmem:[%s5748_s25 + $0x48] sm:$0xff] }
 0x1a3   : > { %5206 = vmatmul.msk.bf16.gmra.mxu2 %vm299_vm1, %v3080_v47  ;;  %v6324_v29 = vadd.f32 %v2367_v40, %v1856_v31  ;;  %5388 = vmatmul.msk.bf16.gmra.mxu0 %vm299_vm1, %v4081_v28  ;;  %v4083_v28 = vsel %vm4074_vm7, %v4080_v55, %v4082_v3  ;;  %v3571_v15 = vshrl.u32 %v5539_v42, 16 }
 0x1a4   : > { %5299 = vmatmul.msk.bf16.gmra.mxu3 %vm299_vm1, %v3560_v56 }
 0x1a5   : > { %v3573_v48 = vrot.slane %v3571_v15, 2  ;;  %v5520_v15 = vld [vmem:[%s5748_s25 + $0x40] sm:$0xff] }
 0x1a6   : > { %v1370_v5 = vpop.f32.mrf.mxu2  ;;  %v3085_v63 = vrot.slane %v5520_v15, 2 }
 0x1a7   : > { %v1424_v13 = vadd.f32 %v1370_v5, %v990_v9  ;;  %v938_v11 = vpop.f32.mrf.mxu1  ;;  %v6332_v51 = vpop.f32.mrf.mxu3  ;;  %v3574_v9 = vshll.u32 %v5539_v42, 16 }
 0x1a8   : > { %v2372_v46 = vpop.f32.mrf.mxu0  ;;  %v991_v27 = vadd.f32 %v938_v11, %v5939_v25  ;;  %v3569_v25 = vsel %vm3507_vm5, %v3559_v50, %v3568_v58  ;;  %v5501_v50 = vld [vmem:[%s5748_s25 + $0x30] sm:$0xff] }
 0x1a9   : > { %v1857_v41 = vadd.f32 %v6284_v49, %v1424_v13  ;;  %v3082_v49 = vsel %vm2640_vm6, %v3079_v7, %v3081_v43 }
 0x1ab   : > { %v6336_v40 = vadd.f32 %v2370_v17, %v1857_v41  ;;  %v3576_v41 = vrot.slane %v3574_v9, 3 }
 0x1ae   : > { %v1372_v38 = vpop.f32.mrf.mxu2 }
 0x1af   : > { %v1425_v16 = vadd.f32 %v1372_v38, %v991_v27  ;;  %v941_v14 = vpop.f32.mrf.mxu1  ;;  %v6341_v47 = vpop.f32.mrf.mxu3  ;;  %v3577_v38 = vor.u32 %v3576_v41, %v3573_v48 }
 0x1b0   : > { %v2375_v17 = vpop.f32.mrf.mxu0  ;;  %v992_v7 = vadd.f32 %v941_v14, %v5957_v44  ;;  %v2650_v44 = vrot.slane %v5501_v50, 2  ;;  %v5556_v50 = vld [vmem:[%s5748_s25 + $0x40] sm:$0xff] }
 0x1b1   : > { %v1858_v31 = vadd.f32 %v6293_v45, %v1425_v16  ;;  %v4086_v41 = vrot.slane %v5556_v50, 3 }
 0x1b2   : > { %5116 = vmatmul.msk.bf16.gmra.mxu1 %vm299_vm1, %v2649_v35  ;;  %v2651_v35 = vsel %vm2640_vm6, %v2648_v6, %v2650_v44  ;;  %v5540_v6 = vld [vmem:[%s5748_s25 + $0x50] sm:$0xff] }
 0x1b3   : > { %5207 = vmatmul.msk.bf16.gmra.mxu2 %vm299_vm1, %v3082_v49  ;;  %v6348_v56 = vadd.f32 %v2372_v46, %v1858_v31  ;;  %5389 = vmatmul.msk.bf16.gmra.mxu0 %vm299_vm1, %v4083_v28  ;;  %v4085_v28 = vsel %vm4074_vm7, %v4082_v3, %v4084_v30  ;;  %v3580_v42 = vshrl.u32 %v5540_v6, 16 }
 0x1b4   : > { %5300 = vmatmul.msk.bf16.gmra.mxu3 %vm299_vm1, %v3569_v25 }
 0x1b5   : > { %v3582_v22 = vrot.slane %v3580_v42, 2  ;;  %v5521_v42 = vld [vmem:[%s5748_s25 + $0x48] sm:$0xff] }
 0x1b6   : > { %v1375_v45 = vpop.f32.mrf.mxu2  ;;  %v3087_v50 = vrot.slane %v5521_v42, 2  ;;  %v5558_v42 = vld [vmem:[%s5748_s25 + $0x50] sm:$0xff] }
 0x1b7   : > { %v1426_v55 = vadd.f32 %v1375_v45, %v992_v7  ;;  %v943_v5 = vpop.f32.mrf.mxu1  ;;  %v6356_v33 = vpop.f32.mrf.mxu3  ;;  %v3583_v7 = vshll.u32 %v5540_v6, 16 }
 0x1b8   : > { %v2377_v11 = vpop.f32.mrf.mxu0  ;;  %v993_v39 = vadd.f32 %v943_v5, %v5967_v0  ;;  %v3578_v0 = vsel %vm3507_vm5, %v3568_v58, %v3577_v38  ;;  %v5502_v58 = vld [vmem:[%s5748_s25 + $0x38] sm:$0xff] }
 0x1b9   : > { %v1859_v13 = vadd.f32 %v6308_v21, %v1426_v55  ;;  %v3084_v21 = vsel %vm2640_vm6, %v3081_v43, %v3083_v52 }
 0x1bb   : > { %v6360_v46 = vadd.f32 %v2375_v17, %v1859_v13  ;;  %v3585_v13 = vrot.slane %v3583_v7, 3 }
 0x1be   : > { %v1377_v27 = vpop.f32.mrf.mxu2 }
 0x1bf   : > { %v1427_v16 = vadd.f32 %v1377_v27, %v993_v39  ;;  %v946_v14 = vpop.f32.mrf.mxu1  ;;  %v6365_v49 = vpop.f32.mrf.mxu3  ;;  %v3586_v27 = vor.u32 %v3585_v13, %v3582_v22 }
 0x1c0   : > { %v2380_v17 = vpop.f32.mrf.mxu0  ;;  %v994_v43 = vadd.f32 %v946_v14, %v5985_v23  ;;  %v2652_v23 = vrot.slane %v5502_v58, 2  ;;  %v5557_v58 = vld [vmem:[%s5748_s25 + $0x48] sm:$0xff] }
 0x1c1   : > { %v1860_v31 = vadd.f32 %v6317_v10, %v1427_v16  ;;  %v4088_v13 = vrot.slane %v5557_v58, 3 }
 0x1c2   : > { %5117 = vmatmul.msk.bf16.gmra.mxu1 %vm299_vm1, %v2651_v35  ;;  %v2653_v35 = vsel %vm2640_vm6, %v2650_v44, %v2652_v23  ;;  %v5541_v44 = vld [vmem:[%s5748_s25 + $0x58] sm:$0xff] }
 0x1c3   : > { %5208 = vmatmul.msk.bf16.gmra.mxu2 %vm299_vm1, %v3084_v21  ;;  %v6372_v25 = vadd.f32 %v2377_v11, %v1860_v31  ;;  %5390 = vmatmul.msk.bf16.gmra.mxu0 %vm299_vm1, %v4085_v28  ;;  %v4087_v28 = vsel %vm4074_vm7, %v4084_v30, %v4086_v41  ;;  %v3589_v6 = vshrl.u32 %v5541_v44, 16 }
 0x1c4   : > { %5301 = vmatmul.msk.bf16.gmra.mxu3 %vm299_vm1, %v3578_v0 }
 0x1c5   : > { %v3591_v15 = vrot.slane %v3589_v6, 2 }
 0x1c6   : > { %v1380_v10 = vpop.f32.mrf.mxu2 }
 0x1c7   : > { %v1428_v3 = vadd.f32 %v1380_v10, %v994_v43  ;;  %v948_v45 = vpop.f32.mrf.mxu1  ;;  %v6380_v9 = vpop.f32.mrf.mxu3  ;;  %v3592_v43 = vshll.u32 %v5541_v44, 16 }
 0x1c8   : > { %v2382_v5 = vpop.f32.mrf.mxu0  ;;  %v995_v48 = vadd.f32 %v948_v45, %v5995_v54  ;;  %v3587_v54 = vsel %vm3507_vm5, %v3577_v38, %v3586_v27  ;;  %v5503_v38 = vld [vmem:[%s5748_s25 + $0x40] sm:$0xff] }
 0x1c9   : > { %v1861_v55 = vadd.f32 %v6332_v51, %v1428_v3  ;;  %v3086_v51 = vsel %vm2640_vm6, %v3083_v52, %v3085_v63 }
 0x1cb   : > { %v6384_v11 = vadd.f32 %v2380_v17, %v1861_v55  ;;  %v3594_v55 = vrot.slane %v3592_v43, 3  ;;  %v5522_v43 = vld [vmem:[%s5748_s25 + $0x50] sm:$0xff] }
 0x1ce   : > { %v1382_v39 = vpop.f32.mrf.mxu2 }
 0x1cf   : > { %v1429_v16 = vadd.f32 %v1382_v39, %v995_v48  ;;  %v951_v14 = vpop.f32.mrf.mxu1  ;;  %v6389_v21 = vpop.f32.mrf.mxu3  ;;  %v3595_v39 = vor.u32 %v3594_v55, %v3591_v15  ;;  %v3089_v55 = vrot.slane %v5522_v43, 2 }
 0x1d0   : > { %v2385_v17 = vpop.f32.mrf.mxu0  ;;  %v996_v52 = vadd.f32 %v951_v14, %v5878_v20  ;;  %v2654_v20 = vrot.slane %v5503_v38, 2 }
 0x1d1   : > { %v1862_v31 = vadd.f32 %v6341_v47, %v1429_v16 }
 0x1d2   : > { %5118 = vmatmul.msk.bf16.gmra.mxu1 %vm299_vm1, %v2653_v35  ;;  %v2655_v35 = vsel %vm2640_vm6, %v2652_v23, %v2654_v20  ;;  %v5542_v23 = vld [vmem:[%s5748_s25 + $0x60] sm:$0xff] }
 0x1d3   : > { %5209 = vmatmul.msk.bf16.gmra.mxu2 %vm299_vm1, %v3086_v51  ;;  %v6396_v0 = vadd.f32 %v2382_v5, %v1862_v31  ;;  %5391 = vmatmul.msk.bf16.gmra.mxu0 %vm299_vm1, %v4087_v28  ;;  %v4089_v28 = vsel %vm4074_vm7, %v4086_v41, %v4088_v13 }
 0x1d4   : > { %5302 = vmatmul.msk.bf16.gmra.mxu3 %vm299_vm1, %v3587_v54 }
 0x1d6   : > { %v1385_v47 = vpop.f32.mrf.mxu2 }
 0x1d7   : > { %v1430_v30 = vadd.f32 %v1385_v47, %v996_v52  ;;  %v953_v10 = vpop.f32.mrf.mxu1  ;;  %v6404_v7 = vpop.f32.mrf.mxu3  ;;  %v3598_v52 = vshrl.u32 %v5542_v23, 16  ;;  %v3601_v47 = vshll.u32 %v5542_v23, 16 }
 0x1d8   : > { %v2387_v45 = vpop.f32.mrf.mxu0  ;;  %v997_v22 = vadd.f32 %v953_v10, %v5889_v34  ;;  %v3596_v34 = vsel %vm3507_vm5, %v3586_v27, %v3595_v39  ;;  %v5504_v27 = vld [vmem:[%s5748_s25 + $0x48] sm:$0xff] }
 0x1d9   : > { %v1863_v3 = vadd.f32 %v6356_v33, %v1430_v30  ;;  %v3088_v33 = vsel %vm2640_vm6, %v3085_v63, %v3087_v50  ;;  %v6798_v63 = vld [vmem:[#allocation3_spill] sm:$0xff]  ;;  %v2656_v15 = vrot.slane %v5504_v27, 2  ;;  %v5523_v27 = vld [vmem:[%s5748_s25 + $0x58] sm:$0xff] }
 0x1db   : > { %v6408_v5 = vadd.f32 %v2385_v17, %v1863_v3  ;;  %v3600_v3 = vrot.slane %v3598_v52, 2 }
 0x1de   : > { %v1387_v48 = vpop.f32.mrf.mxu2 }
 0x1df   : > { %v1431_v16 = vadd.f32 %v1387_v48, %v997_v22  ;;  %v956_v14 = vpop.f32.mrf.mxu1  ;;  %v6413_v51 = vpop.f32.mrf.mxu3  ;;  %v6799_v22 = vld [vmem:[#allocation4_spill] sm:$0xff] }
 0x1e0   : > { %v2390_v17 = vpop.f32.mrf.mxu0  ;;  %v998_v44 = vadd.f32 %v956_v14, %v6798_v63 }
 0x1e1   : > { %v1864_v31 = vadd.f32 %v6365_v49, %v1431_v16  ;;  %v4090_v16 = vrot.slane %v5558_v42, 3  ;;  %v5559_v42 = vld [vmem:[%s5748_s25 + $0x58] sm:$0xff] }
 0x1e2   : > { %5119 = vmatmul.msk.bf16.gmra.mxu1 %vm299_vm1, %v2655_v35 }
 0x1e3   : > { %5210 = vmatmul.msk.bf16.gmra.mxu2 %vm299_vm1, %v3088_v33  ;;  %v6420_v54 = vadd.f32 %v2387_v45, %v1864_v31  ;;  %5392 = vmatmul.msk.bf16.gmra.mxu0 %vm299_vm1, %v4089_v28  ;;  %v3603_v45 = vrot.slane %v3601_v47, 3  ;;  %v2657_v28 = vsel %vm2640_vm6, %v2654_v20, %v2656_v15  ;;  %v4091_v63 = vsel %vm4074_vm7, %v4088_v13, %v4090_v16  ;;  %v5543_v20 = vld [vmem:[%s5748_s25 + $0x68] sm:$0xff] }
 0x1e4   : > { %5303 = vmatmul.msk.bf16.gmra.mxu3 %vm299_vm1, %v3596_v34  ;;  %v3607_v47 = vshrl.u32 %v5543_v20, 16 }
 0x1e5   : > { %v3604_v35 = vor.u32 %v3603_v45, %v3600_v3 }
 0x1e6   : > { %v1390_v49 = vpop.f32.mrf.mxu2  ;;  %v3609_v3 = vrot.slane %v3607_v47, 2 }
 0x1e7   : > { %v1432_v41 = vadd.f32 %v1390_v49, %v998_v44  ;;  %v958_v6 = vpop.f32.mrf.mxu1  ;;  %v6428_v30 = vpop.f32.mrf.mxu3  ;;  %v3605_v44 = vsel %vm3507_vm5, %v3595_v39, %v3604_v35  ;;  %v5505_v39 = vld [vmem:[%s5748_s25 + $0x50] sm:$0xff] }
 0x1e8   : > { %v2392_v38 = vpop.f32.mrf.mxu0  ;;  %v999_v48 = vadd.f32 %v958_v6, %v6799_v22 }
 0x1e9   : > { %v1865_v10 = vadd.f32 %v6380_v9, %v1432_v41  ;;  %v3090_v9 = vsel %vm2640_vm6, %v3087_v50, %v3089_v55  ;;  %v6800_v50 = vld [vmem:[#allocation5_spill] sm:$0xff]  ;;  %v3610_v41 = vshll.u32 %v5543_v20, 16 }
 0x1eb   : > { %v6432_v58 = vadd.f32 %v2390_v17, %v1865_v10  ;;  %v3612_v45 = vrot.slane %v3610_v41, 3 }
 0x1ee   : > { %v1392_v14 = vpop.f32.mrf.mxu2 }
 0x1ef   : > { %v1433_v33 = vadd.f32 %v1392_v14, %v999_v48  ;;  %v961_v31 = vpop.f32.mrf.mxu1  ;;  %v6437_v34 = vpop.f32.mrf.mxu3  ;;  %v2658_v48 = vrot.slane %v5505_v39, 2  ;;  %v3091_v14 = vrot.slane %v5523_v27, 2  ;;  %v6478_v27 = vld [vmem:[%s5748_s25 + $0x60] sm:$0xff] }
 0x1f0   : > { %v2395_v17 = vpop.f32.mrf.mxu0  ;;  %v1000_v52 = vadd.f32 %v961_v31, %v6800_v50 }
 0x1f1   : > { %v1866_v23 = vadd.f32 %v6389_v21, %v1433_v33  ;;  %v6801_v33 = vld [vmem:[#allocation6_spill] sm:$0xff]  ;;  %v2659_v20 = vsel %vm2640_vm6, %v2656_v15, %v2658_v48  ;;  %v5544_v15 = vld [vmem:[%s5748_s25 + $0x70] sm:$0xff] }
 0x1f2   : > { %5120 = vmatmul.msk.bf16.gmra.mxu1 %vm299_vm1, %v2657_v28  ;;  %v4092_v28 = vrot.slane %v5559_v42, 3  ;;  %v6483_v42 = vld [vmem:[%s5748_s25 + $0x60] sm:$0xff] }
 0x1f3   : > { %5211 = vmatmul.msk.bf16.gmra.mxu2 %vm299_vm1, %v3090_v9  ;;  %v6444_v49 = vadd.f32 %v2392_v38, %v1866_v23  ;;  %5393 = vmatmul.msk.bf16.gmra.mxu0 %vm299_vm1, %v4091_v63  ;;  %v3613_v23 = vor.u32 %v3612_v45, %v3609_v3 }
 0x1f4   : > { %5304 = vmatmul.msk.bf16.gmra.mxu3 %vm299_vm1, %v3605_v44 }
 0x1f5   : > { %v3614_v47 = vsel %vm3507_vm5, %v3604_v35, %v3613_v23  ;;  %v6475_v35 = vld [vmem:[%s5748_s25 + $0x58] sm:$0xff] }
 0x1f6   : > { %v1395_v21 = vpop.f32.mrf.mxu2 }
 0x1f7   : > { %v1434_v13 = vadd.f32 %v1395_v21, %v1000_v52  ;;  %v963_v6 = vpop.f32.mrf.mxu1  ;;  %v6452_v43 = vpop.f32.mrf.mxu3  ;;  %v4093_v21 = vsel %vm4074_vm7, %v4090_v16, %v4092_v28 }
 0x1f8   : > { %v2397_v38 = vpop.f32.mrf.mxu0  ;;  %v1001_v31 = vadd.f32 %v963_v6, %v6801_v33  ;;  %v3619_v6 = vshll.u32 %v5544_v15, 16  ;;  %v2660_v33 = vrot.slane %v6475_v35, 2 }
 0x1f9   : > { %v1867_v10 = vadd.f32 %v6404_v7, %v1434_v13  ;;  %v3092_v7 = vsel %vm2640_vm6, %v3089_v55, %v3091_v14  ;;  %v3616_v13 = vshrl.u32 %v5544_v15, 16 }
 0x1fa   : > { %v3621_v45 = vrot.slane %v3619_v6, 3 }
 0x1fb   : > { %v6456_v22 = vadd.f32 %v2395_v17, %v1867_v10  ;;  %v3618_v3 = vrot.slane %v3616_v13, 2 }
 0x1fe   : > { %v1397_v9 = vpop.f32.mrf.mxu2 }
 0x1ff   : > { %v1435_v63 = vadd.f32 %v1397_v9, %v1001_v31  ;;  %v2744_v44 = vpop.f32.mrf.mxu1  ;;  %v6461_v50 = vpop.f32.mrf.mxu3  ;;  %v3093_v31 = vrot.slane %v6478_v27, 2 }
 0x200   : > { %v4178_v17 = vpop.f32.mrf.mxu0  ;;  %v2834_v55 = vadd.f32 %v2744_v44, %v6015_v12 }
 0x201   : > { %v1868_v52 = vadd.f32 %v6413_v51, %v1435_v63  ;;  %v4094_v63 = vrot.slane %v6483_v42, 3  ;;  %v3094_v15 = vsel %vm2640_vm6, %v3091_v14, %v3093_v31 }
 0x202   : > { %5121 = vmatmul.msk.bf16.gmra.mxu1 %vm299_vm1, %v2659_v20  ;;  %v3622_v20 = vor.u32 %v3621_v45, %v3618_v3  ;;  %v6517_v3 = vld [vmem:[%s5748_s25 + $0x60] sm:$0xff]  ;;  %v6520_v45 = vld [vmem:[%s5748_s25 + $0x68] sm:$0xff] }
 0x203   : > { %5212 = vmatmul.msk.bf16.gmra.mxu2 %vm299_vm1, %v3092_v7  ;;  %v6468_v41 = vadd.f32 %v2397_v38, %v1868_v52  ;;  %5394 = vmatmul.msk.bf16.gmra.mxu0 %vm299_vm1, %v4093_v21  ;;  %v6493_v52 = vld [vmem:[%s6785_s2] ss:$0 sm:$0xff]  ;;  %v4095_v13 = vsel %vm4074_vm7, %v4092_v28, %v4094_v63 }
 0x204   : > { %5305 = vmatmul.msk.bf16.gmra.mxu3 %vm299_vm1, %v3614_v47  ;;  %v2661_v47 = vsel %vm2640_vm6, %v2658_v48, %v2660_v33  ;;  %v5545_v48 = vld [vmem:[%s5748_s25 + $0x78] sm:$0xff] }
 0x206   : > { %v3177_v51 = vpop.f32.mrf.mxu2 }
 0x207   : > { %v3267_v16 = vadd.f32 %v3177_v51, %v2834_v55  ;;  %v2746_v39 = vpop.f32.mrf.mxu1  ;;  %v6480_v10 = vpop.f32.mrf.mxu3 }
 0x208   : > { %v4180_v38 = vpop.f32.mrf.mxu0  ;;  %v2835_v9 = vadd.f32 %v2746_v39, %v6028_v32  ;;  %v3628_v39 = vshll.u32 %v5545_v48, 16 }
 0x209   : > { %v3834_v12 = vadd.f32 %v6428_v30, %v3267_v16 }
 0x20b   : > { %v4268_v7 = vadd.f32 %v4178_v17, %v3834_v12  ;;  %v3623_v17 = vsel %vm3507_vm5, %v3613_v23, %v3622_v20  ;;  %v3625_v23 = vshrl.u32 %v5545_v48, 16 }
 0x20d   : > { %v4380_v6 = vadd.f32 %v6493_v52, %v4268_v7  ;;  %v3627_v7 = vrot.slane %v3625_v23, 2 }
 0x20e   : > { %v3179_v44 = vpop.f32.mrf.mxu2 }
 0x20f   : > { %v3268_v21 = vadd.f32 %v3179_v44, %v2835_v9  ;;  %v2749_v30 = vpop.f32.mrf.mxu1  ;;  %v6497_v55 = vpop.f32.mrf.mxu3  ;;  %v4416_v35 = vmax.f32 %v4380_v6, 0.0  ;;  %v6525_v44 = vld [vmem:[%s5748_s25 + $0x68] sm:$0xff] }
 0x210   : > { %v4183_v51 = vpop.f32.mrf.mxu0  ;;  %v2836_v14 = vadd.f32 %v2749_v30, %v6039_v60 }
 0x211   : > { %v3835_v32 = vadd.f32 %v6437_v34, %v3268_v21  ;;  %v3630_v21 = vrot.slane %v3628_v39, 3 }
 0x212   : > { %5122 = vmatmul.msk.bf16.gmra.mxu1 %vm299_vm1, %v2661_v47  ;;  %v2662_v47 = vrot.slane %v6517_v3, 2 }
 0x213   : > { %v4269_v16 = vadd.f32 %v4180_v38, %v3835_v32  ;;  %5213 = vmatmul.msk.bf16.gmra.mxu2 %vm299_vm1, %v3094_v15  ;;  %5395 = vmatmul.msk.bf16.gmra.mxu0 %vm299_vm1, %v4095_v13  ;;  %v3095_v15 = vrot.slane %v6520_v45, 2  ;;  %v4096_v13 = vrot.slane %v6525_v44, 3  ;;  %v3631_v6 = vor.u32 %v3630_v21, %v3627_v7  ;;  %v6552_v44 = vld [vmem:[%s5748_s25 + $0x70] sm:$0xff] }
 0x214   : > { %5306 = vmatmul.msk.bf16.gmra.mxu3 %vm299_vm1, %v3623_v17 }
 0x215   : > { %v4381_v34 = vadd.f32 %v6493_v52, %v4269_v16 }
 0x216   : > { %v3182_v28 = vpop.f32.mrf.mxu2 }
 0x217   : > { %v4417_v27 = vmax.f32 %v4381_v34, 0.0  ;;  %v3269_v38 = vadd.f32 %v3182_v28, %v2836_v14  ;;  %v2751_v42 = vpop.f32.mrf.mxu1  ;;  %v6522_v60 = vpop.f32.mrf.mxu3  ;;  %v2663_v14 = vsel %vm2640_vm6, %v2660_v33, %v2662_v47  ;;  %v3096_v28 = vsel %vm2640_vm6, %v3093_v31, %v3095_v15  ;;  %v5546_v33 = vld [vmem:[%s5748_s25 + $0x80] sm:$0xff] }
 0x218   : > { %v4185_v9 = vpop.f32.mrf.mxu0  ;;  %v2837_v32 = vadd.f32 %v2751_v42, %v6052_v1  ;;  %v3632_v1 = vsel %vm3507_vm5, %v3622_v20, %v3631_v6  ;;  %v3634_v20 = vshrl.u32 %v5546_v33, 16 }
 0x219   : > { %v5571_v12 = vpack.c.bf16 %v4417_v27, %v4416_v35  ;;  %v3836_v30 = vadd.f32 %v6452_v43, %v3269_v38  ;;  %v4097_v35 = vsel %vm4074_vm7, %v4094_v63, %v4096_v13 }
 0x21b   : > { %5572 = vst [vmem:[%s6514_s13] sm:$0xff] %v5571_v12   ;;  %v4270_v16 = vadd.f32 %v4183_v51, %v3836_v30  ;;  %v3637_v51 = vshll.u32 %v5546_v33, 16 }
 0x21d   : > { %v4382_v27 = vadd.f32 %v6493_v52, %v4270_v16 }
 0x21e   : > { %v3184_v17 = vpop.f32.mrf.mxu2 }
 0x21f   : > { %v3270_v48 = vadd.f32 %v3184_v17, %v2837_v32  ;;  %v2754_v34 = vpop.f32.mrf.mxu1  ;;  %v6535_v23 = vpop.f32.mrf.mxu3  ;;  %v4418_v42 = vmax.f32 %v4382_v27, 0.0  ;;  %v6557_v32 = vld [vmem:[%s5748_s25 + $0x70] sm:$0xff]  ;;  %v3639_v17 = vrot.slane %v3637_v51, 3 }
 0x220   : > { %v4188_v39 = vpop.f32.mrf.mxu0  ;;  %v2838_v31 = vadd.f32 %v2754_v34, %v6063_v61  ;;  %v3636_v61 = vrot.slane %v3634_v20, 2  ;;  %v3097_v34 = vrot.slane %v6552_v44, 2  ;;  %v6581_v44 = vld [vmem:[%s5748_s25 + $0x70] sm:$0xff] }
 0x221   : > { %v3837_v43 = vadd.f32 %v6461_v50, %v3270_v48 }
 0x222   : > { %5123 = vmatmul.msk.bf16.gmra.mxu1 %vm299_vm1, %v2663_v14 }
 0x223   : > { %v4271_v38 = vadd.f32 %v4185_v9, %v3837_v43  ;;  %5214 = vmatmul.msk.bf16.gmra.mxu2 %vm299_vm1, %v3096_v28  ;;  %5396 = vmatmul.msk.bf16.gmra.mxu0 %vm299_vm1, %v4097_v35  ;;  %v6549_v9 = vld [vmem:[%s5748_s25 + $0x68] sm:$0xff]  ;;  %v4098_v28 = vrot.slane %v6557_v32, 3  ;;  %v3640_v35 = vor.u32 %v3639_v17, %v3636_v61  ;;  %v6589_v17 = vld [vmem:[%s5748_s25 + $0x78] sm:$0xff] }
 0x224   : > { %5307 = vmatmul.msk.bf16.gmra.mxu3 %vm299_vm1, %v3632_v1  ;;  %v2664_v48 = vrot.slane %v6549_v9, 2 }
 0x225   : > { %v4383_v50 = vadd.f32 %v6493_v52, %v4271_v38  ;;  %v4099_v20 = vsel %vm4074_vm7, %v4096_v13, %v4098_v28 }
 0x226   : > { %v3187_v63 = vpop.f32.mrf.mxu2  ;;  %v2665_v33 = vsel %vm2640_vm6, %v2662_v47, %v2664_v48  ;;  %v5547_v47 = vld [vmem:[%s5748_s25 + $0x88] sm:$0xff] }
 0x227   : > { %v4419_v3 = vmax.f32 %v4383_v50, 0.0  ;;  %v3271_v45 = vadd.f32 %v3187_v63, %v2838_v31  ;;  %v2756_v12 = vpop.f32.mrf.mxu1  ;;  %v6554_v7 = vpop.f32.mrf.mxu3  ;;  %v3098_v50 = vsel %vm2640_vm6, %v3095_v15, %v3097_v34 }
 0x228   : > { %v4190_v30 = vpop.f32.mrf.mxu0  ;;  %v2839_v14 = vadd.f32 %v2756_v12, %v6076_v59  ;;  %v3641_v59 = vsel %vm3507_vm5, %v3631_v6, %v3640_v35  ;;  %v3643_v6 = vshrl.u32 %v5547_v47, 16 }
 0x229   : > { %v5576_v21 = vpack.c.bf16 %v4419_v3, %v4418_v42  ;;  %v3838_v16 = vadd.f32 %v6480_v10, %v3271_v45 }
 0x22b   : > { %5658 = vst [vmem:[%s6514_s13 + $0x8] sm:$0xff] %v5576_v21   ;;  %v4272_v1 = vadd.f32 %v4188_v39, %v3838_v16  ;;  %v3646_v39 = vshll.u32 %v5547_v47, 16  ;;  %v6584_v21 = vld [vmem:[%s5748_s25 + $0x78] sm:$0xff] }
 0x22d   : > { %v4384_v51 = vadd.f32 %v6493_v52, %v4272_v1  ;;  %v3648_v16 = vrot.slane %v3646_v39, 3  ;;  %v3099_v1 = vrot.slane %v6584_v21, 2 }
 0x22e   : > { %v3189_v43 = vpop.f32.mrf.mxu2 }
 0x22f   : > { %v3272_v27 = vadd.f32 %v3189_v43, %v2839_v14  ;;  %v2759_v38 = vpop.f32.mrf.mxu1  ;;  %v6567_v31 = vpop.f32.mrf.mxu3  ;;  %v4420_v3 = vmax.f32 %v4384_v51, 0.0  ;;  %v2666_v43 = vrot.slane %v6581_v44, 2  ;;  %v6616_v44 = vld [vmem:[%s5748_s25 + $0x80] sm:$0xff] }
 0x230   : > { %v4193_v63 = vpop.f32.mrf.mxu0  ;;  %v2840_v15 = vadd.f32 %v2759_v38, %v6087_v4  ;;  %v3645_v4 = vrot.slane %v3643_v6, 2  ;;  %v4100_v38 = vrot.slane %v6589_v17, 3  ;;  %v6621_v17 = vld [vmem:[%s5748_s25 + $0x80] sm:$0xff] }
 0x231   : > { %v3839_v10 = vadd.f32 %v6497_v55, %v3272_v27  ;;  %v2667_v51 = vsel %vm2640_vm6, %v2664_v48, %v2666_v43  ;;  %v5548_v48 = vld [vmem:[%s5748_s25 + $0x90] sm:$0xff] }
 0x232   : > { %5124 = vmatmul.msk.bf16.gmra.mxu1 %vm299_vm1, %v2665_v33 }
 0x233   : > { %v4273_v42 = vadd.f32 %v4190_v30, %v3839_v10  ;;  %5215 = vmatmul.msk.bf16.gmra.mxu2 %vm299_vm1, %v3098_v50  ;;  %5397 = vmatmul.msk.bf16.gmra.mxu0 %vm299_vm1, %v4099_v20  ;;  %v3649_v50 = vor.u32 %v3648_v16, %v3645_v4 }
 0x234   : > { %5308 = vmatmul.msk.bf16.gmra.mxu3 %vm299_vm1, %v3641_v59 }
 0x235   : > { %v4385_v55 = vadd.f32 %v6493_v52, %v4273_v42  ;;  %v3100_v42 = vsel %vm2640_vm6, %v3097_v34, %v3099_v1 }
 0x236   : > { %v3192_v13 = vpop.f32.mrf.mxu2 }
 0x237   : > { %v4421_v45 = vmax.f32 %v4385_v55, 0.0  ;;  %v3273_v12 = vadd.f32 %v3192_v13, %v2840_v15  ;;  %v2761_v9 = vpop.f32.mrf.mxu1  ;;  %v6586_v30 = vpop.f32.mrf.mxu3  ;;  %v4101_v15 = vsel %vm4074_vm7, %v4098_v28, %v4100_v38 }
 0x238   : > { %v4195_v61 = vpop.f32.mrf.mxu0  ;;  %v2841_v27 = vadd.f32 %v2761_v9, %v6100_v19  ;;  %v3650_v19 = vsel %vm3507_vm5, %v3640_v35, %v3649_v50  ;;  %v3652_v35 = vshrl.u32 %v5548_v48, 16  ;;  %v6613_v9 = vld [vmem:[%s5748_s25 + $0x78] sm:$0xff] }
 0x239   : > { %v5581_v32 = vpack.c.bf16 %v4421_v45, %v4420_v3  ;;  %v3840_v14 = vadd.f32 %v6522_v60, %v3273_v12 }
 0x23b   : > { %5659 = vst [vmem:[%s6514_s13 + $0x10] sm:$0xff] %v5581_v32   ;;  %v4274_v10 = vadd.f32 %v4193_v63, %v3840_v14  ;;  %v3655_v63 = vshll.u32 %v5548_v48, 16  ;;  %v2668_v14 = vrot.slane %v6613_v9, 2  ;;  %v6645_v9 = vld [vmem:[%s5748_s25 + $0x80] sm:$0xff] }
 0x23d   : > { %v4386_v13 = vadd.f32 %v6493_v52, %v4274_v10  ;;  %v3657_v4 = vrot.slane %v3655_v63, 3 }
 0x23e   : > { %v3194_v33 = vpop.f32.mrf.mxu2 }
 0x23f   : > { %v3274_v20 = vadd.f32 %v3194_v33, %v2841_v27  ;;  %v2764_v59 = vpop.f32.mrf.mxu1  ;;  %v6599_v47 = vpop.f32.mrf.mxu3  ;;  %v4422_v39 = vmax.f32 %v4386_v13, 0.0  ;;  %v3101_v27 = vrot.slane %v6616_v44, 2  ;;  %v6802_v33 = vld [vmem:[#allocation7_spill] sm:$0xff]  ;;  %v6648_v44 = vld [vmem:[%s5748_s25 + $0x88] sm:$0xff] }
 0x240   : > { %v4198_v55 = vpop.f32.mrf.mxu0  ;;  %v2842_v34 = vadd.f32 %v2764_v59, %v6111_v24  ;;  %v3654_v24 = vrot.slane %v3652_v35, 2 }
 0x241   : > { %v3841_v60 = vadd.f32 %v6535_v23, %v3274_v20  ;;  %v4102_v20 = vrot.slane %v6621_v17, 3  ;;  %v3102_v13 = vsel %vm2640_vm6, %v3099_v1, %v3101_v27  ;;  %v6803_v1 = vld [vmem:[#allocation8_spill] sm:$0xff] }
 0x242   : > { %5125 = vmatmul.msk.bf16.gmra.mxu1 %vm299_vm1, %v2667_v51  ;;  %v3658_v51 = vor.u32 %v3657_v4, %v3654_v24  ;;  %v6653_v24 = vld [vmem:[%s5748_s25 + $0x88] sm:$0xff] }
 0x243   : > { %v4275_v6 = vadd.f32 %v4195_v61, %v3841_v60  ;;  %5216 = vmatmul.msk.bf16.gmra.mxu2 %vm299_vm1, %v3100_v42  ;;  %5398 = vmatmul.msk.bf16.gmra.mxu0 %vm299_vm1, %v4101_v15 }
 0x244   : > { %5309 = vmatmul.msk.bf16.gmra.mxu3 %vm299_vm1, %v3650_v19  ;;  %v2669_v19 = vsel %vm2640_vm6, %v2666_v43, %v2668_v14  ;;  %v5549_v43 = vld [vmem:[%s5748_s25 + $0x98] sm:$0xff] }
 0x245   : > { %v4387_v23 = vadd.f32 %v6493_v52, %v4275_v6  ;;  %v3664_v63 = vshll.u32 %v5549_v43, 16 }
 0x246   : > { %v3197_v28 = vpop.f32.mrf.mxu2 }
 0x247   : > { %v4423_v3 = vmax.f32 %v4387_v23, 0.0  ;;  %v3275_v45 = vadd.f32 %v3197_v28, %v2842_v34  ;;  %v2766_v12 = vpop.f32.mrf.mxu1  ;;  %v6618_v21 = vpop.f32.mrf.mxu3  ;;  %v4103_v23 = vsel %vm4074_vm7, %v4100_v38, %v4102_v20  ;;  %v3659_v34 = vsel %vm3507_vm5, %v3649_v50, %v3658_v51 }
 0x248   : > { %v4200_v61 = vpop.f32.mrf.mxu0  ;;  %v2843_v10 = vadd.f32 %v2766_v12, %v6802_v33  ;;  %v3661_v50 = vshrl.u32 %v5549_v43, 16 }
 0x249   : > { %v5586_v32 = vpack.c.bf16 %v4423_v3, %v4422_v39  ;;  %v3842_v16 = vadd.f32 %v6554_v7, %v3275_v45 }
 0x24a   : > { %v3663_v4 = vrot.slane %v3661_v50, 2 }
 0x24b   : > { %5660 = vst [vmem:[%s6514_s13 + $0x18] sm:$0xff] %v5586_v32   ;;  %v4276_v42 = vadd.f32 %v4198_v55, %v3842_v16  ;;  %v3666_v16 = vrot.slane %v3664_v63, 3 }
 0x24d   : > { %v4388_v28 = vadd.f32 %v6493_v52, %v4276_v42  ;;  %v6804_v42 = vld [vmem:[#allocation9_spill] sm:$0xff] }
 0x24e   : > { %v3199_v59 = vpop.f32.mrf.mxu2 }
 0x24f   : > { %v3276_v60 = vadd.f32 %v3199_v59, %v2843_v10  ;;  %v2769_v15 = vpop.f32.mrf.mxu1  ;;  %v6631_v6 = vpop.f32.mrf.mxu3  ;;  %v4424_v39 = vmax.f32 %v4388_v28, 0.0  ;;  %v2670_v10 = vrot.slane %v6645_v9, 2  ;;  %v3103_v59 = vrot.slane %v6648_v44, 2 }
 0x250   : > { %v4203_v48 = vpop.f32.mrf.mxu0  ;;  %v2844_v55 = vadd.f32 %v2769_v15, %v6803_v1  ;;  %v4104_v15 = vrot.slane %v6653_v24, 3 }
 0x251   : > { %v3843_v7 = vadd.f32 %v6567_v31, %v3276_v60  ;;  %v2671_v28 = vsel %vm2640_vm6, %v2668_v14, %v2670_v10 }
 0x252   : > { %5126 = vmatmul.msk.bf16.gmra.mxu1 %vm299_vm1, %v2669_v19  ;;  %v4105_v1 = vsel %vm4074_vm7, %v4102_v20, %v4104_v15 }
 0x253   : > { %v4277_v35 = vadd.f32 %v4200_v61, %v3843_v7  ;;  %5217 = vmatmul.msk.bf16.gmra.mxu2 %vm299_vm1, %v3102_v13  ;;  %5399 = vmatmul.msk.bf16.gmra.mxu0 %vm299_vm1, %v4103_v23  ;;  %v3667_v13 = vor.u32 %v3666_v16, %v3663_v4 }
 0x254   : > { %5310 = vmatmul.msk.bf16.gmra.mxu3 %vm299_vm1, %v3659_v34 }
 0x255   : > { %v4389_v31 = vadd.f32 %v6493_v52, %v4277_v35  ;;  %v3104_v35 = vsel %vm2640_vm6, %v3101_v27, %v3103_v59  ;;  %v6805_v27 = vld [vmem:[#allocation10_spill] sm:$0xff] }
 0x256   : > { %v3202_v38 = vpop.f32.mrf.mxu2 }
 0x257   : > { %v4425_v3 = vmax.f32 %v4389_v31, 0.0  ;;  %v3277_v45 = vadd.f32 %v3202_v38, %v2844_v55  ;;  %v2771_v12 = vpop.f32.mrf.mxu1  ;;  %v6650_v32 = vpop.f32.mrf.mxu3  ;;  %v3411_v55 = vld [vmem:[%s5748_s25 + $0xa0] sm:$0x7]  ;;  %v3668_v38 = vsel %vm3507_vm5, %v3658_v51, %v3667_v13 }
 0x258   : > { %v4205_v17 = vpop.f32.mrf.mxu0  ;;  %v2845_v60 = vadd.f32 %v2771_v12, %v6804_v42  ;;  %v3487_v50 = vunpack.c.l.b16 %v3411_v55 }
 0x259   : > { %v5591_v61 = vpack.c.bf16 %v4425_v3, %v4424_v39  ;;  %v3844_v33 = vadd.f32 %v6586_v30, %v3277_v45 }
 0x25a   : > { %v3506_v14 = vpack.c.b16 %v3487_v50, %v3487_v50 }
 0x25b   : > { %5661 = vst [vmem:[%s6514_s13 + $0x20] sm:$0xff] %v5591_v61   ;;  %v4278_v7 = vadd.f32 %v4203_v48, %v3844_v33  ;;  %v5512_v61 = vld [vmem:[%s5748_s25 + $0x88] sm:$0xff]  ;;  %v5566_v33 = vld [vmem:[%s5748_s25 + $0x90] sm:$0xff] }
 0x25c   : > { %v3670_v39 = vshrl.u32 %v3506_v14, 16  ;;  %v3673_v3 = vshll.u32 %v3506_v14, 16 }
 0x25d   : > { %v4390_v63 = vadd.f32 %v6493_v52, %v4278_v7  ;;  %v2672_v7 = vrot.slane %v5512_v61, 2 }
 0x25e   : > { %v3204_v19 = vpop.f32.mrf.mxu2  ;;  %v3672_v42 = vrot.slane %v3670_v39, 2 }
 0x25f   : > { %v3278_v23 = vadd.f32 %v3204_v19, %v2845_v60  ;;  %v2774_v34 = vpop.f32.mrf.mxu1  ;;  %v6663_v43 = vpop.f32.mrf.mxu3  ;;  %v4426_v45 = vmax.f32 %v4390_v63, 0.0  ;;  %v3675_v60 = vrot.slane %v3673_v3, 3  ;;  %v2673_v63 = vsel %vm2640_vm6, %v2670_v10, %v2672_v7 }
 0x260   : > { %v4208_v31 = vpop.f32.mrf.mxu0  ;;  %v2846_v20 = vadd.f32 %v2774_v34, %v6805_v27  ;;  %v6806_v34 = vld [vmem:[#allocation11_spill] sm:$0xff] }
 0x261   : > { %v3845_v30 = vadd.f32 %v6599_v47, %v3278_v23 }
 0x262   : > { %5127 = vmatmul.msk.bf16.gmra.mxu1 %vm299_vm1, %v2671_v28 }
 0x263   : > { %v4279_v48 = vadd.f32 %v4205_v17, %v3845_v30  ;;  %5218 = vmatmul.msk.bf16.gmra.mxu2 %vm299_vm1, %v3104_v35  ;;  %5400 = vmatmul.msk.bf16.gmra.mxu0 %vm299_vm1, %v4105_v1  ;;  %v5530_v17 = vld [vmem:[%s5748_s25 + $0x90] sm:$0xff]  ;;  %v4106_v35 = vrot.slane %v5566_v33, 3  ;;  %v3676_v1 = vor.u32 %v3675_v60, %v3672_v42 }
 0x264   : > { %5311 = vmatmul.msk.bf16.gmra.mxu3 %vm299_vm1, %v3668_v38  ;;  %v3105_v23 = vrot.slane %v5530_v17, 2  ;;  %v5567_v17 = vld [vmem:[%s5748_s25 + $0x98] sm:$0xff] }
 0x265   : > { %v4391_v47 = vadd.f32 %v6493_v52, %v4279_v48  ;;  %v4108_v42 = vrot.slane %v5567_v17, 3 }
 0x266   : > { %v3207_v51 = vpop.f32.mrf.mxu2  ;;  %v3106_v48 = vsel %vm2640_vm6, %v3103_v59, %v3105_v23 }
 0x267   : > { %v4427_v12 = vmax.f32 %v4391_v47, 0.0  ;;  %v3279_v9 = vadd.f32 %v3207_v51, %v2846_v20  ;;  %v2776_v44 = vpop.f32.mrf.mxu1  ;;  %v6678_v24 = vpop.f32.mrf.mxu3  ;;  %v3677_v20 = vsel %vm3507_vm5, %v3667_v13, %v3676_v1 }
 0x268   : > { %v4210_v16 = vpop.f32.mrf.mxu0  ;;  %v2847_v28 = vadd.f32 %v2776_v44, %v6806_v34 }
 0x269   : > { %v5596_v4 = vpack.c.bf16 %v4427_v12, %v4426_v45  ;;  %v3846_v19 = vadd.f32 %v6618_v21, %v3279_v9  ;;  %v4107_v21 = vsel %vm4074_vm7, %v4104_v15, %v4106_v35  ;;  %v5513_v45 = vld [vmem:[%s5748_s25 + $0x90] sm:$0xff]  ;;  %v5531_v12 = vld [vmem:[%s5748_s25 + $0x98] sm:$0xff] }
 0x26b   : > { %5662 = vst [vmem:[%s6514_s13 + $0x28] sm:$0xff] %v5596_v4   ;;  %v4280_v55 = vadd.f32 %v4208_v31, %v3846_v19 }
 0x26d   : > { %v4392_v51 = vadd.f32 %v6493_v52, %v4280_v55 }
 0x26e   : > { %v3209_v30 = vpop.f32.mrf.mxu2 }
 0x26f   : > { %v3280_v38 = vadd.f32 %v3209_v30, %v2847_v28  ;;  %v2779_v50 = vpop.f32.mrf.mxu1  ;;  %v6686_v14 = vpop.f32.mrf.mxu3  ;;  %v4428_v15 = vmax.f32 %v4392_v51, 0.0 }
 0x270   : > { %v4213_v27 = vpop.f32.mrf.mxu0  ;;  %v2848_v10 = vadd.f32 %v2779_v50, %v6203_v37  ;;  %v2674_v37 = vrot.slane %v5513_v45, 2  ;;  %v4109_v50 = vsel %vm4074_vm7, %v4106_v35, %v4108_v42 }
 0x271   : > { %v3847_v47 = vadd.f32 %v6631_v6, %v3280_v38 }
 0x272   : > { %5128 = vmatmul.msk.bf16.gmra.mxu1 %vm299_vm1, %v2673_v63  ;;  %v2675_v30 = vsel %vm2640_vm6, %v2672_v7, %v2674_v37  ;;  %v2544_v63 = vld [vmem:[%s5748_s25 + $0x98] sm:$0x3] }
 0x273   : > { %v4281_v31 = vadd.f32 %v4210_v16, %v3847_v47  ;;  %5219 = vmatmul.msk.bf16.gmra.mxu2 %vm299_vm1, %v3106_v48  ;;  %5401 = vmatmul.msk.bf16.gmra.mxu0 %vm299_vm1, %v4107_v21  ;;  %v3107_v16 = vrot.slane %v5531_v12, 2  ;;  %v2978_v48 = vld [vmem:[%s5748_s25 + $0xa0] sm:$0x3]  ;;  %v2620_v7 = vunpack.c.l.b16 %v2544_v63 }
 0x274   : > { %5312 = vmatmul.msk.bf16.gmra.mxu3 %vm299_vm1, %v3677_v20  ;;  %v3978_v47 = vld [vmem:[%s5748_s25 + $0xa0] sm:$0x7] }
 0x275   : > { %v4393_v6 = vadd.f32 %v6493_v52, %v4281_v31  ;;  %v3108_v1 = vsel %vm2640_vm6, %v3105_v23, %v3107_v16  ;;  %v3054_v23 = vunpack.c.l.b16 %v2978_v48  ;;  %v4054_v35 = vunpack.c.l.b16 %v3978_v47 }
 0x276   : > { %v3212_v59 = vpop.f32.mrf.mxu2 }
 0x277   : > { %v4429_v13 = vmax.f32 %v4393_v6, 0.0  ;;  %v3281_v39 = vadd.f32 %v3212_v59, %v2848_v10  ;;  %v2781_v3 = vpop.f32.mrf.mxu1  ;;  %v6700_v9 = vpop.f32.mrf.mxu3  ;;  %v2639_v59 = vpack.c.b16 %v2620_v7, %v2620_v7 }
 0x278   : > { %v4215_v61 = vpop.f32.mrf.mxu0  ;;  %v2849_v33 = vadd.f32 %v2781_v3, %v6221_v53  ;;  %v4073_v3 = vpack.c.b16 %v4054_v35, %v4054_v35 }
 0x279   : > { %v5601_v44 = vpack.c.bf16 %v4429_v13, %v4428_v15  ;;  %v3848_v4 = vadd.f32 %v6650_v32, %v3281_v39  ;;  %v3073_v15 = vpack.c.b16 %v3054_v23, %v3054_v23 }
 0x27b   : > { %5663 = vst [vmem:[%s6514_s13 + $0x30] sm:$0xff] %v5601_v44   ;;  %v4282_v19 = vadd.f32 %v4213_v27, %v3848_v4  ;;  %v2676_v44 = vrot.slane %v2639_v59, 2 }
 0x27d   : > { %v4394_v53 = vadd.f32 %v6493_v52, %v4282_v19 }
 0x27e   : > { %v3214_v60 = vpop.f32.mrf.mxu2 }
 0x27f   : > { %v3282_v34 = vadd.f32 %v3214_v60, %v2849_v33  ;;  %v2784_v28 = vpop.f32.mrf.mxu1  ;;  %v6708_v55 = vpop.f32.mrf.mxu3  ;;  %v4430_v51 = vmax.f32 %v4394_v53, 0.0 }
 0x280   : > { %v4218_v32 = vpop.f32.mrf.mxu0  ;;  %v2850_v27 = vadd.f32 %v2784_v28, %v6231_v57  ;;  %v4110_v57 = vrot.slane %v4073_v3, 3 }
 0x281   : > { %v3849_v38 = vadd.f32 %v6663_v43, %v3282_v34  ;;  %v2677_v34 = vsel %vm2640_vm6, %v2674_v37, %v2676_v44 }
 0x282   : > { %5129 = vmatmul.msk.bf16.gmra.mxu1 %vm299_vm1, %v2675_v30 }
 0x283   : > { %v4283_v21 = vadd.f32 %v4215_v61, %v3849_v38  ;;  %5220 = vmatmul.msk.bf16.gmra.mxu2 %vm299_vm1, %v3108_v1  ;;  %5402 = vmatmul.msk.bf16.gmra.mxu0 %vm299_vm1, %v4109_v50  ;;  %v3109_v61 = vrot.slane %v3073_v15, 2  ;;  %v4111_v38 = vsel %vm4074_vm7, %v4108_v42, %v4110_v57 }
 0x285   : > { %v4395_v43 = vadd.f32 %v6493_v52, %v4283_v21  ;;  %v3110_v28 = vsel %vm2640_vm6, %v3107_v16, %v3109_v61 }
 0x286   : > { %v3217_v20 = vpop.f32.mrf.mxu2 }
 0x287   : > { %v4431_v31 = vmax.f32 %v4395_v43, 0.0  ;;  %v3283_v6 = vadd.f32 %v3217_v20, %v2850_v27  ;;  %v2786_v10 = vpop.f32.mrf.mxu1  ;;  %v3794_v45 = vpop.f32.mrf.mxu3 }
 0x288   : > { %v4220_v39 = vpop.f32.mrf.mxu0  ;;  %v2851_v17 = vadd.f32 %v2786_v10, %v6243_v36 }
 0x289   : > { %v5606_v13 = vpack.c.bf16 %v4431_v31, %v4430_v51  ;;  %v3850_v12 = vadd.f32 %v6678_v24, %v3283_v6 }
 0x28b   : > { %5664 = vst [vmem:[%s6514_s13 + $0x38] sm:$0xff] %v5606_v13   ;;  %v4284_v33 = vadd.f32 %v4218_v32, %v3850_v12 }
 0x28d   : > { %v4396_v24 = vadd.f32 %v6493_v52, %v4284_v33 }
 0x28e   : > { %v3219_v4 = vpop.f32.mrf.mxu2 }
 0x28f   : > { %v3284_v60 = vadd.f32 %v3219_v4, %v2851_v17  ;;  %v2789_v19 = vpop.f32.mrf.mxu1  ;;  %v3796_v36 = vpop.f32.mrf.mxu3 }
 0x290   : > { %v4223_v1 = vpop.f32.mrf.mxu0  ;;  %v2852_v16 = vadd.f32 %v2789_v19, %v6263_v8 }
 0x291   : > { %v3851_v30 = vadd.f32 %v6686_v14, %v3284_v60  ;;  %v4432_v14 = vmax.f32 %v4396_v24, 0.0 }
 0x292   : > { %5130 = vmatmul.msk.bf16.gmra.mxu1 %vm299_vm1, %v2677_v34 }
 0x293   : > { %v4285_v50 = vadd.f32 %v4220_v39, %v3851_v30  ;;  %5221 = vmatmul.msk.bf16.gmra.mxu2 %vm299_vm1, %v3110_v28  ;;  %5403 = vmatmul.msk.bf16.gmra.mxu0 %vm299_vm1, %v4111_v38 }
 0x295   : > { %v4397_v37 = vadd.f32 %v6493_v52, %v4285_v50 }
 0x296   : > { %v3222_v32 = vpop.f32.mrf.mxu2 }
 0x297   : > { %v4433_v63 = vmax.f32 %v4397_v37, 0.0  ;;  %v3285_v48 = vadd.f32 %v3222_v32, %v2852_v16  ;;  %v2791_v42 = vpop.f32.mrf.mxu1  ;;  %v3799_v43 = vpop.f32.mrf.mxu3 }
 0x298   : > { %v4225_v53 = vpop.f32.mrf.mxu0  ;;  %v2853_v7 = vadd.f32 %v2791_v42, %v6276_v26 }
 0x299   : > { %v5611_v47 = vpack.c.bf16 %v4433_v63, %v4432_v14  ;;  %v3852_v21 = vadd.f32 %v6700_v9, %v3285_v48 }
 0x29b   : > { %5665 = vst [vmem:[%s6514_s13 + $0x40] sm:$0xff] %v5611_v47   ;;  %v4286_v27 = vadd.f32 %v4223_v1, %v3852_v21 }
 0x29d   : > { %v4398_v31 = vadd.f32 %v6493_v52, %v4286_v27 }
 0x29e   : > { %v3224_v23 = vpop.f32.mrf.mxu2 }
 0x29f   : > { %v3286_v35 = vadd.f32 %v3224_v23, %v2853_v7  ;;  %v2794_v20 = vpop.f32.mrf.mxu1  ;;  %v4434_v9 = vmax.f32 %v4398_v31, 0.0  ;;  %v3801_v3 = vpop.f32.mrf.mxu3 }
 0x2a0   : > { %v4228_v51 = vpop.f32.mrf.mxu0  ;;  %v2854_v59 = vadd.f32 %v2794_v20, %v6288_v2 }
 0x2a1   : > { %v3853_v8 = vadd.f32 %v6708_v55, %v3286_v35 }
 0x2a3   : > { %v4287_v6 = vadd.f32 %v4225_v53, %v3853_v8 }
 0x2a5   : > { %v4399_v10 = vadd.f32 %v6493_v52, %v4287_v6 }
 0x2a6   : > { %v3227_v15 = vpop.f32.mrf.mxu2 }
 0x2a7   : > { %v4435_v13 = vmax.f32 %v4399_v10, 0.0  ;;  %v3287_v26 = vadd.f32 %v3227_v15, %v2854_v59  ;;  %v2796_v39 = vpop.f32.mrf.mxu1  ;;  %v3804_v2 = vpop.f32.mrf.mxu3 }
 0x2a8   : > { %v4230_v44 = vpop.f32.mrf.mxu0  ;;  %v2855_v55 = vadd.f32 %v2796_v39, %v6300_v62 }
 0x2a9   : > { %v5616_v12 = vpack.c.bf16 %v4435_v13, %v4434_v9  ;;  %v3854_v61 = vadd.f32 %v3794_v45, %v3287_v26 }
 0x2ab   : > { %5666 = vst [vmem:[%s6514_s13 + $0x48] sm:$0xff] %v5616_v12   ;;  %v4288_v57 = vadd.f32 %v4228_v51, %v3854_v61 }
 0x2ad   : > { %v4400_v34 = vadd.f32 %v6493_v52, %v4288_v57 }
 0x2ae   : > { %v3229_v17 = vpop.f32.mrf.mxu2 }
 0x2af   : > { %v3288_v4 = vadd.f32 %v3229_v17, %v2855_v55  ;;  %v2799_v33 = vpop.f32.mrf.mxu1  ;;  %v4436_v24 = vmax.f32 %v4400_v34, 0.0  ;;  %v3806_v14 = vpop.f32.mrf.mxu3 }
 0x2b0   : > { %v4233_v19 = vpop.f32.mrf.mxu0  ;;  %v2856_v1 = vadd.f32 %v2799_v33, %v6312_v18 }
 0x2b1   : > { %v3855_v60 = vadd.f32 %v3796_v36, %v3288_v4 }
 0x2b3   : > { %v4289_v28 = vadd.f32 %v4230_v44, %v3855_v60 }
 0x2b5   : > { %v4401_v30 = vadd.f32 %v6493_v52, %v4289_v28 }
 0x2b6   : > { %v3232_v38 = vpop.f32.mrf.mxu2 }
 0x2b7   : > { %v4437_v45 = vmax.f32 %v4401_v30, 0.0  ;;  %v3289_v50 = vadd.f32 %v3232_v38, %v2856_v1  ;;  %v2801_v62 = vpop.f32.mrf.mxu1  ;;  %v3809_v20 = vpop.f32.mrf.mxu3 }
 0x2b8   : > { %v4235_v16 = vpop.f32.mrf.mxu0  ;;  %v2857_v36 = vadd.f32 %v2801_v62, %v6324_v29 }
 0x2b9   : > { %v5621_v37 = vpack.c.bf16 %v4437_v45, %v4436_v24  ;;  %v3856_v32 = vadd.f32 %v3799_v43, %v3289_v50 }
 0x2bb   : > { %5667 = vst [vmem:[%s6514_s13 + $0x50] sm:$0xff] %v5621_v37   ;;  %v4290_v48 = vadd.f32 %v4233_v19, %v3856_v32 }
 0x2bd   : > { %v4402_v18 = vadd.f32 %v6493_v52, %v4290_v48 }
 0x2be   : > { %v3234_v63 = vpop.f32.mrf.mxu2 }
 0x2bf   : > { %v3290_v42 = vadd.f32 %v3234_v63, %v2857_v36  ;;  %v2804_v47 = vpop.f32.mrf.mxu1  ;;  %v4438_v43 = vmax.f32 %v4402_v18, 0.0  ;;  %v3811_v39 = vpop.f32.mrf.mxu3 }
 0x2c0   : > { %v4238_v21 = vpop.f32.mrf.mxu0  ;;  %v2858_v27 = vadd.f32 %v2804_v47, %v6336_v40 }
 0x2c1   : > { %v3857_v53 = vadd.f32 %v3801_v3, %v3290_v42 }
 0x2c3   : > { %v4291_v7 = vadd.f32 %v4235_v16, %v3857_v53 }
 0x2c5   : > { %v4403_v23 = vadd.f32 %v6493_v52, %v4291_v7 }
 0x2c6   : > { %v3237_v35 = vpop.f32.mrf.mxu2 }
 0x2c7   : > { %v4439_v8 = vmax.f32 %v4403_v23, 0.0  ;;  %v3291_v51 = vadd.f32 %v3237_v35, %v2858_v27  ;;  %v2806_v29 = vpop.f32.mrf.mxu1 }
 0x2c8   : > { %v4240_v6 = vpop.f32.mrf.mxu0  ;;  %v2859_v59 = vadd.f32 %v2806_v29, %v6348_v56 }
 0x2c9   : > { %v5626_v31 = vpack.c.bf16 %v4439_v8, %v4438_v43  ;;  %v3858_v10 = vadd.f32 %v3804_v2, %v3291_v51  ;;  %v3814_v2 = vpop.f32.mrf.mxu3 }
 0x2cb   : > { %5668 = vst [vmem:[%s6514_s13 + $0x58] sm:$0xff] %v5626_v31   ;;  %v4292_v9 = vadd.f32 %v4238_v21, %v3858_v10 }
 0x2cd   : > { %v4404_v12 = vadd.f32 %v6493_v52, %v4292_v9 }
 0x2ce   : > { %v3239_v15 = vpop.f32.mrf.mxu2 }
 0x2cf   : > { %v3292_v13 = vadd.f32 %v3239_v15, %v2859_v59  ;;  %v2809_v26 = vpop.f32.mrf.mxu1  ;;  %v4440_v57 = vmax.f32 %v4404_v12, 0.0 }
 0x2d0   : > { %v4243_v40 = vpop.f32.mrf.mxu0  ;;  %v2860_v55 = vadd.f32 %v2809_v26, %v6360_v46 }
 0x2d1   : > { %v3859_v3 = vadd.f32 %v3806_v14, %v3292_v13  ;;  %v3816_v37 = vpop.f32.mrf.mxu3 }
 0x2d3   : > { %v4293_v44 = vadd.f32 %v4240_v6, %v3859_v3 }
 0x2d5   : > { %v4405_v61 = vadd.f32 %v6493_v52, %v4293_v44 }
 0x2d6   : > { %v3242_v17 = vpop.f32.mrf.mxu2 }
 0x2d7   : > { %v4441_v4 = vmax.f32 %v4405_v61, 0.0  ;;  %v3293_v33 = vadd.f32 %v3242_v17, %v2860_v55  ;;  %v2811_v56 = vpop.f32.mrf.mxu1 }
 0x2d8   : > { %v4245_v19 = vpop.f32.mrf.mxu0  ;;  %v2861_v28 = vadd.f32 %v2811_v56, %v6372_v25 }
 0x2d9   : > { %v5631_v60 = vpack.c.bf16 %v4441_v4, %v4440_v57  ;;  %v3860_v34 = vadd.f32 %v3809_v20, %v3293_v33  ;;  %v3819_v7 = vpop.f32.mrf.mxu3 }
 0x2db   : > { %5669 = vst [vmem:[%s6514_s13 + $0x60] sm:$0xff] %v5631_v60   ;;  %v4294_v1 = vadd.f32 %v4243_v40, %v3860_v34 }
 0x2dd   : > { %v4406_v46 = vadd.f32 %v6493_v52, %v4294_v1 }
 0x2de   : > { %v3244_v30 = vpop.f32.mrf.mxu2 }
 0x2df   : > { %v3294_v38 = vadd.f32 %v3244_v30, %v2861_v28  ;;  %v2814_v24 = vpop.f32.mrf.mxu1  ;;  %v4442_v36 = vmax.f32 %v4406_v46, 0.0 }
 0x2e0   : > { %v4248_v50 = vpop.f32.mrf.mxu0  ;;  %v2862_v32 = vadd.f32 %v2814_v24, %v6384_v11 }
 0x2e1   : > { %v3861_v45 = vadd.f32 %v3811_v39, %v3294_v38  ;;  %v3821_v15 = vpop.f32.mrf.mxu3 }
 0x2e3   : > { %v4295_v62 = vadd.f32 %v4245_v19, %v3861_v45 }
 0x2e5   : > { %v4407_v16 = vadd.f32 %v6493_v52, %v4295_v62 }
 0x2e6   : > { %v3247_v14 = vpop.f32.mrf.mxu2 }
 0x2e7   : > { %v4443_v63 = vmax.f32 %v4407_v16, 0.0  ;;  %v3295_v48 = vadd.f32 %v3247_v14, %v2862_v32  ;;  %v2816_v25 = vpop.f32.mrf.mxu1 }
 0x2e8   : > { %v4250_v47 = vpop.f32.mrf.mxu0  ;;  %v2863_v21 = vadd.f32 %v2816_v25, %v6396_v0 }
 0x2e9   : > { %v5636_v42 = vpack.c.bf16 %v4443_v63, %v4442_v36  ;;  %v3862_v53 = vadd.f32 %v3814_v2, %v3295_v48  ;;  %v3824_v55 = vpop.f32.mrf.mxu3 }
 0x2eb   : > { %5670 = vst [vmem:[%s6514_s13 + $0x68] sm:$0xff] %v5636_v42   ;;  %v4296_v23 = vadd.f32 %v4248_v50, %v3862_v53 }
 0x2ed   : > { %v4408_v11 = vadd.f32 %v6493_v52, %v4296_v23 }
 0x2ee   : > { %v3249_v18 = vpop.f32.mrf.mxu2 }
 0x2ef   : > { %v3296_v27 = vadd.f32 %v3249_v18, %v2863_v21  ;;  %v2819_v35 = vpop.f32.mrf.mxu1  ;;  %v4444_v6 = vmax.f32 %v4408_v11, 0.0 }
 0x2f0   : > { %v4253_v43 = vpop.f32.mrf.mxu0  ;;  %v2864_v29 = vadd.f32 %v2819_v35, %v6408_v5 }
 0x2f1   : > { %v3863_v20 = vadd.f32 %v3816_v37, %v3296_v27  ;;  %v3826_v30 = vpop.f32.mrf.mxu3 }
 0x2f3   : > { %v4297_v8 = vadd.f32 %v4250_v47, %v3863_v20 }
 0x2f5   : > { %v4409_v51 = vadd.f32 %v6493_v52, %v4297_v8 }
 0x2f6   : > { %v3252_v31 = vpop.f32.mrf.mxu2 }
 0x2f7   : > { %v4445_v10 = vmax.f32 %v4409_v51, 0.0  ;;  %v3297_v59 = vadd.f32 %v3252_v31, %v2864_v29  ;;  %v2821_v0 = vpop.f32.mrf.mxu1 }
 0x2f8   : > { %v4255_v13 = vpop.f32.mrf.mxu0  ;;  %v2865_v39 = vadd.f32 %v2821_v0, %v6420_v54 }
 0x2f9   : > { %v5641_v9 = vpack.c.bf16 %v4445_v10, %v4444_v6  ;;  %v3864_v26 = vadd.f32 %v3819_v7, %v3297_v59  ;;  %v3829_v14 = vpop.f32.mrf.mxu3 }
 0x2fb   : > { %5671 = vst [vmem:[%s6514_s13 + $0x70] sm:$0xff] %v5641_v9   ;;  %v4298_v40 = vadd.f32 %v4253_v43, %v3864_v26 }
 0x2fd   : > { %v4410_v5 = vadd.f32 %v6493_v52, %v4298_v40 }
 0x2fe   : > { %v3254_v3 = vpop.f32.mrf.mxu2 }
 0x2ff   : > { %v3298_v12 = vadd.f32 %v3254_v3, %v2865_v39  ;;  %v2824_v44 = vpop.f32.mrf.mxu1  ;;  %v4446_v60 = vmax.f32 %v4410_v5, 0.0 }
 0x300   : > { %v4258_v57 = vpop.f32.mrf.mxu0  ;;  %v2866_v33 = vadd.f32 %v2824_v44, %v6432_v58  ;;  %v5689_v58 = vld [vmem:[%s6785_s2] ss:$0 sm:$0xff] }
 0x301   : > { %v3865_v61 = vadd.f32 %v3821_v15, %v3298_v12  ;;  %v3831_v27 = vpop.f32.mrf.mxu3 }
 0x303   : > { %v4299_v17 = vadd.f32 %v4255_v13, %v3865_v61 }
 0x305   : > { %v4411_v4 = vadd.f32 %v6493_v52, %v4299_v17 }
 0x306   : > { %v3257_v56 = vpop.f32.mrf.mxu2 }
 0x307   : > { %v4447_v19 = vmax.f32 %v4411_v4, 0.0  ;;  %v3299_v2 = vadd.f32 %v3257_v56, %v2866_v33  ;;  %v2826_v54 = vpop.f32.mrf.mxu1 }
 0x308   : > { %v2867_v1 = vadd.f32 %v2826_v54, %v6444_v49  ;;  %v4260_v38 = vpop.f32.mrf.mxu0 }
 0x309   : > { %v5646_v34 = vpack.c.bf16 %v4447_v19, %v4446_v60  ;;  %v3866_v28 = vadd.f32 %v3824_v55, %v3299_v2 }
 0x30b   : > { %5672 = vst [vmem:[%s6514_s13 + $0x78] sm:$0xff] %v5646_v34   ;;  %v4300_v45 = vadd.f32 %v4258_v57, %v3866_v28 }
 0x30d   : > { %v4412_v62 = vadd.f32 %v5689_v58, %v4300_v45 }
 0x30e   : > { %v3259_v24 = vpop.f32.mrf.mxu2 }
 0x30f   : > { %v3300_v50 = vadd.f32 %v3259_v24, %v2867_v1  ;;  %v2829_v46 = vpop.f32.mrf.mxu1  ;;  %v4448_v63 = vmax.f32 %v4412_v62, 0.0 }
 0x310   : > { %v2868_v32 = vadd.f32 %v2829_v46, %v6456_v22  ;;  %v4263_v25 = vpop.f32.mrf.mxu0 }
 0x311   : > { %v3867_v52 = vadd.f32 %v3826_v30, %v3300_v50 }
 0x313   : > { %v4301_v37 = vadd.f32 %v4260_v38, %v3867_v52 }
 0x315   : > { %v4413_v16 = vadd.f32 %v5689_v58, %v4301_v37 }
 0x316   : > { %v3262_v36 = vpop.f32.mrf.mxu2 }
 0x317   : > { %v4449_v49 = vmax.f32 %v4413_v16, 0.0  ;;  %v3301_v48 = vadd.f32 %v3262_v36, %v2868_v32  ;;  %v2831_v47 = vpop.f32.mrf.mxu1 }
 0x318   : > { %v2869_v21 = vadd.f32 %v2831_v47, %v6468_v41  ;;  %v4265_v20 = vpop.f32.mrf.mxu0 }
 0x319   : > { %v5651_v42 = vpack.c.bf16 %v4449_v49, %v4448_v63  ;;  %v3868_v53 = vadd.f32 %v3829_v14, %v3301_v48 }
 0x31b   : > { %5673 = vst [vmem:[%s6514_s13 + $0x80] sm:$0xff] %v5651_v42   ;;  %v4302_v7 = vadd.f32 %v4263_v25, %v3868_v53 }
 0x31d   : > { %v4414_v22 = vadd.f32 %v5689_v58, %v4302_v7 }
 0x31e   : > { %v3264_v18 = vpop.f32.mrf.mxu2 }
 0x31f   : > { %v3302_v23 = vadd.f32 %v3264_v18, %v2869_v21  ;;  %v4450_v8 = vmax.f32 %v4414_v22, 0.0 }
 0x321   : > { %v3869_v35 = vadd.f32 %v3831_v27, %v3302_v23 }
 0x323   : > { %v4303_v43 = vadd.f32 %v4265_v20, %v3869_v35 }
 0x325   : > { %v4415_v11 = vadd.f32 %v5689_v58, %v4303_v43 }
 0x327   : > { %v4451_v51 = vmax.f32 %v4415_v11, 0.0 }
 0x329   : > { %v5656_v29 = vpack.c.bf16 %v4451_v51, %v4450_v8 }
 0x32b   : > { %5674 = vst [vmem:[%s6514_s13 + $0x88] sm:$0xff] %v5656_v29  }
 0x32c PF: > { %s13_s12 = sadd.s32 1, %s5696_s12  }
 0x32d   : > { %p10_p4 = scmp.ge.s32.totalorder %s13_s12, 4  }
 0x32f   :  { %12 = sbr.rel (!%p10_p4) target bundleno = 1 (0x1), region = 70 }

// kernel: _lambda_.8
= control target key start
LH: loop header
LB: loop body
LE: loop exit
PB: predicated region body
PF: predicated region fallthrough
CT: control target
= control target key end

     0   :  { %s1499_s1 = inlined_call_operand.vmem [shape: bf16[512,128], index: 1, kind: input, shape index: {}]   ;;  %s1500_s0 = inlined_call_operand.vmem [shape: bf16[128,512], index: 0, kind: input, shape index: {}]   ;;  %s1501_s2 = inlined_call_operand.vmem [shape: f32[1,128], index: 2, kind: input, shape index: {}]   ;;  %s1502_s3 = inlined_call_operand.vmem [shape: f32[128,128], index: 3, kind: output, shape index: {}]  }
   0x1   :  { %v1096_v0 = vld [vmem:[%s1499_s1 + $0x38] sm:$0xff]  ;;  %v1095_v4 = vld [vmem:[%s1499_s1 + $0x30] sm:$0xff]  ;;  %v1094_v8 = vld [vmem:[%s1499_s1 + $0x28] sm:$0xff] }
   0x2   :  { %v1104_v1 = vld [vmem:[%s1499_s1 + $0x78] sm:$0xff]  ;;  %498 = vmatpush.bf16.msra.mxu0 %v1096_v0  ;;  %v1103_v5 = vld [vmem:[%s1499_s1 + $0x70] sm:$0xff]  ;;  %v1102_v9 = vld [vmem:[%s1499_s1 + $0x68] sm:$0xff] }
   0x3   :  { %v1112_v2 = vld [vmem:[%s1499_s1 + $0xb8] sm:$0xff]  ;;  %547 = vmatpush.bf16.msra.mxu1 %v1104_v1  ;;  %v1111_v6 = vld [vmem:[%s1499_s1 + $0xb0] sm:$0xff]  ;;  %v1110_v10 = vld [vmem:[%s1499_s1 + $0xa8] sm:$0xff] }
   0x4   :  { %v1120_v3 = vld [vmem:[%s1499_s1 + $0xf8] sm:$0xff]  ;;  %596 = vmatpush.bf16.msra.mxu2 %v1112_v2  ;;  %v1119_v7 = vld [vmem:[%s1499_s1 + $0xf0] sm:$0xff]  ;;  %v1118_v11 = vld [vmem:[%s1499_s1 + $0xe8] sm:$0xff] }
   0x5   :  { %645 = vmatpush.bf16.msra.mxu3 %v1120_v3  ;;  %v1093_v12 = vld [vmem:[%s1499_s1 + $0x20] sm:$0xff]  ;;  %v1092_v16 = vld [vmem:[%s1499_s1 + $0x18] sm:$0xff]  ;;  %v1091_v20 = vld [vmem:[%s1499_s1 + $0x10] sm:$0xff] }
   0x6   :  { %499 = vmatpush.bf16.msra.mxu0 %v1095_v4  ;;  %v1101_v13 = vld [vmem:[%s1499_s1 + $0x60] sm:$0xff]  ;;  %v1100_v17 = vld [vmem:[%s1499_s1 + $0x58] sm:$0xff]  ;;  %v1099_v21 = vld [vmem:[%s1499_s1 + $0x50] sm:$0xff] }
   0x7   :  { %548 = vmatpush.bf16.msra.mxu1 %v1103_v5  ;;  %v1109_v14 = vld [vmem:[%s1499_s1 + $0xa0] sm:$0xff]  ;;  %v1108_v18 = vld [vmem:[%s1499_s1 + $0x98] sm:$0xff]  ;;  %v1107_v22 = vld [vmem:[%s1499_s1 + $0x90] sm:$0xff] }
   0x8   :  { %597 = vmatpush.bf16.msra.mxu2 %v1111_v6  ;;  %v1117_v15 = vld [vmem:[%s1499_s1 + $0xe0] sm:$0xff]  ;;  %v1116_v19 = vld [vmem:[%s1499_s1 + $0xd8] sm:$0xff]  ;;  %v1115_v23 = vld [vmem:[%s1499_s1 + $0xd0] sm:$0xff] }
   0x9   :  { %646 = vmatpush.bf16.msra.mxu3 %v1119_v7  ;;  %v1090_v24 = vld [vmem:[%s1499_s1 + $0x8] sm:$0xff]  ;;  %v1089_v28 = vld [vmem:[%s1499_s1] sm:$0xff]  ;;  %v1059_v33 = vld [vmem:[%s1500_s0 + $0xc] sm:$0xf0] }
   0xa   :  { %500 = vmatpush.bf16.msra.mxu0 %v1094_v8  ;;  %v1098_v25 = vld [vmem:[%s1499_s1 + $0x48] sm:$0xff]  ;;  %v1097_v29 = vld [vmem:[%s1499_s1 + $0x40] sm:$0xff]  ;;  %v805_v35 = vld [vmem:[%s1500_s0 + $0x10] sm:$0xf0] }
   0xb   :  { %549 = vmatpush.bf16.msra.mxu1 %v1102_v9  ;;  %v1106_v26 = vld [vmem:[%s1499_s1 + $0x88] sm:$0xff]  ;;  %v1105_v30 = vld [vmem:[%s1499_s1 + $0x80] sm:$0xff]  ;;  %v1060_v37 = vld [vmem:[%s1500_s0 + $0x14] sm:$0xf0] }
   0xc   :  { %598 = vmatpush.bf16.msra.mxu2 %v1110_v10  ;;  %v1114_v27 = vld [vmem:[%s1499_s1 + $0xc8] sm:$0xff]  ;;  %v1113_v31 = vld [vmem:[%s1499_s1 + $0xc0] sm:$0xff]  ;;  %v813_v39 = vld [vmem:[%s1500_s0 + $0x18] sm:$0xf0] }
   0xd   :  { %647 = vmatpush.bf16.msra.mxu3 %v1118_v11  ;;  %v803_v32 = vld [vmem:[%s1500_s0] sm:$0xf]  ;;  %v1057_v34 = vld [vmem:[%s1500_s0 + $0x4] sm:$0xf]  ;;  %v811_v36 = vld [vmem:[%s1500_s0 + $0x8] sm:$0xf] }
   0xe   :  { %501 = vmatpush.bf16.msra.mxu0 %v1093_v12  ;;  %v1058_v38 = vld [vmem:[%s1500_s0 + $0xc] sm:$0xf]  ;;  %v804_v40 = vor.u32 %v1059_v33, %v803_v32  ;;  %v808_v41 = vor.u32 %v1057_v34, %v805_v35  ;;  %v812_v42 = vor.u32 %v1060_v37, %v811_v36  ;;  %v819_v44 = vld [vmem:[%s1500_s0 + $0x20] sm:$0xf]  ;;  %v1063_v45 = vld [vmem:[%s1500_s0 + $0x2c] sm:$0xf0] }
   0xf   :  { %550 = vmatpush.bf16.msra.mxu1 %v1101_v13  ;;  %v816_v43 = vor.u32 %v1058_v38, %v813_v39  ;;  %v1061_v46 = vld [vmem:[%s1500_s0 + $0x24] sm:$0xf]  ;;  %v821_v47 = vld [vmem:[%s1500_s0 + $0x30] sm:$0xf0]  ;;  %v827_v48 = vld [vmem:[%s1500_s0 + $0x28] sm:$0xf]  ;;  %v820_v52 = vor.u32 %v1063_v45, %v819_v44 }
  0x10   :  { %599 = vmatpush.bf16.msra.mxu2 %v1109_v14  ;;  %v1064_v49 = vld [vmem:[%s1500_s0 + $0x34] sm:$0xf0]  ;;  %v1062_v50 = vld [vmem:[%s1500_s0 + $0x2c] sm:$0xf]  ;;  %v829_v51 = vld [vmem:[%s1500_s0 + $0x38] sm:$0xf0]  ;;  %v824_v53 = vor.u32 %v1061_v46, %v821_v47 }
  0x11   :  { %648 = vmatpush.bf16.msra.mxu3 %v1117_v15  ;;  %v828_v54 = vor.u32 %v1064_v49, %v827_v48  ;;  %v832_v55 = vor.u32 %v1062_v50, %v829_v51  ;;  %v835_v56 = vld [vmem:[%s1500_s0 + $0x40] sm:$0xf]  ;;  %v1067_v57 = vld [vmem:[%s1500_s0 + $0x4c] sm:$0xf0]  ;;  %v1065_v58 = vld [vmem:[%s1500_s0 + $0x44] sm:$0xf] }
  0x12   :  { %502 = vmatpush.bf16.msra.mxu0 %v1092_v16  ;;  %v837_v59 = vld [vmem:[%s1500_s0 + $0x50] sm:$0xf0]  ;;  %v843_v60 = vld [vmem:[%s1500_s0 + $0x48] sm:$0xf]  ;;  %v1068_v61 = vld [vmem:[%s1500_s0 + $0x54] sm:$0xf0]  ;;  %v836_v0 = vor.u32 %v1067_v57, %v835_v56 }
  0x13   :  { %551 = vmatpush.bf16.msra.mxu1 %v1100_v17  ;;  %v1066_v62 = vld [vmem:[%s1500_s0 + $0x4c] sm:$0xf]  ;;  %v845_v63 = vld [vmem:[%s1500_s0 + $0x58] sm:$0xf0]  ;;  %v840_v1 = vor.u32 %v1065_v58, %v837_v59  ;;  %v844_v2 = vor.u32 %v1068_v61, %v843_v60  ;;  %v851_v4 = vld [vmem:[%s1500_s0 + $0x60] sm:$0xf] }
  0x14   :  { %600 = vmatpush.bf16.msra.mxu2 %v1108_v18  ;;  %v848_v3 = vor.u32 %v1066_v62, %v845_v63  ;;  %v1071_v5 = vld [vmem:[%s1500_s0 + $0x6c] sm:$0xf0]  ;;  %v1069_v6 = vld [vmem:[%s1500_s0 + $0x64] sm:$0xf]  ;;  %v853_v7 = vld [vmem:[%s1500_s0 + $0x70] sm:$0xf0] }
  0x15   :  { %649 = vmatpush.bf16.msra.mxu3 %v1116_v19  ;;  %v859_v8 = vld [vmem:[%s1500_s0 + $0x68] sm:$0xf]  ;;  %v1072_v9 = vld [vmem:[%s1500_s0 + $0x74] sm:$0xf0]  ;;  %v1070_v10 = vld [vmem:[%s1500_s0 + $0x6c] sm:$0xf]  ;;  %v852_v12 = vor.u32 %v1071_v5, %v851_v4  ;;  %v856_v13 = vor.u32 %v1069_v6, %v853_v7 }
  0x16   :  { %503 = vmatpush.bf16.msra.mxu0 %v1091_v20  ;;  %v861_v11 = vld [vmem:[%s1500_s0 + $0x78] sm:$0xf0]  ;;  %v860_v14 = vor.u32 %v1072_v9, %v859_v8  ;;  %v867_v16 = vld [vmem:[%s1500_s0 + $0x80] sm:$0xf]  ;;  %v1075_v17 = vld [vmem:[%s1500_s0 + $0x8c] sm:$0xf0] }
  0x17   :  { %552 = vmatpush.bf16.msra.mxu1 %v1099_v21  ;;  %v864_v15 = vor.u32 %v1070_v10, %v861_v11  ;;  %v1073_v18 = vld [vmem:[%s1500_s0 + $0x84] sm:$0xf]  ;;  %v869_v19 = vld [vmem:[%s1500_s0 + $0x90] sm:$0xf0]  ;;  %v875_v20 = vld [vmem:[%s1500_s0 + $0x88] sm:$0xf] }
  0x18   :  { %601 = vmatpush.bf16.msra.mxu2 %v1107_v22  ;;  %v1076_v21 = vld [vmem:[%s1500_s0 + $0x94] sm:$0xf0]  ;;  %v1074_v22 = vld [vmem:[%s1500_s0 + $0x8c] sm:$0xf]  ;;  %v891_v32 = vld [vmem:[%s1500_s0 + $0xa8] sm:$0xf] }
  0x19   :  { %650 = vmatpush.bf16.msra.mxu3 %v1115_v23  ;;  %v877_v23 = vld [vmem:[%s1500_s0 + $0x98] sm:$0xf0]  ;;  %v1080_v33 = vld [vmem:[%s1500_s0 + $0xb4] sm:$0xf0]  ;;  %v1078_v34 = vld [vmem:[%s1500_s0 + $0xac] sm:$0xf] }
  0x1a   :  { %504 = vmatpush.bf16.msra.mxu0 %v1090_v24  ;;  %v868_v24 = vor.u32 %v1075_v17, %v867_v16  ;;  %v893_v35 = vld [vmem:[%s1500_s0 + $0xb8] sm:$0xf0]  ;;  %v892_v38 = vor.u32 %v1080_v33, %v891_v32  ;;  %v907_v44 = vld [vmem:[%s1500_s0 + $0xc8] sm:$0xf]  ;;  %v1084_v45 = vld [vmem:[%s1500_s0 + $0xd4] sm:$0xf0] }
  0x1b   :  { %553 = vmatpush.bf16.msra.mxu1 %v1098_v25  ;;  %v872_v25 = vor.u32 %v1073_v18, %v869_v19  ;;  %v896_v39 = vor.u32 %v1078_v34, %v893_v35  ;;  %v1082_v46 = vld [vmem:[%s1500_s0 + $0xcc] sm:$0xf]  ;;  %v909_v47 = vld [vmem:[%s1500_s0 + $0xd8] sm:$0xf0]  ;;  %v908_v50 = vor.u32 %v1084_v45, %v907_v44  ;;  %v923_v56 = vld [vmem:[%s1500_s0 + $0xe8] sm:$0xf] }
  0x1c   :  { %602 = vmatpush.bf16.msra.mxu2 %v1106_v26  ;;  %v876_v26 = vor.u32 %v1076_v21, %v875_v20  ;;  %v912_v51 = vor.u32 %v1082_v46, %v909_v47  ;;  %v1088_v57 = vld [vmem:[%s1500_s0 + $0xf4] sm:$0xf0]  ;;  %v1086_v58 = vld [vmem:[%s1500_s0 + $0xec] sm:$0xf]  ;;  %v925_v59 = vld [vmem:[%s1500_s0 + $0xf8] sm:$0xf0] }
  0x1d   :  { %651 = vmatpush.bf16.msra.mxu3 %v1114_v27  ;;  %v880_v27 = vor.u32 %v1074_v22, %v877_v23  ;;  %v924_v62 = vor.u32 %v1088_v57, %v923_v56  ;;  %v928_v63 = vor.u32 %v1086_v58, %v925_v59  ;;  %v1433_v6 = vld [vmem:[%s1501_s2] ss:$0 sm:$0xff] }
  0x1e   :  { %505 = vmatpush.bf16.msra.mxu0 %v1089_v28  ;;  %v883_v28 = vld [vmem:[%s1500_s0 + $0xa0] sm:$0xf] }
  0x1f   :  { %554 = vmatpush.bf16.msra.mxu1 %v1097_v29  ;;  %v1079_v29 = vld [vmem:[%s1500_s0 + $0xac] sm:$0xf0] }
  0x20   :  { %603 = vmatpush.bf16.msra.mxu2 %v1105_v30  ;;  %v1077_v30 = vld [vmem:[%s1500_s0 + $0xa4] sm:$0xf]  ;;  %v884_v36 = vor.u32 %v1079_v29, %v883_v28 }
  0x21   :  { %652 = vmatpush.bf16.msra.mxu3 %v1113_v31  ;;  %506 = vmatmul.bf16.vlgmr.msra.gmra.mxu0 %v804_v40  ;;  %v885_v31 = vld [vmem:[%s1500_s0 + $0xb0] sm:$0xf0]  ;;  %v899_v40 = vld [vmem:[%s1500_s0 + $0xc0] sm:$0xf] }
  0x22   :  { %555 = vmatmul.bf16.vlgmr.msra.gmra.mxu1 %v808_v41  ;;  %v888_v37 = vor.u32 %v1077_v30, %v885_v31  ;;  %v1083_v41 = vld [vmem:[%s1500_s0 + $0xcc] sm:$0xf0] }
  0x23   :  { %604 = vmatmul.bf16.vlgmr.msra.gmra.mxu2 %v812_v42  ;;  %v1081_v42 = vld [vmem:[%s1500_s0 + $0xc4] sm:$0xf]  ;;  %v900_v48 = vor.u32 %v1083_v41, %v899_v40 }
  0x24   :  { %653 = vmatmul.bf16.vlgmr.msra.gmra.mxu3 %v816_v43  ;;  %v901_v43 = vld [vmem:[%s1500_s0 + $0xd0] sm:$0xf0] }
  0x25   :  { %v904_v49 = vor.u32 %v1081_v42, %v901_v43 }
  0x31   :  { %511 = vmatmul.bf16.gmra.mxu0 %v820_v52  ;;  %v915_v52 = vld [vmem:[%s1500_s0 + $0xe0] sm:$0xf] }
  0x32   :  { %560 = vmatmul.bf16.gmra.mxu1 %v824_v53  ;;  %v1087_v53 = vld [vmem:[%s1500_s0 + $0xec] sm:$0xf0] }
  0x33   :  { %609 = vmatmul.bf16.gmra.mxu2 %v828_v54  ;;  %v1085_v54 = vld [vmem:[%s1500_s0 + $0xe4] sm:$0xf]  ;;  %v916_v60 = vor.u32 %v1087_v53, %v915_v52 }
  0x34   :  { %658 = vmatmul.bf16.gmra.mxu3 %v832_v55  ;;  %v917_v55 = vld [vmem:[%s1500_s0 + $0xf0] sm:$0xf0] }
  0x35   :  { %v920_v61 = vor.u32 %v1085_v54, %v917_v55 }
  0x41   :  { %516 = vmatmul.bf16.gmra.mxu0 %v836_v0 }
  0x42   :  { %565 = vmatmul.bf16.gmra.mxu1 %v840_v1 }
  0x43   :  { %614 = vmatmul.bf16.gmra.mxu2 %v844_v2 }
  0x44   :  { %663 = vmatmul.bf16.gmra.mxu3 %v848_v3 }
  0x51   :  { %521 = vmatmul.bf16.gmra.mxu0 %v852_v12 }
  0x52   :  { %570 = vmatmul.bf16.gmra.mxu1 %v856_v13 }
  0x53   :  { %619 = vmatmul.bf16.gmra.mxu2 %v860_v14 }
  0x54   :  { %668 = vmatmul.bf16.gmra.mxu3 %v864_v15 }
  0x61   :  { %526 = vmatmul.bf16.gmra.mxu0 %v868_v24 }
  0x62   :  { %575 = vmatmul.bf16.gmra.mxu1 %v872_v25 }
  0x63   :  { %624 = vmatmul.bf16.gmra.mxu2 %v876_v26 }
  0x64   :  { %673 = vmatmul.bf16.gmra.mxu3 %v880_v27 }
  0x71   :  { %531 = vmatmul.bf16.gmra.mxu0 %v884_v36 }
  0x72   :  { %580 = vmatmul.bf16.gmra.mxu1 %v888_v37 }
  0x73   :  { %629 = vmatmul.bf16.gmra.mxu2 %v892_v38 }
  0x74   :  { %678 = vmatmul.bf16.gmra.mxu3 %v896_v39 }
  0x81   :  { %536 = vmatmul.bf16.gmra.mxu0 %v900_v48 }
  0x82   :  { %585 = vmatmul.bf16.gmra.mxu1 %v904_v49 }
  0x83   :  { %634 = vmatmul.bf16.gmra.mxu2 %v908_v50 }
  0x84   :  { %683 = vmatmul.bf16.gmra.mxu3 %v912_v51 }
  0x91   :  { %541 = vmatmul.bf16.gmra.mxu0 %v916_v60 }
  0x92   :  { %590 = vmatmul.bf16.gmra.mxu1 %v920_v61 }
  0x93   :  { %639 = vmatmul.bf16.gmra.mxu2 %v924_v62 }
  0x94   :  { %688 = vmatmul.bf16.gmra.mxu3 %v928_v63 }
  0x9e   :  { %v507_v0 = vpop.f32.mrf.mxu0 }
  0x9f   :  { %v556_v1 = vpop.f32.mrf.mxu1 }
  0xa0   :  { %v557_v2 = vadd.f32 %v556_v1, %v507_v0 }
  0xa6   :  { %v605_v3 = vpop.f32.mrf.mxu2  ;;  %v509_v7 = vpop.f32.mrf.mxu0 }
  0xa7   :  { %v654_v4 = vpop.f32.mrf.mxu3  ;;  %v606_v5 = vadd.f32 %v605_v3, %v557_v2  ;;  %v558_v8 = vpop.f32.mrf.mxu1 }
  0xa8   :  { %v559_v12 = vadd.f32 %v558_v8, %v509_v7 }
  0xa9   :  { %v655_v9 = vadd.f32 %v654_v4, %v606_v5 }
  0xab   :  { %v749_v10 = vadd.f32 %v1433_v6, %v655_v9 }
  0xad   :  { %v765_v11 = vmax.f32 %v749_v10, 0.0 }
  0xae   :  { %v607_v13 = vpop.f32.mrf.mxu2  ;;  %v512_v16 = vpop.f32.mrf.mxu0 }
  0xaf   :  { %v656_v14 = vpop.f32.mrf.mxu3  ;;  %781 = vst [vmem:[%s1502_s3] sm:$0xff] %v765_v11  ;;  %v608_v15 = vadd.f32 %v607_v13, %v559_v12  ;;  %v561_v17 = vpop.f32.mrf.mxu1 }
  0xb0   :  { %v562_v20 = vadd.f32 %v561_v17, %v512_v16 }
  0xb1   :  { %v657_v18 = vadd.f32 %v656_v14, %v608_v15 }
  0xb3   :  { %v750_v19 = vadd.f32 %v1433_v6, %v657_v18 }
  0xb5   :  { %v766_v21 = vmax.f32 %v750_v19, 0.0 }
  0xb6   :  { %v610_v22 = vpop.f32.mrf.mxu2  ;;  %v514_v25 = vpop.f32.mrf.mxu0 }
  0xb7   :  { %v659_v23 = vpop.f32.mrf.mxu3  ;;  %782 = vst [vmem:[%s1502_s3 + $0x8] sm:$0xff] %v766_v21  ;;  %v611_v24 = vadd.f32 %v610_v22, %v562_v20  ;;  %v563_v26 = vpop.f32.mrf.mxu1 }
  0xb8   :  { %v564_v30 = vadd.f32 %v563_v26, %v514_v25 }
  0xb9   :  { %v660_v27 = vadd.f32 %v659_v23, %v611_v24 }
  0xbb   :  { %v751_v28 = vadd.f32 %v1433_v6, %v660_v27 }
  0xbd   :  { %v767_v29 = vmax.f32 %v751_v28, 0.0 }
  0xbe   :  { %v612_v31 = vpop.f32.mrf.mxu2  ;;  %v517_v34 = vpop.f32.mrf.mxu0 }
  0xbf   :  { %v661_v32 = vpop.f32.mrf.mxu3  ;;  %783 = vst [vmem:[%s1502_s3 + $0x10] sm:$0xff] %v767_v29  ;;  %v613_v33 = vadd.f32 %v612_v31, %v564_v30  ;;  %v566_v35 = vpop.f32.mrf.mxu1 }
  0xc0   :  { %v567_v38 = vadd.f32 %v566_v35, %v517_v34 }
  0xc1   :  { %v662_v36 = vadd.f32 %v661_v32, %v613_v33 }
  0xc3   :  { %v752_v37 = vadd.f32 %v1433_v6, %v662_v36 }
  0xc5   :  { %v768_v39 = vmax.f32 %v752_v37, 0.0 }
  0xc6   :  { %v615_v40 = vpop.f32.mrf.mxu2  ;;  %v519_v43 = vpop.f32.mrf.mxu0 }
  0xc7   :  { %v664_v41 = vpop.f32.mrf.mxu3  ;;  %784 = vst [vmem:[%s1502_s3 + $0x18] sm:$0xff] %v768_v39  ;;  %v616_v42 = vadd.f32 %v615_v40, %v567_v38  ;;  %v568_v44 = vpop.f32.mrf.mxu1 }
  0xc8   :  { %v569_v48 = vadd.f32 %v568_v44, %v519_v43 }
  0xc9   :  { %v665_v45 = vadd.f32 %v664_v41, %v616_v42 }
  0xcb   :  { %v753_v46 = vadd.f32 %v1433_v6, %v665_v45 }
  0xcd   :  { %v769_v47 = vmax.f32 %v753_v46, 0.0 }
  0xce   :  { %v617_v49 = vpop.f32.mrf.mxu2  ;;  %v522_v52 = vpop.f32.mrf.mxu0 }
  0xcf   :  { %v666_v50 = vpop.f32.mrf.mxu3  ;;  %785 = vst [vmem:[%s1502_s3 + $0x20] sm:$0xff] %v769_v47  ;;  %v618_v51 = vadd.f32 %v617_v49, %v569_v48  ;;  %v571_v53 = vpop.f32.mrf.mxu1 }
  0xd0   :  { %v572_v56 = vadd.f32 %v571_v53, %v522_v52 }
  0xd1   :  { %v667_v54 = vadd.f32 %v666_v50, %v618_v51 }
  0xd3   :  { %v754_v55 = vadd.f32 %v1433_v6, %v667_v54 }
  0xd5   :  { %v770_v57 = vmax.f32 %v754_v55, 0.0 }
  0xd6   :  { %v620_v58 = vpop.f32.mrf.mxu2  ;;  %v524_v61 = vpop.f32.mrf.mxu0 }
  0xd7   :  { %v669_v59 = vpop.f32.mrf.mxu3  ;;  %786 = vst [vmem:[%s1502_s3 + $0x28] sm:$0xff] %v770_v57  ;;  %v621_v60 = vadd.f32 %v620_v58, %v572_v56  ;;  %v573_v62 = vpop.f32.mrf.mxu1 }
  0xd8   :  { %v574_v2 = vadd.f32 %v573_v62, %v524_v61 }
  0xd9   :  { %v670_v63 = vadd.f32 %v669_v59, %v621_v60 }
  0xdb   :  { %v755_v0 = vadd.f32 %v1433_v6, %v670_v63 }
  0xdd   :  { %v771_v1 = vmax.f32 %v755_v0, 0.0 }
  0xde   :  { %v622_v3 = vpop.f32.mrf.mxu2  ;;  %v527_v7 = vpop.f32.mrf.mxu0 }
  0xdf   :  { %v671_v4 = vpop.f32.mrf.mxu3  ;;  %787 = vst [vmem:[%s1502_s3 + $0x30] sm:$0xff] %v771_v1  ;;  %v623_v5 = vadd.f32 %v622_v3, %v574_v2  ;;  %v576_v8 = vpop.f32.mrf.mxu1 }
  0xe0   :  { %v577_v11 = vadd.f32 %v576_v8, %v527_v7 }
  0xe1   :  { %v672_v9 = vadd.f32 %v671_v4, %v623_v5 }
  0xe3   :  { %v756_v10 = vadd.f32 %v1433_v6, %v672_v9 }
  0xe5   :  { %v772_v12 = vmax.f32 %v756_v10, 0.0 }
  0xe6   :  { %v625_v13 = vpop.f32.mrf.mxu2  ;;  %v529_v16 = vpop.f32.mrf.mxu0 }
  0xe7   :  { %v674_v14 = vpop.f32.mrf.mxu3  ;;  %788 = vst [vmem:[%s1502_s3 + $0x38] sm:$0xff] %v772_v12  ;;  %v626_v15 = vadd.f32 %v625_v13, %v577_v11  ;;  %v578_v17 = vpop.f32.mrf.mxu1 }
  0xe8   :  { %v579_v21 = vadd.f32 %v578_v17, %v529_v16 }
  0xe9   :  { %v675_v18 = vadd.f32 %v674_v14, %v626_v15 }
  0xeb   :  { %v757_v19 = vadd.f32 %v1433_v6, %v675_v18 }
  0xed   :  { %v773_v20 = vmax.f32 %v757_v19, 0.0 }
  0xee   :  { %v627_v22 = vpop.f32.mrf.mxu2  ;;  %v532_v25 = vpop.f32.mrf.mxu0 }
  0xef   :  { %v676_v23 = vpop.f32.mrf.mxu3  ;;  %789 = vst [vmem:[%s1502_s3 + $0x40] sm:$0xff] %v773_v20  ;;  %v628_v24 = vadd.f32 %v627_v22, %v579_v21  ;;  %v581_v26 = vpop.f32.mrf.mxu1 }
  0xf0   :  { %v582_v29 = vadd.f32 %v581_v26, %v532_v25 }
  0xf1   :  { %v677_v27 = vadd.f32 %v676_v23, %v628_v24 }
  0xf3   :  { %v758_v28 = vadd.f32 %v1433_v6, %v677_v27 }
  0xf5   :  { %v774_v30 = vmax.f32 %v758_v28, 0.0 }
  0xf6   :  { %v630_v31 = vpop.f32.mrf.mxu2  ;;  %v534_v34 = vpop.f32.mrf.mxu0 }
  0xf7   :  { %v679_v32 = vpop.f32.mrf.mxu3  ;;  %790 = vst [vmem:[%s1502_s3 + $0x48] sm:$0xff] %v774_v30  ;;  %v631_v33 = vadd.f32 %v630_v31, %v582_v29  ;;  %v583_v35 = vpop.f32.mrf.mxu1 }
  0xf8   :  { %v584_v39 = vadd.f32 %v583_v35, %v534_v34 }
  0xf9   :  { %v680_v36 = vadd.f32 %v679_v32, %v631_v33 }
  0xfb   :  { %v759_v37 = vadd.f32 %v1433_v6, %v680_v36 }
  0xfd   :  { %v775_v38 = vmax.f32 %v759_v37, 0.0 }
  0xfe   :  { %v632_v40 = vpop.f32.mrf.mxu2  ;;  %v537_v43 = vpop.f32.mrf.mxu0 }
  0xff   :  { %v681_v41 = vpop.f32.mrf.mxu3  ;;  %791 = vst [vmem:[%s1502_s3 + $0x50] sm:$0xff] %v775_v38  ;;  %v633_v42 = vadd.f32 %v632_v40, %v584_v39  ;;  %v586_v44 = vpop.f32.mrf.mxu1 }
 0x100   :  { %v587_v47 = vadd.f32 %v586_v44, %v537_v43 }
 0x101   :  { %v682_v45 = vadd.f32 %v681_v41, %v633_v42 }
 0x103   :  { %v760_v46 = vadd.f32 %v1433_v6, %v682_v45 }
 0x105   :  { %v776_v48 = vmax.f32 %v760_v46, 0.0 }
 0x106   :  { %v635_v49 = vpop.f32.mrf.mxu2  ;;  %v539_v52 = vpop.f32.mrf.mxu0 }
 0x107   :  { %v684_v50 = vpop.f32.mrf.mxu3  ;;  %792 = vst [vmem:[%s1502_s3 + $0x58] sm:$0xff] %v776_v48  ;;  %v636_v51 = vadd.f32 %v635_v49, %v587_v47  ;;  %v588_v53 = vpop.f32.mrf.mxu1 }
 0x108   :  { %v589_v57 = vadd.f32 %v588_v53, %v539_v52 }
 0x109   :  { %v685_v54 = vadd.f32 %v684_v50, %v636_v51 }
 0x10b   :  { %v761_v55 = vadd.f32 %v1433_v6, %v685_v54 }
 0x10d   :  { %v777_v56 = vmax.f32 %v761_v55, 0.0 }
 0x10e   :  { %v637_v58 = vpop.f32.mrf.mxu2  ;;  %v542_v61 = vpop.f32.mrf.mxu0 }
 0x10f   :  { %v686_v59 = vpop.f32.mrf.mxu3  ;;  %793 = vst [vmem:[%s1502_s3 + $0x60] sm:$0xff] %v777_v56  ;;  %v638_v60 = vadd.f32 %v637_v58, %v589_v57  ;;  %v591_v62 = vpop.f32.mrf.mxu1 }
 0x110   :  { %v592_v1 = vadd.f32 %v591_v62, %v542_v61 }
 0x111   :  { %v687_v63 = vadd.f32 %v686_v59, %v638_v60 }
 0x113   :  { %v762_v0 = vadd.f32 %v1433_v6, %v687_v63 }
 0x115   :  { %v778_v2 = vmax.f32 %v762_v0, 0.0 }
 0x116   :  { %v640_v3 = vpop.f32.mrf.mxu2  ;;  %v544_v8 = vpop.f32.mrf.mxu0 }
 0x117   :  { %v689_v4 = vpop.f32.mrf.mxu3  ;;  %794 = vst [vmem:[%s1502_s3 + $0x68] sm:$0xff] %v778_v2  ;;  %v641_v5 = vadd.f32 %v640_v3, %v592_v1  ;;  %v593_v9 = vpop.f32.mrf.mxu1 }
 0x118   :  { %v594_v12 = vadd.f32 %v593_v9, %v544_v8 }
 0x119   :  { %v690_v7 = vadd.f32 %v689_v4, %v641_v5 }
 0x11b   :  { %v763_v10 = vadd.f32 %v1433_v6, %v690_v7 }
 0x11d   :  { %v779_v11 = vmax.f32 %v763_v10, 0.0 }
 0x11e   :  { %v642_v13 = vpop.f32.mrf.mxu2 }
 0x11f   :  { %795 = vst [vmem:[%s1502_s3 + $0x70] sm:$0xff] %v779_v11  ;;  %v643_v14 = vadd.f32 %v642_v13, %v594_v12  ;;  %v691_v15 = vpop.f32.mrf.mxu3 }
 0x121   :  { %v692_v16 = vadd.f32 %v691_v15, %v643_v14 }
 0x123   :  { %v764_v17 = vadd.f32 %v1433_v6, %v692_v16 }
 0x125   :  { %v780_v18 = vmax.f32 %v764_v17, 0.0 }
 0x127   :  { %796 = vst [vmem:[%s1502_s3 + $0x78] sm:$0xff] %v780_v18 }

// kernel: _lambda_.9
= control target key start
LH: loop header
LB: loop body
LE: loop exit
PB: predicated region body
PF: predicated region fallthrough
CT: control target
= control target key end

     0   :  { %s542_s1 = inlined_call_operand.vmem [shape: bf16[128,128], index: 1, kind: input, shape index: {}]   ;;  %s543_s2 = inlined_call_operand.vmem [shape: f32[1,128], index: 2, kind: input, shape index: {}]   ;;  %s544_s0 = inlined_call_operand.vmem [shape: bf16[128,128], index: 0, kind: input, shape index: {}]   ;;  %s545_s3 = inlined_call_operand.vmem [shape: f32[128,128], index: 3, kind: output, shape index: {}]  }
   0x1   :  { %v397_v0 = vld [vmem:[%s542_s1 + $0x38] sm:$0xff]  ;;  %v396_v1 = vld [vmem:[%s542_s1 + $0x30] sm:$0xff]  ;;  %v395_v2 = vld [vmem:[%s542_s1 + $0x28] sm:$0xff] }
   0x2   :  { %178 = vmatpush.bf16.msra.mxu0 %v397_v0  ;;  %398 = vmatpush.bf16.msra.mxu1 %v397_v0  ;;  %v394_v3 = vld [vmem:[%s542_s1 + $0x20] sm:$0xff]  ;;  %v393_v4 = vld [vmem:[%s542_s1 + $0x18] sm:$0xff]  ;;  %v392_v5 = vld [vmem:[%s542_s1 + $0x10] sm:$0xff] }
   0x3   :  { %399 = vmatpush.bf16.msra.mxu2 %v397_v0  ;;  %400 = vmatpush.bf16.msra.mxu3 %v397_v0  ;;  %v391_v6 = vld [vmem:[%s542_s1 + $0x8] sm:$0xff]  ;;  %v390_v7 = vld [vmem:[%s542_s1] sm:$0xff]  ;;  %v384_v9 = vld [vmem:[%s544_s0 + $0x10] sm:$0xff] }
   0x4   :  { %v382_v8 = vld [vmem:[%s544_s0] sm:$0xff]  ;;  %v388_v11 = vld [vmem:[%s544_s0 + $0x30] sm:$0xff]  ;;  %v383_v12 = vld [vmem:[%s544_s0 + $0x8] sm:$0xff] }
   0x5   :  { %v386_v10 = vld [vmem:[%s544_s0 + $0x20] sm:$0xff]  ;;  %v385_v13 = vld [vmem:[%s544_s0 + $0x18] sm:$0xff]  ;;  %v387_v14 = vld [vmem:[%s544_s0 + $0x28] sm:$0xff] }
   0x6   :  { %179 = vmatpush.bf16.msra.mxu0 %v396_v1  ;;  %401 = vmatpush.bf16.msra.mxu1 %v396_v1  ;;  %v389_v15 = vld [vmem:[%s544_s0 + $0x38] sm:$0xff]  ;;  %v422_v16 = vld [vmem:[%s543_s2] ss:$0 sm:$0xff] }
   0x7   :  { %402 = vmatpush.bf16.msra.mxu2 %v396_v1  ;;  %403 = vmatpush.bf16.msra.mxu3 %v396_v1 }
   0xa   :  { %180 = vmatpush.bf16.msra.mxu0 %v395_v2  ;;  %404 = vmatpush.bf16.msra.mxu1 %v395_v2 }
   0xb   :  { %405 = vmatpush.bf16.msra.mxu2 %v395_v2  ;;  %406 = vmatpush.bf16.msra.mxu3 %v395_v2 }
   0xe   :  { %181 = vmatpush.bf16.msra.mxu0 %v394_v3  ;;  %407 = vmatpush.bf16.msra.mxu1 %v394_v3 }
   0xf   :  { %408 = vmatpush.bf16.msra.mxu2 %v394_v3  ;;  %409 = vmatpush.bf16.msra.mxu3 %v394_v3 }
  0x12   :  { %182 = vmatpush.bf16.msra.mxu0 %v393_v4  ;;  %410 = vmatpush.bf16.msra.mxu1 %v393_v4 }
  0x13   :  { %411 = vmatpush.bf16.msra.mxu2 %v393_v4  ;;  %412 = vmatpush.bf16.msra.mxu3 %v393_v4 }
  0x16   :  { %183 = vmatpush.bf16.msra.mxu0 %v392_v5  ;;  %413 = vmatpush.bf16.msra.mxu1 %v392_v5 }
  0x17   :  { %414 = vmatpush.bf16.msra.mxu2 %v392_v5  ;;  %415 = vmatpush.bf16.msra.mxu3 %v392_v5 }
  0x1a   :  { %184 = vmatpush.bf16.msra.mxu0 %v391_v6  ;;  %416 = vmatpush.bf16.msra.mxu1 %v391_v6 }
  0x1b   :  { %417 = vmatpush.bf16.msra.mxu2 %v391_v6  ;;  %418 = vmatpush.bf16.msra.mxu3 %v391_v6 }
  0x1e   :  { %185 = vmatpush.bf16.msra.mxu0 %v390_v7  ;;  %419 = vmatpush.bf16.msra.mxu1 %v390_v7 }
  0x1f   :  { %420 = vmatpush.bf16.msra.mxu2 %v390_v7  ;;  %421 = vmatpush.bf16.msra.mxu3 %v390_v7 }
  0x21   :  { %186 = vmatmul.bf16.vlgmr.msra.gmra.mxu0 %v382_v8  ;;  %196 = vmatmul.bf16.vlgmr.msra.gmra.mxu1 %v384_v9 }
  0x22   :  { %206 = vmatmul.bf16.vlgmr.msra.gmra.mxu2 %v386_v10  ;;  %216 = vmatmul.bf16.vlgmr.msra.gmra.mxu3 %v388_v11 }
  0x31   :  { %191 = vmatmul.bf16.gmra.mxu0 %v383_v12  ;;  %201 = vmatmul.bf16.gmra.mxu1 %v385_v13 }
  0x32   :  { %211 = vmatmul.bf16.gmra.mxu2 %v387_v14  ;;  %221 = vmatmul.bf16.gmra.mxu3 %v389_v15 }
  0x9e   :  { %v187_v17 = vpop.f32.mrf.mxu0  ;;  %v197_v18 = vpop.f32.mrf.mxu1 }
  0x9f   :  { %v282_v19 = vadd.f32 %v422_v16, %v187_v17  ;;  %v286_v20 = vadd.f32 %v422_v16, %v197_v18 }
  0xa1   :  { %298 = vst [vmem:[%s545_s3] sm:$0xff] %v282_v19 }
  0xa2   :  { %302 = vst [vmem:[%s545_s3 + $0x20] sm:$0xff] %v286_v20 }
  0xa5   :  { %v207_v21 = vpop.f32.mrf.mxu2  ;;  %v217_v22 = vpop.f32.mrf.mxu3 }
  0xa6   :  { %v290_v23 = vadd.f32 %v422_v16, %v207_v21  ;;  %v294_v24 = vadd.f32 %v422_v16, %v217_v22  ;;  %v189_v25 = vpop.f32.mrf.mxu0  ;;  %v199_v26 = vpop.f32.mrf.mxu1 }
  0xa7   :  { %v283_v27 = vadd.f32 %v422_v16, %v189_v25  ;;  %v287_v28 = vadd.f32 %v422_v16, %v199_v26 }
  0xa8   :  { %306 = vst [vmem:[%s545_s3 + $0x40] sm:$0xff] %v290_v23 }
  0xa9   :  { %310 = vst [vmem:[%s545_s3 + $0x60] sm:$0xff] %v294_v24 }
  0xaa   :  { %299 = vst [vmem:[%s545_s3 + $0x8] sm:$0xff] %v283_v27 }
  0xab   :  { %303 = vst [vmem:[%s545_s3 + $0x28] sm:$0xff] %v287_v28 }
  0xad   :  { %v209_v29 = vpop.f32.mrf.mxu2  ;;  %v219_v30 = vpop.f32.mrf.mxu3 }
  0xae   :  { %v291_v31 = vadd.f32 %v422_v16, %v209_v29  ;;  %v295_v32 = vadd.f32 %v422_v16, %v219_v30  ;;  %v192_v33 = vpop.f32.mrf.mxu0  ;;  %v202_v34 = vpop.f32.mrf.mxu1 }
  0xaf   :  { %v284_v35 = vadd.f32 %v422_v16, %v192_v33  ;;  %v288_v36 = vadd.f32 %v422_v16, %v202_v34 }
  0xb0   :  { %307 = vst [vmem:[%s545_s3 + $0x48] sm:$0xff] %v291_v31 }
  0xb1   :  { %311 = vst [vmem:[%s545_s3 + $0x68] sm:$0xff] %v295_v32 }
  0xb2   :  { %300 = vst [vmem:[%s545_s3 + $0x10] sm:$0xff] %v284_v35 }
  0xb3   :  { %304 = vst [vmem:[%s545_s3 + $0x30] sm:$0xff] %v288_v36 }
  0xb5   :  { %v212_v37 = vpop.f32.mrf.mxu2  ;;  %v222_v38 = vpop.f32.mrf.mxu3 }
  0xb6   :  { %v292_v39 = vadd.f32 %v422_v16, %v212_v37  ;;  %v296_v40 = vadd.f32 %v422_v16, %v222_v38  ;;  %v194_v41 = vpop.f32.mrf.mxu0  ;;  %v204_v42 = vpop.f32.mrf.mxu1 }
  0xb7   :  { %v285_v43 = vadd.f32 %v422_v16, %v194_v41  ;;  %v289_v44 = vadd.f32 %v422_v16, %v204_v42 }
  0xb8   :  { %308 = vst [vmem:[%s545_s3 + $0x50] sm:$0xff] %v292_v39 }
  0xb9   :  { %312 = vst [vmem:[%s545_s3 + $0x70] sm:$0xff] %v296_v40 }
  0xba   :  { %301 = vst [vmem:[%s545_s3 + $0x18] sm:$0xff] %v285_v43 }
  0xbb   :  { %305 = vst [vmem:[%s545_s3 + $0x38] sm:$0xff] %v289_v44 }
  0xbd   :  { %v214_v45 = vpop.f32.mrf.mxu2  ;;  %v224_v46 = vpop.f32.mrf.mxu3 }
  0xbe   :  { %v293_v47 = vadd.f32 %v422_v16, %v214_v45  ;;  %v297_v48 = vadd.f32 %v422_v16, %v224_v46 }
  0xc0   :  { %309 = vst [vmem:[%s545_s3 + $0x58] sm:$0xff] %v293_v47 }
  0xc1   :  { %313 = vst [vmem:[%s545_s3 + $0x78] sm:$0xff] %v297_v48 }

</bundles_post_ra>
